<compile_context>
chip_gen: v6e
topology: v6e:2x2x1
jax: 0.10.0
libtpu: 0.0.40
codegen_flags: <defaults>
</compile_context>

<pallas_src>
import functools

import jax
import jax.numpy as jnp
from jax.experimental import pallas as pl
from jax.experimental.pallas import tpu as pltpu

_LANE = 128


def _soft_round_kernel(x_ref, o_ref, *, tau: float):
    # x_ref / o_ref: (d, TC) -- d = pairwise axis (sublanes), TC = rows (lanes).
    x = x_ref[...].astype(jnp.float32)
    d = x.shape[0]
    inv_tau = jnp.float32(1.0 / tau)

    acc = jnp.zeros(x.shape, jnp.float32)
    # d is a small compile-time constant -> fully unrolled 2-D accumulation,
    # keeping every op full-width across the 128 lanes.
    for j in range(d):
        xj = x[j : j + 1, :]                        # (1, TC), sublane broadcast
        z = (x - xj + 1.0) * 0.5                    # (d, TC)
        offset = jnp.floor(z)
        t = jnp.tanh((z - offset - 0.5) * inv_tau)  # EUP transcendental
        acc = acc + offset + (t + 1.0) * 0.5

    o_ref[...] = (acc - 0.5).astype(o_ref.dtype)


def soft_round(x: jax.Array, tau: float = 0.001, *, tile_cols: int = 512) -> jax.Array:
    """Pallas implementation of SoftRoundLayer.forward (soft ranks along last dim)."""
    orig_shape = x.shape
    d = orig_shape[-1]
    rows = 1
    for s in orig_shape[:-1]:
        rows *= s
    x2 = x.reshape(rows, d)

    # Lane-dense layout: rows along the 128-wide lane axis (layout plumbing only).
    xt = x2.T                                            # (d, rows)
    tc = min(tile_cols, pl.cdiv(rows, _LANE) * _LANE)
    tc = max(_LANE, (tc // _LANE) * _LANE)               # multiple of 128 lanes
    rows_p = pl.cdiv(rows, tc) * tc                      # pad rows up to tile multiple
    if rows_p != rows:
        xt = jnp.pad(xt, ((0, 0), (0, rows_p - rows)))

    out_t = pl.pallas_call(
        functools.partial(_soft_round_kernel, tau=tau),
        out_shape=jax.ShapeDtypeStruct((d, rows_p), x.dtype),
        grid=(rows_p // tc,),
        in_specs=[pl.BlockSpec((d, tc), lambda c: (0, c))],
        out_specs=pl.BlockSpec((d, tc), lambda c: (0, c)),
        compiler_params=pltpu.CompilerParams(
            dimension_semantics=("parallel",),
        ),
    )(xt)

    return out_t[:, :rows].T.reshape(orig_shape)


def _soft_round_ref(x: jax.Array, tau: float) -> jax.Array:
    # Pure-JAX mirror of the PyTorch reference (soft_round / approximate_round).
    n, d = x.shape
    diffs = x.reshape(n, 1, d) - x.reshape(n, d, 1)      # [i, j, k] = x[i,k] - x[i,j]
    z = (diffs + 1.0) / 2.0
    offset = jnp.floor(z)
    rc = (jnp.tanh((z - offset - 0.5) / tau) + 1.0) / 2.0
    return jnp.sum(offset + rc, axis=1) - 0.5


if __name__ == "__main__":
    key = jax.random.PRNGKey(0)
    tau = 0.001
    # 2-D (n, d) input, as SoftRoundLayer.forward implies.
    x = jax.random.normal(key, (64, 32), dtype=jnp.float32)

    y = soft_round(x, tau=tau)
    y = jax.block_until_ready(y)

    ref = _soft_round_ref(x, tau)
    assert y.shape == x.shape and y.dtype == x.dtype
    assert bool(jnp.allclose(y, ref, rtol=1e-4, atol=1e-3)), (
        "Pallas soft_round mismatch vs reference"
    )

    print("KERNEL_OK")
</pallas_src>

<mosaic_0001>
module attributes {stable_mosaic.version = 11 : i64} {
  func.func @_soft_round_kernel(%arg0: i32, %arg1: memref<32x128xf32, #tpu.memory_space<vmem>>, %arg2: memref<32x128xf32, #tpu.memory_space<vmem>>) attributes {dimension_semantics = [#tpu.dimension_semantics<parallel>], iteration_bounds = array<i64: 1>, scalar_prefetch = 0 : i64, scratch_operands = 0 : i64, tpu.core_type = #tpu.core_type<tc>, window_params = [{transform_indices = @transform_0, window_bounds = array<i64: 32, 128>}, {transform_indices = @transform_1, window_bounds = array<i64: 32, 128>}]} {
    %c0 = arith.constant 0 : index
    %c0_0 = arith.constant 0 : index
    %0 = vector.load %arg1[%c0, %c0_0] : memref<32x128xf32, #tpu.memory_space<vmem>>, vector<32x128xf32>
    %cst = arith.constant 0.000000e+00 : f32
    %1 = vector.broadcast %cst : f32 to vector<32x128xf32>
    %2 = vector.extract_strided_slice %0 {offsets = [0, 0], sizes = [1, 128], strides = [1, 1]} : vector<32x128xf32> to vector<1x128xf32>
    %3 = vector.broadcast %2 : vector<1x128xf32> to vector<32x128xf32>
    %4 = arith.subf %0, %3 : vector<32x128xf32>
    %cst_1 = arith.constant 1.000000e+00 : f32
    %5 = vector.broadcast %cst_1 : f32 to vector<32x128xf32>
    %6 = arith.addf %4, %5 : vector<32x128xf32>
    %cst_2 = arith.constant 5.000000e-01 : f32
    %7 = vector.broadcast %cst_2 : f32 to vector<32x128xf32>
    %8 = arith.mulf %6, %7 : vector<32x128xf32>
    %9 = math.floor %8 : vector<32x128xf32>
    %10 = arith.subf %8, %9 : vector<32x128xf32>
    %cst_3 = arith.constant 5.000000e-01 : f32
    %11 = vector.broadcast %cst_3 : f32 to vector<32x128xf32>
    %12 = arith.subf %10, %11 : vector<32x128xf32>
    %cst_4 = arith.constant 1.000000e+03 : f32
    %13 = vector.broadcast %cst_4 : f32 to vector<32x128xf32>
    %14 = arith.mulf %12, %13 : vector<32x128xf32>
    %15 = math.tanh %14 : vector<32x128xf32>
    %16 = arith.addf %1, %9 : vector<32x128xf32>
    %cst_5 = arith.constant 1.000000e+00 : f32
    %17 = vector.broadcast %cst_5 : f32 to vector<32x128xf32>
    %18 = arith.addf %15, %17 : vector<32x128xf32>
    %cst_6 = arith.constant 5.000000e-01 : f32
    %19 = vector.broadcast %cst_6 : f32 to vector<32x128xf32>
    %20 = arith.mulf %18, %19 : vector<32x128xf32>
    %21 = arith.addf %16, %20 : vector<32x128xf32>
    %22 = vector.extract_strided_slice %0 {offsets = [1, 0], sizes = [1, 128], strides = [1, 1]} : vector<32x128xf32> to vector<1x128xf32>
    %23 = vector.broadcast %22 : vector<1x128xf32> to vector<32x128xf32>
    %24 = arith.subf %0, %23 : vector<32x128xf32>
    %cst_7 = arith.constant 1.000000e+00 : f32
    %25 = vector.broadcast %cst_7 : f32 to vector<32x128xf32>
    %26 = arith.addf %24, %25 : vector<32x128xf32>
    %cst_8 = arith.constant 5.000000e-01 : f32
    %27 = vector.broadcast %cst_8 : f32 to vector<32x128xf32>
    %28 = arith.mulf %26, %27 : vector<32x128xf32>
    %29 = math.floor %28 : vector<32x128xf32>
    %30 = arith.subf %28, %29 : vector<32x128xf32>
    %cst_9 = arith.constant 5.000000e-01 : f32
    %31 = vector.broadcast %cst_9 : f32 to vector<32x128xf32>
    %32 = arith.subf %30, %31 : vector<32x128xf32>
    %cst_10 = arith.constant 1.000000e+03 : f32
    %33 = vector.broadcast %cst_10 : f32 to vector<32x128xf32>
    %34 = arith.mulf %32, %33 : vector<32x128xf32>
    %35 = math.tanh %34 : vector<32x128xf32>
    %36 = arith.addf %21, %29 : vector<32x128xf32>
    %cst_11 = arith.constant 1.000000e+00 : f32
    %37 = vector.broadcast %cst_11 : f32 to vector<32x128xf32>
    %38 = arith.addf %35, %37 : vector<32x128xf32>
    %cst_12 = arith.constant 5.000000e-01 : f32
    %39 = vector.broadcast %cst_12 : f32 to vector<32x128xf32>
    %40 = arith.mulf %38, %39 : vector<32x128xf32>
    %41 = arith.addf %36, %40 : vector<32x128xf32>
    %42 = vector.extract_strided_slice %0 {offsets = [2, 0], sizes = [1, 128], strides = [1, 1]} : vector<32x128xf32> to vector<1x128xf32>
    %43 = vector.broadcast %42 : vector<1x128xf32> to vector<32x128xf32>
    %44 = arith.subf %0, %43 : vector<32x128xf32>
    %cst_13 = arith.constant 1.000000e+00 : f32
    %45 = vector.broadcast %cst_13 : f32 to vector<32x128xf32>
    %46 = arith.addf %44, %45 : vector<32x128xf32>
    %cst_14 = arith.constant 5.000000e-01 : f32
    %47 = vector.broadcast %cst_14 : f32 to vector<32x128xf32>
    %48 = arith.mulf %46, %47 : vector<32x128xf32>
    %49 = math.floor %48 : vector<32x128xf32>
    %50 = arith.subf %48, %49 : vector<32x128xf32>
    %cst_15 = arith.constant 5.000000e-01 : f32
    %51 = vector.broadcast %cst_15 : f32 to vector<32x128xf32>
    %52 = arith.subf %50, %51 : vector<32x128xf32>
    %cst_16 = arith.constant 1.000000e+03 : f32
    %53 = vector.broadcast %cst_16 : f32 to vector<32x128xf32>
    %54 = arith.mulf %52, %53 : vector<32x128xf32>
    %55 = math.tanh %54 : vector<32x128xf32>
    %56 = arith.addf %41, %49 : vector<32x128xf32>
    %cst_17 = arith.constant 1.000000e+00 : f32
    %57 = vector.broadcast %cst_17 : f32 to vector<32x128xf32>
    %58 = arith.addf %55, %57 : vector<32x128xf32>
    %cst_18 = arith.constant 5.000000e-01 : f32
    %59 = vector.broadcast %cst_18 : f32 to vector<32x128xf32>
    %60 = arith.mulf %58, %59 : vector<32x128xf32>
    %61 = arith.addf %56, %60 : vector<32x128xf32>
    %62 = vector.extract_strided_slice %0 {offsets = [3, 0], sizes = [1, 128], strides = [1, 1]} : vector<32x128xf32> to vector<1x128xf32>
    %63 = vector.broadcast %62 : vector<1x128xf32> to vector<32x128xf32>
    %64 = arith.subf %0, %63 : vector<32x128xf32>
    %cst_19 = arith.constant 1.000000e+00 : f32
    %65 = vector.broadcast %cst_19 : f32 to vector<32x128xf32>
    %66 = arith.addf %64, %65 : vector<32x128xf32>
    %cst_20 = arith.constant 5.000000e-01 : f32
    %67 = vector.broadcast %cst_20 : f32 to vector<32x128xf32>
    %68 = arith.mulf %66, %67 : vector<32x128xf32>
    %69 = math.floor %68 : vector<32x128xf32>
    %70 = arith.subf %68, %69 : vector<32x128xf32>
    %cst_21 = arith.constant 5.000000e-01 : f32
    %71 = vector.broadcast %cst_21 : f32 to vector<32x128xf32>
    %72 = arith.subf %70, %71 : vector<32x128xf32>
    %cst_22 = arith.constant 1.000000e+03 : f32
    %73 = vector.broadcast %cst_22 : f32 to vector<32x128xf32>
    %74 = arith.mulf %72, %73 : vector<32x128xf32>
    %75 = math.tanh %74 : vector<32x128xf32>
    %76 = arith.addf %61, %69 : vector<32x128xf32>
    %cst_23 = arith.constant 1.000000e+00 : f32
    %77 = vector.broadcast %cst_23 : f32 to vector<32x128xf32>
    %78 = arith.addf %75, %77 : vector<32x128xf32>
    %cst_24 = arith.constant 5.000000e-01 : f32
    %79 = vector.broadcast %cst_24 : f32 to vector<32x128xf32>
    %80 = arith.mulf %78, %79 : vector<32x128xf32>
    %81 = arith.addf %76, %80 : vector<32x128xf32>
    %82 = vector.extract_strided_slice %0 {offsets = [4, 0], sizes = [1, 128], strides = [1, 1]} : vector<32x128xf32> to vector<1x128xf32>
    %83 = vector.broadcast %82 : vector<1x128xf32> to vector<32x128xf32>
    %84 = arith.subf %0, %83 : vector<32x128xf32>
    %cst_25 = arith.constant 1.000000e+00 : f32
    %85 = vector.broadcast %cst_25 : f32 to vector<32x128xf32>
    %86 = arith.addf %84, %85 : vector<32x128xf32>
    %cst_26 = arith.constant 5.000000e-01 : f32
    %87 = vector.broadcast %cst_26 : f32 to vector<32x128xf32>
    %88 = arith.mulf %86, %87 : vector<32x128xf32>
    %89 = math.floor %88 : vector<32x128xf32>
    %90 = arith.subf %88, %89 : vector<32x128xf32>
    %cst_27 = arith.constant 5.000000e-01 : f32
    %91 = vector.broadcast %cst_27 : f32 to vector<32x128xf32>
    %92 = arith.subf %90, %91 : vector<32x128xf32>
    %cst_28 = arith.constant 1.000000e+03 : f32
    %93 = vector.broadcast %cst_28 : f32 to vector<32x128xf32>
    %94 = arith.mulf %92, %93 : vector<32x128xf32>
    %95 = math.tanh %94 : vector<32x128xf32>
    %96 = arith.addf %81, %89 : vector<32x128xf32>
    %cst_29 = arith.constant 1.000000e+00 : f32
    %97 = vector.broadcast %cst_29 : f32 to vector<32x128xf32>
    %98 = arith.addf %95, %97 : vector<32x128xf32>
    %cst_30 = arith.constant 5.000000e-01 : f32
    %99 = vector.broadcast %cst_30 : f32 to vector<32x128xf32>
    %100 = arith.mulf %98, %99 : vector<32x128xf32>
    %101 = arith.addf %96, %100 : vector<32x128xf32>
    %102 = vector.extract_strided_slice %0 {offsets = [5, 0], sizes = [1, 128], strides = [1, 1]} : vector<32x128xf32> to vector<1x128xf32>
    %103 = vector.broadcast %102 : vector<1x128xf32> to vector<32x128xf32>
    %104 = arith.subf %0, %103 : vector<32x128xf32>
    %cst_31 = arith.constant 1.000000e+00 : f32
    %105 = vector.broadcast %cst_31 : f32 to vector<32x128xf32>
    %106 = arith.addf %104, %105 : vector<32x128xf32>
    %cst_32 = arith.constant 5.000000e-01 : f32
    %107 = vector.broadcast %cst_32 : f32 to vector<32x128xf32>
    %108 = arith.mulf %106, %107 : vector<32x128xf32>
    %109 = math.floor %108 : vector<32x128xf32>
    %110 = arith.subf %108, %109 : vector<32x128xf32>
    %cst_33 = arith.constant 5.000000e-01 : f32
    %111 = vector.broadcast %cst_33 : f32 to vector<32x128xf32>
    %112 = arith.subf %110, %111 : vector<32x128xf32>
    %cst_34 = arith.constant 1.000000e+03 : f32
    %113 = vector.broadcast %cst_34 : f32 to vector<32x128xf32>
    %114 = arith.mulf %112, %113 : vector<32x128xf32>
    %115 = math.tanh %114 : vector<32x128xf32>
    %116 = arith.addf %101, %109 : vector<32x128xf32>
    %cst_35 = arith.constant 1.000000e+00 : f32
    %117 = vector.broadcast %cst_35 : f32 to vector<32x128xf32>
    %118 = arith.addf %115, %117 : vector<32x128xf32>
    %cst_36 = arith.constant 5.000000e-01 : f32
    %119 = vector.broadcast %cst_36 : f32 to vector<32x128xf32>
    %120 = arith.mulf %118, %119 : vector<32x128xf32>
    %121 = arith.addf %116, %120 : vector<32x128xf32>
    %122 = vector.extract_strided_slice %0 {offsets = [6, 0], sizes = [1, 128], strides = [1, 1]} : vector<32x128xf32> to vector<1x128xf32>
    %123 = vector.broadcast %122 : vector<1x128xf32> to vector<32x128xf32>
    %124 = arith.subf %0, %123 : vector<32x128xf32>
    %cst_37 = arith.constant 1.000000e+00 : f32
    %125 = vector.broadcast %cst_37 : f32 to vector<32x128xf32>
    %126 = arith.addf %124, %125 : vector<32x128xf32>
    %cst_38 = arith.constant 5.000000e-01 : f32
    %127 = vector.broadcast %cst_38 : f32 to vector<32x128xf32>
    %128 = arith.mulf %126, %127 : vector<32x128xf32>
    %129 = math.floor %128 : vector<32x128xf32>
    %130 = arith.subf %128, %129 : vector<32x128xf32>
    %cst_39 = arith.constant 5.000000e-01 : f32
    %131 = vector.broadcast %cst_39 : f32 to vector<32x128xf32>
    %132 = arith.subf %130, %131 : vector<32x128xf32>
    %cst_40 = arith.constant 1.000000e+03 : f32
    %133 = vector.broadcast %cst_40 : f32 to vector<32x128xf32>
    %134 = arith.mulf %132, %133 : vector<32x128xf32>
    %135 = math.tanh %134 : vector<32x128xf32>
    %136 = arith.addf %121, %129 : vector<32x128xf32>
    %cst_41 = arith.constant 1.000000e+00 : f32
    %137 = vector.broadcast %cst_41 : f32 to vector<32x128xf32>
    %138 = arith.addf %135, %137 : vector<32x128xf32>
    %cst_42 = arith.constant 5.000000e-01 : f32
    %139 = vector.broadcast %cst_42 : f32 to vector<32x128xf32>
    %140 = arith.mulf %138, %139 : vector<32x128xf32>
    %141 = arith.addf %136, %140 : vector<32x128xf32>
    %142 = vector.extract_strided_slice %0 {offsets = [7, 0], sizes = [1, 128], strides = [1, 1]} : vector<32x128xf32> to vector<1x128xf32>
    %143 = vector.broadcast %142 : vector<1x128xf32> to vector<32x128xf32>
    %144 = arith.subf %0, %143 : vector<32x128xf32>
    %cst_43 = arith.constant 1.000000e+00 : f32
    %145 = vector.broadcast %cst_43 : f32 to vector<32x128xf32>
    %146 = arith.addf %144, %145 : vector<32x128xf32>
    %cst_44 = arith.constant 5.000000e-01 : f32
    %147 = vector.broadcast %cst_44 : f32 to vector<32x128xf32>
    %148 = arith.mulf %146, %147 : vector<32x128xf32>
    %149 = math.floor %148 : vector<32x128xf32>
    %150 = arith.subf %148, %149 : vector<32x128xf32>
    %cst_45 = arith.constant 5.000000e-01 : f32
    %151 = vector.broadcast %cst_45 : f32 to vector<32x128xf32>
    %152 = arith.subf %150, %151 : vector<32x128xf32>
    %cst_46 = arith.constant 1.000000e+03 : f32
    %153 = vector.broadcast %cst_46 : f32 to vector<32x128xf32>
    %154 = arith.mulf %152, %153 : vector<32x128xf32>
    %155 = math.tanh %154 : vector<32x128xf32>
    %156 = arith.addf %141, %149 : vector<32x128xf32>
    %cst_47 = arith.constant 1.000000e+00 : f32
    %157 = vector.broadcast %cst_47 : f32 to vector<32x128xf32>
    %158 = arith.addf %155, %157 : vector<32x128xf32>
    %cst_48 = arith.constant 5.000000e-01 : f32
    %159 = vector.broadcast %cst_48 : f32 to vector<32x128xf32>
    %160 = arith.mulf %158, %159 : vector<32x128xf32>
    %161 = arith.addf %156, %160 : vector<32x128xf32>
    %162 = vector.extract_strided_slice %0 {offsets = [8, 0], sizes = [1, 128], strides = [1, 1]} : vector<32x128xf32> to vector<1x128xf32>
    %163 = vector.broadcast %162 : vector<1x128xf32> to vector<32x128xf32>
    %164 = arith.subf %0, %163 : vector<32x128xf32>
    %cst_49 = arith.constant 1.000000e+00 : f32
    %165 = vector.broadcast %cst_49 : f32 to vector<32x128xf32>
    %166 = arith.addf %164, %165 : vector<32x128xf32>
    %cst_50 = arith.constant 5.000000e-01 : f32
    %167 = vector.broadcast %cst_50 : f32 to vector<32x128xf32>
    %168 = arith.mulf %166, %167 : vector<32x128xf32>
    %169 = math.floor %168 : vector<32x128xf32>
    %170 = arith.subf %168, %169 : vector<32x128xf32>
    %cst_51 = arith.constant 5.000000e-01 : f32
    %171 = vector.broadcast %cst_51 : f32 to vector<32x128xf32>
    %172 = arith.subf %170, %171 : vector<32x128xf32>
    %cst_52 = arith.constant 1.000000e+03 : f32
    %173 = vector.broadcast %cst_52 : f32 to vector<32x128xf32>
    %174 = arith.mulf %172, %173 : vector<32x128xf32>
    %175 = math.tanh %174 : vector<32x128xf32>
    %176 = arith.addf %161, %169 : vector<32x128xf32>
    %cst_53 = arith.constant 1.000000e+00 : f32
    %177 = vector.broadcast %cst_53 : f32 to vector<32x128xf32>
    %178 = arith.addf %175, %177 : vector<32x128xf32>
    %cst_54 = arith.constant 5.000000e-01 : f32
    %179 = vector.broadcast %cst_54 : f32 to vector<32x128xf32>
    %180 = arith.mulf %178, %179 : vector<32x128xf32>
    %181 = arith.addf %176, %180 : vector<32x128xf32>
    %182 = vector.extract_strided_slice %0 {offsets = [9, 0], sizes = [1, 128], strides = [1, 1]} : vector<32x128xf32> to vector<1x128xf32>
    %183 = vector.broadcast %182 : vector<1x128xf32> to vector<32x128xf32>
    %184 = arith.subf %0, %183 : vector<32x128xf32>
    %cst_55 = arith.constant 1.000000e+00 : f32
    %185 = vector.broadcast %cst_55 : f32 to vector<32x128xf32>
    %186 = arith.addf %184, %185 : vector<32x128xf32>
    %cst_56 = arith.constant 5.000000e-01 : f32
    %187 = vector.broadcast %cst_56 : f32 to vector<32x128xf32>
    %188 = arith.mulf %186, %187 : vector<32x128xf32>
    %189 = math.floor %188 : vector<32x128xf32>
    %190 = arith.subf %188, %189 : vector<32x128xf32>
    %cst_57 = arith.constant 5.000000e-01 : f32
    %191 = vector.broadcast %cst_57 : f32 to vector<32x128xf32>
    %192 = arith.subf %190, %191 : vector<32x128xf32>
    %cst_58 = arith.constant 1.000000e+03 : f32
    %193 = vector.broadcast %cst_58 : f32 to vector<32x128xf32>
    %194 = arith.mulf %192, %193 : vector<32x128xf32>
    %195 = math.tanh %194 : vector<32x128xf32>
    %196 = arith.addf %181, %189 : vector<32x128xf32>
    %cst_59 = arith.constant 1.000000e+00 : f32
    %197 = vector.broadcast %cst_59 : f32 to vector<32x128xf32>
    %198 = arith.addf %195, %197 : vector<32x128xf32>
    %cst_60 = arith.constant 5.000000e-01 : f32
    %199 = vector.broadcast %cst_60 : f32 to vector<32x128xf32>
    %200 = arith.mulf %198, %199 : vector<32x128xf32>
    %201 = arith.addf %196, %200 : vector<32x128xf32>
    %202 = vector.extract_strided_slice %0 {offsets = [10, 0], sizes = [1, 128], strides = [1, 1]} : vector<32x128xf32> to vector<1x128xf32>
    %203 = vector.broadcast %202 : vector<1x128xf32> to vector<32x128xf32>
    %204 = arith.subf %0, %203 : vector<32x128xf32>
    %cst_61 = arith.constant 1.000000e+00 : f32
    %205 = vector.broadcast %cst_61 : f32 to vector<32x128xf32>
    %206 = arith.addf %204, %205 : vector<32x128xf32>
    %cst_62 = arith.constant 5.000000e-01 : f32
    %207 = vector.broadcast %cst_62 : f32 to vector<32x128xf32>
    %208 = arith.mulf %206, %207 : vector<32x128xf32>
    %209 = math.floor %208 : vector<32x128xf32>
    %210 = arith.subf %208, %209 : vector<32x128xf32>
    %cst_63 = arith.constant 5.000000e-01 : f32
    %211 = vector.broadcast %cst_63 : f32 to vector<32x128xf32>
    %212 = arith.subf %210, %211 : vector<32x128xf32>
    %cst_64 = arith.constant 1.000000e+03 : f32
    %213 = vector.broadcast %cst_64 : f32 to vector<32x128xf32>
    %214 = arith.mulf %212, %213 : vector<32x128xf32>
    %215 = math.tanh %214 : vector<32x128xf32>
    %216 = arith.addf %201, %209 : vector<32x128xf32>
    %cst_65 = arith.constant 1.000000e+00 : f32
    %217 = vector.broadcast %cst_65 : f32 to vector<32x128xf32>
    %218 = arith.addf %215, %217 : vector<32x128xf32>
    %cst_66 = arith.constant 5.000000e-01 : f32
    %219 = vector.broadcast %cst_66 : f32 to vector<32x128xf32>
    %220 = arith.mulf %218, %219 : vector<32x128xf32>
    %221 = arith.addf %216, %220 : vector<32x128xf32>
    %222 = vector.extract_strided_slice %0 {offsets = [11, 0], sizes = [1, 128], strides = [1, 1]} : vector<32x128xf32> to vector<1x128xf32>
    %223 = vector.broadcast %222 : vector<1x128xf32> to vector<32x128xf32>
    %224 = arith.subf %0, %223 : vector<32x128xf32>
    %cst_67 = arith.constant 1.000000e+00 : f32
    %225 = vector.broadcast %cst_67 : f32 to vector<32x128xf32>
    %226 = arith.addf %224, %225 : vector<32x128xf32>
    %cst_68 = arith.constant 5.000000e-01 : f32
    %227 = vector.broadcast %cst_68 : f32 to vector<32x128xf32>
    %228 = arith.mulf %226, %227 : vector<32x128xf32>
    %229 = math.floor %228 : vector<32x128xf32>
    %230 = arith.subf %228, %229 : vector<32x128xf32>
    %cst_69 = arith.constant 5.000000e-01 : f32
    %231 = vector.broadcast %cst_69 : f32 to vector<32x128xf32>
    %232 = arith.subf %230, %231 : vector<32x128xf32>
    %cst_70 = arith.constant 1.000000e+03 : f32
    %233 = vector.broadcast %cst_70 : f32 to vector<32x128xf32>
    %234 = arith.mulf %232, %233 : vector<32x128xf32>
    %235 = math.tanh %234 : vector<32x128xf32>
    %236 = arith.addf %221, %229 : vector<32x128xf32>
    %cst_71 = arith.constant 1.000000e+00 : f32
    %237 = vector.broadcast %cst_71 : f32 to vector<32x128xf32>
    %238 = arith.addf %235, %237 : vector<32x128xf32>
    %cst_72 = arith.constant 5.000000e-01 : f32
    %239 = vector.broadcast %cst_72 : f32 to vector<32x128xf32>
    %240 = arith.mulf %238, %239 : vector<32x128xf32>
    %241 = arith.addf %236, %240 : vector<32x128xf32>
    %242 = vector.extract_strided_slice %0 {offsets = [12, 0], sizes = [1, 128], strides = [1, 1]} : vector<32x128xf32> to vector<1x128xf32>
    %243 = vector.broadcast %242 : vector<1x128xf32> to vector<32x128xf32>
    %244 = arith.subf %0, %243 : vector<32x128xf32>
    %cst_73 = arith.constant 1.000000e+00 : f32
    %245 = vector.broadcast %cst_73 : f32 to vector<32x128xf32>
    %246 = arith.addf %244, %245 : vector<32x128xf32>
    %cst_74 = arith.constant 5.000000e-01 : f32
    %247 = vector.broadcast %cst_74 : f32 to vector<32x128xf32>
    %248 = arith.mulf %246, %247 : vector<32x128xf32>
    %249 = math.floor %248 : vector<32x128xf32>
    %250 = arith.subf %248, %249 : vector<32x128xf32>
    %cst_75 = arith.constant 5.000000e-01 : f32
    %251 = vector.broadcast %cst_75 : f32 to vector<32x128xf32>
    %252 = arith.subf %250, %251 : vector<32x128xf32>
    %cst_76 = arith.constant 1.000000e+03 : f32
    %253 = vector.broadcast %cst_76 : f32 to vector<32x128xf32>
    %254 = arith.mulf %252, %253 : vector<32x128xf32>
    %255 = math.tanh %254 : vector<32x128xf32>
    %256 = arith.addf %241, %249 : vector<32x128xf32>
    %cst_77 = arith.constant 1.000000e+00 : f32
    %257 = vector.broadcast %cst_77 : f32 to vector<32x128xf32>
    %258 = arith.addf %255, %257 : vector<32x128xf32>
    %cst_78 = arith.constant 5.000000e-01 : f32
    %259 = vector.broadcast %cst_78 : f32 to vector<32x128xf32>
    %260 = arith.mulf %258, %259 : vector<32x128xf32>
    %261 = arith.addf %256, %260 : vector<32x128xf32>
    %262 = vector.extract_strided_slice %0 {offsets = [13, 0], sizes = [1, 128], strides = [1, 1]} : vector<32x128xf32> to vector<1x128xf32>
    %263 = vector.broadcast %262 : vector<1x128xf32> to vector<32x128xf32>
    %264 = arith.subf %0, %263 : vector<32x128xf32>
    %cst_79 = arith.constant 1.000000e+00 : f32
    %265 = vector.broadcast %cst_79 : f32 to vector<32x128xf32>
    %266 = arith.addf %264, %265 : vector<32x128xf32>
    %cst_80 = arith.constant 5.000000e-01 : f32
    %267 = vector.broadcast %cst_80 : f32 to vector<32x128xf32>
    %268 = arith.mulf %266, %267 : vector<32x128xf32>
    %269 = math.floor %268 : vector<32x128xf32>
    %270 = arith.subf %268, %269 : vector<32x128xf32>
    %cst_81 = arith.constant 5.000000e-01 : f32
    %271 = vector.broadcast %cst_81 : f32 to vector<32x128xf32>
    %272 = arith.subf %270, %271 : vector<32x128xf32>
    %cst_82 = arith.constant 1.000000e+03 : f32
    %273 = vector.broadcast %cst_82 : f32 to vector<32x128xf32>
    %274 = arith.mulf %272, %273 : vector<32x128xf32>
    %275 = math.tanh %274 : vector<32x128xf32>
    %276 = arith.addf %261, %269 : vector<32x128xf32>
    %cst_83 = arith.constant 1.000000e+00 : f32
    %277 = vector.broadcast %cst_83 : f32 to vector<32x128xf32>
    %278 = arith.addf %275, %277 : vector<32x128xf32>
    %cst_84 = arith.constant 5.000000e-01 : f32
    %279 = vector.broadcast %cst_84 : f32 to vector<32x128xf32>
    %280 = arith.mulf %278, %279 : vector<32x128xf32>
    %281 = arith.addf %276, %280 : vector<32x128xf32>
    %282 = vector.extract_strided_slice %0 {offsets = [14, 0], sizes = [1, 128], strides = [1, 1]} : vector<32x128xf32> to vector<1x128xf32>
    %283 = vector.broadcast %282 : vector<1x128xf32> to vector<32x128xf32>
    %284 = arith.subf %0, %283 : vector<32x128xf32>
    %cst_85 = arith.constant 1.000000e+00 : f32
    %285 = vector.broadcast %cst_85 : f32 to vector<32x128xf32>
    %286 = arith.addf %284, %285 : vector<32x128xf32>
    %cst_86 = arith.constant 5.000000e-01 : f32
    %287 = vector.broadcast %cst_86 : f32 to vector<32x128xf32>
    %288 = arith.mulf %286, %287 : vector<32x128xf32>
    %289 = math.floor %288 : vector<32x128xf32>
    %290 = arith.subf %288, %289 : vector<32x128xf32>
    %cst_87 = arith.constant 5.000000e-01 : f32
    %291 = vector.broadcast %cst_87 : f32 to vector<32x128xf32>
    %292 = arith.subf %290, %291 : vector<32x128xf32>
    %cst_88 = arith.constant 1.000000e+03 : f32
    %293 = vector.broadcast %cst_88 : f32 to vector<32x128xf32>
    %294 = arith.mulf %292, %293 : vector<32x128xf32>
    %295 = math.tanh %294 : vector<32x128xf32>
    %296 = arith.addf %281, %289 : vector<32x128xf32>
    %cst_89 = arith.constant 1.000000e+00 : f32
    %297 = vector.broadcast %cst_89 : f32 to vector<32x128xf32>
    %298 = arith.addf %295, %297 : vector<32x128xf32>
    %cst_90 = arith.constant 5.000000e-01 : f32
    %299 = vector.broadcast %cst_90 : f32 to vector<32x128xf32>
    %300 = arith.mulf %298, %299 : vector<32x128xf32>
    %301 = arith.addf %296, %300 : vector<32x128xf32>
    %302 = vector.extract_strided_slice %0 {offsets = [15, 0], sizes = [1, 128], strides = [1, 1]} : vector<32x128xf32> to vector<1x128xf32>
    %303 = vector.broadcast %302 : vector<1x128xf32> to vector<32x128xf32>
    %304 = arith.subf %0, %303 : vector<32x128xf32>
    %cst_91 = arith.constant 1.000000e+00 : f32
    %305 = vector.broadcast %cst_91 : f32 to vector<32x128xf32>
    %306 = arith.addf %304, %305 : vector<32x128xf32>
    %cst_92 = arith.constant 5.000000e-01 : f32
    %307 = vector.broadcast %cst_92 : f32 to vector<32x128xf32>
    %308 = arith.mulf %306, %307 : vector<32x128xf32>
    %309 = math.floor %308 : vector<32x128xf32>
    %310 = arith.subf %308, %309 : vector<32x128xf32>
    %cst_93 = arith.constant 5.000000e-01 : f32
    %311 = vector.broadcast %cst_93 : f32 to vector<32x128xf32>
    %312 = arith.subf %310, %311 : vector<32x128xf32>
    %cst_94 = arith.constant 1.000000e+03 : f32
    %313 = vector.broadcast %cst_94 : f32 to vector<32x128xf32>
    %314 = arith.mulf %312, %313 : vector<32x128xf32>
    %315 = math.tanh %314 : vector<32x128xf32>
    %316 = arith.addf %301, %309 : vector<32x128xf32>
    %cst_95 = arith.constant 1.000000e+00 : f32
    %317 = vector.broadcast %cst_95 : f32 to vector<32x128xf32>
    %318 = arith.addf %315, %317 : vector<32x128xf32>
    %cst_96 = arith.constant 5.000000e-01 : f32
    %319 = vector.broadcast %cst_96 : f32 to vector<32x128xf32>
    %320 = arith.mulf %318, %319 : vector<32x128xf32>
    %321 = arith.addf %316, %320 : vector<32x128xf32>
    %322 = vector.extract_strided_slice %0 {offsets = [16, 0], sizes = [1, 128], strides = [1, 1]} : vector<32x128xf32> to vector<1x128xf32>
    %323 = vector.broadcast %322 : vector<1x128xf32> to vector<32x128xf32>
    %324 = arith.subf %0, %323 : vector<32x128xf32>
    %cst_97 = arith.constant 1.000000e+00 : f32
    %325 = vector.broadcast %cst_97 : f32 to vector<32x128xf32>
    %326 = arith.addf %324, %325 : vector<32x128xf32>
    %cst_98 = arith.constant 5.000000e-01 : f32
    %327 = vector.broadcast %cst_98 : f32 to vector<32x128xf32>
    %328 = arith.mulf %326, %327 : vector<32x128xf32>
    %329 = math.floor %328 : vector<32x128xf32>
    %330 = arith.subf %328, %329 : vector<32x128xf32>
    %cst_99 = arith.constant 5.000000e-01 : f32
    %331 = vector.broadcast %cst_99 : f32 to vector<32x128xf32>
    %332 = arith.subf %330, %331 : vector<32x128xf32>
    %cst_100 = arith.constant 1.000000e+03 : f32
    %333 = vector.broadcast %cst_100 : f32 to vector<32x128xf32>
    %334 = arith.mulf %332, %333 : vector<32x128xf32>
    %335 = math.tanh %334 : vector<32x128xf32>
    %336 = arith.addf %321, %329 : vector<32x128xf32>
    %cst_101 = arith.constant 1.000000e+00 : f32
    %337 = vector.broadcast %cst_101 : f32 to vector<32x128xf32>
    %338 = arith.addf %335, %337 : vector<32x128xf32>
    %cst_102 = arith.constant 5.000000e-01 : f32
    %339 = vector.broadcast %cst_102 : f32 to vector<32x128xf32>
    %340 = arith.mulf %338, %339 : vector<32x128xf32>
    %341 = arith.addf %336, %340 : vector<32x128xf32>
    %342 = vector.extract_strided_slice %0 {offsets = [17, 0], sizes = [1, 128], strides = [1, 1]} : vector<32x128xf32> to vector<1x128xf32>
    %343 = vector.broadcast %342 : vector<1x128xf32> to vector<32x128xf32>
    %344 = arith.subf %0, %343 : vector<32x128xf32>
    %cst_103 = arith.constant 1.000000e+00 : f32
    %345 = vector.broadcast %cst_103 : f32 to vector<32x128xf32>
    %346 = arith.addf %344, %345 : vector<32x128xf32>
    %cst_104 = arith.constant 5.000000e-01 : f32
    %347 = vector.broadcast %cst_104 : f32 to vector<32x128xf32>
    %348 = arith.mulf %346, %347 : vector<32x128xf32>
    %349 = math.floor %348 : vector<32x128xf32>
    %350 = arith.subf %348, %349 : vector<32x128xf32>
    %cst_105 = arith.constant 5.000000e-01 : f32
    %351 = vector.broadcast %cst_105 : f32 to vector<32x128xf32>
    %352 = arith.subf %350, %351 : vector<32x128xf32>
    %cst_106 = arith.constant 1.000000e+03 : f32
    %353 = vector.broadcast %cst_106 : f32 to vector<32x128xf32>
    %354 = arith.mulf %352, %353 : vector<32x128xf32>
    %355 = math.tanh %354 : vector<32x128xf32>
    %356 = arith.addf %341, %349 : vector<32x128xf32>
    %cst_107 = arith.constant 1.000000e+00 : f32
    %357 = vector.broadcast %cst_107 : f32 to vector<32x128xf32>
    %358 = arith.addf %355, %357 : vector<32x128xf32>
    %cst_108 = arith.constant 5.000000e-01 : f32
    %359 = vector.broadcast %cst_108 : f32 to vector<32x128xf32>
    %360 = arith.mulf %358, %359 : vector<32x128xf32>
    %361 = arith.addf %356, %360 : vector<32x128xf32>
    %362 = vector.extract_strided_slice %0 {offsets = [18, 0], sizes = [1, 128], strides = [1, 1]} : vector<32x128xf32> to vector<1x128xf32>
    %363 = vector.broadcast %362 : vector<1x128xf32> to vector<32x128xf32>
    %364 = arith.subf %0, %363 : vector<32x128xf32>
    %cst_109 = arith.constant 1.000000e+00 : f32
    %365 = vector.broadcast %cst_109 : f32 to vector<32x128xf32>
    %366 = arith.addf %364, %365 : vector<32x128xf32>
    %cst_110 = arith.constant 5.000000e-01 : f32
    %367 = vector.broadcast %cst_110 : f32 to vector<32x128xf32>
    %368 = arith.mulf %366, %367 : vector<32x128xf32>
    %369 = math.floor %368 : vector<32x128xf32>
    %370 = arith.subf %368, %369 : vector<32x128xf32>
    %cst_111 = arith.constant 5.000000e-01 : f32
    %371 = vector.broadcast %cst_111 : f32 to vector<32x128xf32>
    %372 = arith.subf %370, %371 : vector<32x128xf32>
    %cst_112 = arith.constant 1.000000e+03 : f32
    %373 = vector.broadcast %cst_112 : f32 to vector<32x128xf32>
    %374 = arith.mulf %372, %373 : vector<32x128xf32>
    %375 = math.tanh %374 : vector<32x128xf32>
    %376 = arith.addf %361, %369 : vector<32x128xf32>
    %cst_113 = arith.constant 1.000000e+00 : f32
    %377 = vector.broadcast %cst_113 : f32 to vector<32x128xf32>
    %378 = arith.addf %375, %377 : vector<32x128xf32>
    %cst_114 = arith.constant 5.000000e-01 : f32
    %379 = vector.broadcast %cst_114 : f32 to vector<32x128xf32>
    %380 = arith.mulf %378, %379 : vector<32x128xf32>
    %381 = arith.addf %376, %380 : vector<32x128xf32>
    %382 = vector.extract_strided_slice %0 {offsets = [19, 0], sizes = [1, 128], strides = [1, 1]} : vector<32x128xf32> to vector<1x128xf32>
    %383 = vector.broadcast %382 : vector<1x128xf32> to vector<32x128xf32>
    %384 = arith.subf %0, %383 : vector<32x128xf32>
    %cst_115 = arith.constant 1.000000e+00 : f32
    %385 = vector.broadcast %cst_115 : f32 to vector<32x128xf32>
    %386 = arith.addf %384, %385 : vector<32x128xf32>
    %cst_116 = arith.constant 5.000000e-01 : f32
    %387 = vector.broadcast %cst_116 : f32 to vector<32x128xf32>
    %388 = arith.mulf %386, %387 : vector<32x128xf32>
    %389 = math.floor %388 : vector<32x128xf32>
    %390 = arith.subf %388, %389 : vector<32x128xf32>
    %cst_117 = arith.constant 5.000000e-01 : f32
    %391 = vector.broadcast %cst_117 : f32 to vector<32x128xf32>
    %392 = arith.subf %390, %391 : vector<32x128xf32>
    %cst_118 = arith.constant 1.000000e+03 : f32
    %393 = vector.broadcast %cst_118 : f32 to vector<32x128xf32>
    %394 = arith.mulf %392, %393 : vector<32x128xf32>
    %395 = math.tanh %394 : vector<32x128xf32>
    %396 = arith.addf %381, %389 : vector<32x128xf32>
    %cst_119 = arith.constant 1.000000e+00 : f32
    %397 = vector.broadcast %cst_119 : f32 to vector<32x128xf32>
    %398 = arith.addf %395, %397 : vector<32x128xf32>
    %cst_120 = arith.constant 5.000000e-01 : f32
    %399 = vector.broadcast %cst_120 : f32 to vector<32x128xf32>
    %400 = arith.mulf %398, %399 : vector<32x128xf32>
    %401 = arith.addf %396, %400 : vector<32x128xf32>
    %402 = vector.extract_strided_slice %0 {offsets = [20, 0], sizes = [1, 128], strides = [1, 1]} : vector<32x128xf32> to vector<1x128xf32>
    %403 = vector.broadcast %402 : vector<1x128xf32> to vector<32x128xf32>
    %404 = arith.subf %0, %403 : vector<32x128xf32>
    %cst_121 = arith.constant 1.000000e+00 : f32
    %405 = vector.broadcast %cst_121 : f32 to vector<32x128xf32>
    %406 = arith.addf %404, %405 : vector<32x128xf32>
    %cst_122 = arith.constant 5.000000e-01 : f32
    %407 = vector.broadcast %cst_122 : f32 to vector<32x128xf32>
    %408 = arith.mulf %406, %407 : vector<32x128xf32>
    %409 = math.floor %408 : vector<32x128xf32>
    %410 = arith.subf %408, %409 : vector<32x128xf32>
    %cst_123 = arith.constant 5.000000e-01 : f32
    %411 = vector.broadcast %cst_123 : f32 to vector<32x128xf32>
    %412 = arith.subf %410, %411 : vector<32x128xf32>
    %cst_124 = arith.constant 1.000000e+03 : f32
    %413 = vector.broadcast %cst_124 : f32 to vector<32x128xf32>
    %414 = arith.mulf %412, %413 : vector<32x128xf32>
    %415 = math.tanh %414 : vector<32x128xf32>
    %416 = arith.addf %401, %409 : vector<32x128xf32>
    %cst_125 = arith.constant 1.000000e+00 : f32
    %417 = vector.broadcast %cst_125 : f32 to vector<32x128xf32>
    %418 = arith.addf %415, %417 : vector<32x128xf32>
    %cst_126 = arith.constant 5.000000e-01 : f32
    %419 = vector.broadcast %cst_126 : f32 to vector<32x128xf32>
    %420 = arith.mulf %418, %419 : vector<32x128xf32>
    %421 = arith.addf %416, %420 : vector<32x128xf32>
    %422 = vector.extract_strided_slice %0 {offsets = [21, 0], sizes = [1, 128], strides = [1, 1]} : vector<32x128xf32> to vector<1x128xf32>
    %423 = vector.broadcast %422 : vector<1x128xf32> to vector<32x128xf32>
    %424 = arith.subf %0, %423 : vector<32x128xf32>
    %cst_127 = arith.constant 1.000000e+00 : f32
    %425 = vector.broadcast %cst_127 : f32 to vector<32x128xf32>
    %426 = arith.addf %424, %425 : vector<32x128xf32>
    %cst_128 = arith.constant 5.000000e-01 : f32
    %427 = vector.broadcast %cst_128 : f32 to vector<32x128xf32>
    %428 = arith.mulf %426, %427 : vector<32x128xf32>
    %429 = math.floor %428 : vector<32x128xf32>
    %430 = arith.subf %428, %429 : vector<32x128xf32>
    %cst_129 = arith.constant 5.000000e-01 : f32
    %431 = vector.broadcast %cst_129 : f32 to vector<32x128xf32>
    %432 = arith.subf %430, %431 : vector<32x128xf32>
    %cst_130 = arith.constant 1.000000e+03 : f32
    %433 = vector.broadcast %cst_130 : f32 to vector<32x128xf32>
    %434 = arith.mulf %432, %433 : vector<32x128xf32>
    %435 = math.tanh %434 : vector<32x128xf32>
    %436 = arith.addf %421, %429 : vector<32x128xf32>
    %cst_131 = arith.constant 1.000000e+00 : f32
    %437 = vector.broadcast %cst_131 : f32 to vector<32x128xf32>
    %438 = arith.addf %435, %437 : vector<32x128xf32>
    %cst_132 = arith.constant 5.000000e-01 : f32
    %439 = vector.broadcast %cst_132 : f32 to vector<32x128xf32>
    %440 = arith.mulf %438, %439 : vector<32x128xf32>
    %441 = arith.addf %436, %440 : vector<32x128xf32>
    %442 = vector.extract_strided_slice %0 {offsets = [22, 0], sizes = [1, 128], strides = [1, 1]} : vector<32x128xf32> to vector<1x128xf32>
    %443 = vector.broadcast %442 : vector<1x128xf32> to vector<32x128xf32>
    %444 = arith.subf %0, %443 : vector<32x128xf32>
    %cst_133 = arith.constant 1.000000e+00 : f32
    %445 = vector.broadcast %cst_133 : f32 to vector<32x128xf32>
    %446 = arith.addf %444, %445 : vector<32x128xf32>
    %cst_134 = arith.constant 5.000000e-01 : f32
    %447 = vector.broadcast %cst_134 : f32 to vector<32x128xf32>
    %448 = arith.mulf %446, %447 : vector<32x128xf32>
    %449 = math.floor %448 : vector<32x128xf32>
    %450 = arith.subf %448, %449 : vector<32x128xf32>
    %cst_135 = arith.constant 5.000000e-01 : f32
    %451 = vector.broadcast %cst_135 : f32 to vector<32x128xf32>
    %452 = arith.subf %450, %451 : vector<32x128xf32>
    %cst_136 = arith.constant 1.000000e+03 : f32
    %453 = vector.broadcast %cst_136 : f32 to vector<32x128xf32>
    %454 = arith.mulf %452, %453 : vector<32x128xf32>
    %455 = math.tanh %454 : vector<32x128xf32>
    %456 = arith.addf %441, %449 : vector<32x128xf32>
    %cst_137 = arith.constant 1.000000e+00 : f32
    %457 = vector.broadcast %cst_137 : f32 to vector<32x128xf32>
    %458 = arith.addf %455, %457 : vector<32x128xf32>
    %cst_138 = arith.constant 5.000000e-01 : f32
    %459 = vector.broadcast %cst_138 : f32 to vector<32x128xf32>
    %460 = arith.mulf %458, %459 : vector<32x128xf32>
    %461 = arith.addf %456, %460 : vector<32x128xf32>
    %462 = vector.extract_strided_slice %0 {offsets = [23, 0], sizes = [1, 128], strides = [1, 1]} : vector<32x128xf32> to vector<1x128xf32>
    %463 = vector.broadcast %462 : vector<1x128xf32> to vector<32x128xf32>
    %464 = arith.subf %0, %463 : vector<32x128xf32>
    %cst_139 = arith.constant 1.000000e+00 : f32
    %465 = vector.broadcast %cst_139 : f32 to vector<32x128xf32>
    %466 = arith.addf %464, %465 : vector<32x128xf32>
    %cst_140 = arith.constant 5.000000e-01 : f32
    %467 = vector.broadcast %cst_140 : f32 to vector<32x128xf32>
    %468 = arith.mulf %466, %467 : vector<32x128xf32>
    %469 = math.floor %468 : vector<32x128xf32>
    %470 = arith.subf %468, %469 : vector<32x128xf32>
    %cst_141 = arith.constant 5.000000e-01 : f32
    %471 = vector.broadcast %cst_141 : f32 to vector<32x128xf32>
    %472 = arith.subf %470, %471 : vector<32x128xf32>
    %cst_142 = arith.constant 1.000000e+03 : f32
    %473 = vector.broadcast %cst_142 : f32 to vector<32x128xf32>
    %474 = arith.mulf %472, %473 : vector<32x128xf32>
    %475 = math.tanh %474 : vector<32x128xf32>
    %476 = arith.addf %461, %469 : vector<32x128xf32>
    %cst_143 = arith.constant 1.000000e+00 : f32
    %477 = vector.broadcast %cst_143 : f32 to vector<32x128xf32>
    %478 = arith.addf %475, %477 : vector<32x128xf32>
    %cst_144 = arith.constant 5.000000e-01 : f32
    %479 = vector.broadcast %cst_144 : f32 to vector<32x128xf32>
    %480 = arith.mulf %478, %479 : vector<32x128xf32>
    %481 = arith.addf %476, %480 : vector<32x128xf32>
    %482 = vector.extract_strided_slice %0 {offsets = [24, 0], sizes = [1, 128], strides = [1, 1]} : vector<32x128xf32> to vector<1x128xf32>
    %483 = vector.broadcast %482 : vector<1x128xf32> to vector<32x128xf32>
    %484 = arith.subf %0, %483 : vector<32x128xf32>
    %cst_145 = arith.constant 1.000000e+00 : f32
    %485 = vector.broadcast %cst_145 : f32 to vector<32x128xf32>
    %486 = arith.addf %484, %485 : vector<32x128xf32>
    %cst_146 = arith.constant 5.000000e-01 : f32
    %487 = vector.broadcast %cst_146 : f32 to vector<32x128xf32>
    %488 = arith.mulf %486, %487 : vector<32x128xf32>
    %489 = math.floor %488 : vector<32x128xf32>
    %490 = arith.subf %488, %489 : vector<32x128xf32>
    %cst_147 = arith.constant 5.000000e-01 : f32
    %491 = vector.broadcast %cst_147 : f32 to vector<32x128xf32>
    %492 = arith.subf %490, %491 : vector<32x128xf32>
    %cst_148 = arith.constant 1.000000e+03 : f32
    %493 = vector.broadcast %cst_148 : f32 to vector<32x128xf32>
    %494 = arith.mulf %492, %493 : vector<32x128xf32>
    %495 = math.tanh %494 : vector<32x128xf32>
    %496 = arith.addf %481, %489 : vector<32x128xf32>
    %cst_149 = arith.constant 1.000000e+00 : f32
    %497 = vector.broadcast %cst_149 : f32 to vector<32x128xf32>
    %498 = arith.addf %495, %497 : vector<32x128xf32>
    %cst_150 = arith.constant 5.000000e-01 : f32
    %499 = vector.broadcast %cst_150 : f32 to vector<32x128xf32>
    %500 = arith.mulf %498, %499 : vector<32x128xf32>
    %501 = arith.addf %496, %500 : vector<32x128xf32>
    %502 = vector.extract_strided_slice %0 {offsets = [25, 0], sizes = [1, 128], strides = [1, 1]} : vector<32x128xf32> to vector<1x128xf32>
    %503 = vector.broadcast %502 : vector<1x128xf32> to vector<32x128xf32>
    %504 = arith.subf %0, %503 : vector<32x128xf32>
    %cst_151 = arith.constant 1.000000e+00 : f32
    %505 = vector.broadcast %cst_151 : f32 to vector<32x128xf32>
    %506 = arith.addf %504, %505 : vector<32x128xf32>
    %cst_152 = arith.constant 5.000000e-01 : f32
    %507 = vector.broadcast %cst_152 : f32 to vector<32x128xf32>
    %508 = arith.mulf %506, %507 : vector<32x128xf32>
    %509 = math.floor %508 : vector<32x128xf32>
    %510 = arith.subf %508, %509 : vector<32x128xf32>
    %cst_153 = arith.constant 5.000000e-01 : f32
    %511 = vector.broadcast %cst_153 : f32 to vector<32x128xf32>
    %512 = arith.subf %510, %511 : vector<32x128xf32>
    %cst_154 = arith.constant 1.000000e+03 : f32
    %513 = vector.broadcast %cst_154 : f32 to vector<32x128xf32>
    %514 = arith.mulf %512, %513 : vector<32x128xf32>
    %515 = math.tanh %514 : vector<32x128xf32>
    %516 = arith.addf %501, %509 : vector<32x128xf32>
    %cst_155 = arith.constant 1.000000e+00 : f32
    %517 = vector.broadcast %cst_155 : f32 to vector<32x128xf32>
    %518 = arith.addf %515, %517 : vector<32x128xf32>
    %cst_156 = arith.constant 5.000000e-01 : f32
    %519 = vector.broadcast %cst_156 : f32 to vector<32x128xf32>
    %520 = arith.mulf %518, %519 : vector<32x128xf32>
    %521 = arith.addf %516, %520 : vector<32x128xf32>
    %522 = vector.extract_strided_slice %0 {offsets = [26, 0], sizes = [1, 128], strides = [1, 1]} : vector<32x128xf32> to vector<1x128xf32>
    %523 = vector.broadcast %522 : vector<1x128xf32> to vector<32x128xf32>
    %524 = arith.subf %0, %523 : vector<32x128xf32>
    %cst_157 = arith.constant 1.000000e+00 : f32
    %525 = vector.broadcast %cst_157 : f32 to vector<32x128xf32>
    %526 = arith.addf %524, %525 : vector<32x128xf32>
    %cst_158 = arith.constant 5.000000e-01 : f32
    %527 = vector.broadcast %cst_158 : f32 to vector<32x128xf32>
    %528 = arith.mulf %526, %527 : vector<32x128xf32>
    %529 = math.floor %528 : vector<32x128xf32>
    %530 = arith.subf %528, %529 : vector<32x128xf32>
    %cst_159 = arith.constant 5.000000e-01 : f32
    %531 = vector.broadcast %cst_159 : f32 to vector<32x128xf32>
    %532 = arith.subf %530, %531 : vector<32x128xf32>
    %cst_160 = arith.constant 1.000000e+03 : f32
    %533 = vector.broadcast %cst_160 : f32 to vector<32x128xf32>
    %534 = arith.mulf %532, %533 : vector<32x128xf32>
    %535 = math.tanh %534 : vector<32x128xf32>
    %536 = arith.addf %521, %529 : vector<32x128xf32>
    %cst_161 = arith.constant 1.000000e+00 : f32
    %537 = vector.broadcast %cst_161 : f32 to vector<32x128xf32>
    %538 = arith.addf %535, %537 : vector<32x128xf32>
    %cst_162 = arith.constant 5.000000e-01 : f32
    %539 = vector.broadcast %cst_162 : f32 to vector<32x128xf32>
    %540 = arith.mulf %538, %539 : vector<32x128xf32>
    %541 = arith.addf %536, %540 : vector<32x128xf32>
    %542 = vector.extract_strided_slice %0 {offsets = [27, 0], sizes = [1, 128], strides = [1, 1]} : vector<32x128xf32> to vector<1x128xf32>
    %543 = vector.broadcast %542 : vector<1x128xf32> to vector<32x128xf32>
    %544 = arith.subf %0, %543 : vector<32x128xf32>
    %cst_163 = arith.constant 1.000000e+00 : f32
    %545 = vector.broadcast %cst_163 : f32 to vector<32x128xf32>
    %546 = arith.addf %544, %545 : vector<32x128xf32>
    %cst_164 = arith.constant 5.000000e-01 : f32
    %547 = vector.broadcast %cst_164 : f32 to vector<32x128xf32>
    %548 = arith.mulf %546, %547 : vector<32x128xf32>
    %549 = math.floor %548 : vector<32x128xf32>
    %550 = arith.subf %548, %549 : vector<32x128xf32>
    %cst_165 = arith.constant 5.000000e-01 : f32
    %551 = vector.broadcast %cst_165 : f32 to vector<32x128xf32>
    %552 = arith.subf %550, %551 : vector<32x128xf32>
    %cst_166 = arith.constant 1.000000e+03 : f32
    %553 = vector.broadcast %cst_166 : f32 to vector<32x128xf32>
    %554 = arith.mulf %552, %553 : vector<32x128xf32>
    %555 = math.tanh %554 : vector<32x128xf32>
    %556 = arith.addf %541, %549 : vector<32x128xf32>
    %cst_167 = arith.constant 1.000000e+00 : f32
    %557 = vector.broadcast %cst_167 : f32 to vector<32x128xf32>
    %558 = arith.addf %555, %557 : vector<32x128xf32>
    %cst_168 = arith.constant 5.000000e-01 : f32
    %559 = vector.broadcast %cst_168 : f32 to vector<32x128xf32>
    %560 = arith.mulf %558, %559 : vector<32x128xf32>
    %561 = arith.addf %556, %560 : vector<32x128xf32>
    %562 = vector.extract_strided_slice %0 {offsets = [28, 0], sizes = [1, 128], strides = [1, 1]} : vector<32x128xf32> to vector<1x128xf32>
    %563 = vector.broadcast %562 : vector<1x128xf32> to vector<32x128xf32>
    %564 = arith.subf %0, %563 : vector<32x128xf32>
    %cst_169 = arith.constant 1.000000e+00 : f32
    %565 = vector.broadcast %cst_169 : f32 to vector<32x128xf32>
    %566 = arith.addf %564, %565 : vector<32x128xf32>
    %cst_170 = arith.constant 5.000000e-01 : f32
    %567 = vector.broadcast %cst_170 : f32 to vector<32x128xf32>
    %568 = arith.mulf %566, %567 : vector<32x128xf32>
    %569 = math.floor %568 : vector<32x128xf32>
    %570 = arith.subf %568, %569 : vector<32x128xf32>
    %cst_171 = arith.constant 5.000000e-01 : f32
    %571 = vector.broadcast %cst_171 : f32 to vector<32x128xf32>
    %572 = arith.subf %570, %571 : vector<32x128xf32>
    %cst_172 = arith.constant 1.000000e+03 : f32
    %573 = vector.broadcast %cst_172 : f32 to vector<32x128xf32>
    %574 = arith.mulf %572, %573 : vector<32x128xf32>
    %575 = math.tanh %574 : vector<32x128xf32>
    %576 = arith.addf %561, %569 : vector<32x128xf32>
    %cst_173 = arith.constant 1.000000e+00 : f32
    %577 = vector.broadcast %cst_173 : f32 to vector<32x128xf32>
    %578 = arith.addf %575, %577 : vector<32x128xf32>
    %cst_174 = arith.constant 5.000000e-01 : f32
    %579 = vector.broadcast %cst_174 : f32 to vector<32x128xf32>
    %580 = arith.mulf %578, %579 : vector<32x128xf32>
    %581 = arith.addf %576, %580 : vector<32x128xf32>
    %582 = vector.extract_strided_slice %0 {offsets = [29, 0], sizes = [1, 128], strides = [1, 1]} : vector<32x128xf32> to vector<1x128xf32>
    %583 = vector.broadcast %582 : vector<1x128xf32> to vector<32x128xf32>
    %584 = arith.subf %0, %583 : vector<32x128xf32>
    %cst_175 = arith.constant 1.000000e+00 : f32
    %585 = vector.broadcast %cst_175 : f32 to vector<32x128xf32>
    %586 = arith.addf %584, %585 : vector<32x128xf32>
    %cst_176 = arith.constant 5.000000e-01 : f32
    %587 = vector.broadcast %cst_176 : f32 to vector<32x128xf32>
    %588 = arith.mulf %586, %587 : vector<32x128xf32>
    %589 = math.floor %588 : vector<32x128xf32>
    %590 = arith.subf %588, %589 : vector<32x128xf32>
    %cst_177 = arith.constant 5.000000e-01 : f32
    %591 = vector.broadcast %cst_177 : f32 to vector<32x128xf32>
    %592 = arith.subf %590, %591 : vector<32x128xf32>
    %cst_178 = arith.constant 1.000000e+03 : f32
    %593 = vector.broadcast %cst_178 : f32 to vector<32x128xf32>
    %594 = arith.mulf %592, %593 : vector<32x128xf32>
    %595 = math.tanh %594 : vector<32x128xf32>
    %596 = arith.addf %581, %589 : vector<32x128xf32>
    %cst_179 = arith.constant 1.000000e+00 : f32
    %597 = vector.broadcast %cst_179 : f32 to vector<32x128xf32>
    %598 = arith.addf %595, %597 : vector<32x128xf32>
    %cst_180 = arith.constant 5.000000e-01 : f32
    %599 = vector.broadcast %cst_180 : f32 to vector<32x128xf32>
    %600 = arith.mulf %598, %599 : vector<32x128xf32>
    %601 = arith.addf %596, %600 : vector<32x128xf32>
    %602 = vector.extract_strided_slice %0 {offsets = [30, 0], sizes = [1, 128], strides = [1, 1]} : vector<32x128xf32> to vector<1x128xf32>
    %603 = vector.broadcast %602 : vector<1x128xf32> to vector<32x128xf32>
    %604 = arith.subf %0, %603 : vector<32x128xf32>
    %cst_181 = arith.constant 1.000000e+00 : f32
    %605 = vector.broadcast %cst_181 : f32 to vector<32x128xf32>
    %606 = arith.addf %604, %605 : vector<32x128xf32>
    %cst_182 = arith.constant 5.000000e-01 : f32
    %607 = vector.broadcast %cst_182 : f32 to vector<32x128xf32>
    %608 = arith.mulf %606, %607 : vector<32x128xf32>
    %609 = math.floor %608 : vector<32x128xf32>
    %610 = arith.subf %608, %609 : vector<32x128xf32>
    %cst_183 = arith.constant 5.000000e-01 : f32
    %611 = vector.broadcast %cst_183 : f32 to vector<32x128xf32>
    %612 = arith.subf %610, %611 : vector<32x128xf32>
    %cst_184 = arith.constant 1.000000e+03 : f32
    %613 = vector.broadcast %cst_184 : f32 to vector<32x128xf32>
    %614 = arith.mulf %612, %613 : vector<32x128xf32>
    %615 = math.tanh %614 : vector<32x128xf32>
    %616 = arith.addf %601, %609 : vector<32x128xf32>
    %cst_185 = arith.constant 1.000000e+00 : f32
    %617 = vector.broadcast %cst_185 : f32 to vector<32x128xf32>
    %618 = arith.addf %615, %617 : vector<32x128xf32>
    %cst_186 = arith.constant 5.000000e-01 : f32
    %619 = vector.broadcast %cst_186 : f32 to vector<32x128xf32>
    %620 = arith.mulf %618, %619 : vector<32x128xf32>
    %621 = arith.addf %616, %620 : vector<32x128xf32>
    %622 = vector.extract_strided_slice %0 {offsets = [31, 0], sizes = [1, 128], strides = [1, 1]} : vector<32x128xf32> to vector<1x128xf32>
    %623 = vector.broadcast %622 : vector<1x128xf32> to vector<32x128xf32>
    %624 = arith.subf %0, %623 : vector<32x128xf32>
    %cst_187 = arith.constant 1.000000e+00 : f32
    %625 = vector.broadcast %cst_187 : f32 to vector<32x128xf32>
    %626 = arith.addf %624, %625 : vector<32x128xf32>
    %cst_188 = arith.constant 5.000000e-01 : f32
    %627 = vector.broadcast %cst_188 : f32 to vector<32x128xf32>
    %628 = arith.mulf %626, %627 : vector<32x128xf32>
    %629 = math.floor %628 : vector<32x128xf32>
    %630 = arith.subf %628, %629 : vector<32x128xf32>
    %cst_189 = arith.constant 5.000000e-01 : f32
    %631 = vector.broadcast %cst_189 : f32 to vector<32x128xf32>
    %632 = arith.subf %630, %631 : vector<32x128xf32>
    %cst_190 = arith.constant 1.000000e+03 : f32
    %633 = vector.broadcast %cst_190 : f32 to vector<32x128xf32>
    %634 = arith.mulf %632, %633 : vector<32x128xf32>
    %635 = math.tanh %634 : vector<32x128xf32>
    %636 = arith.addf %621, %629 : vector<32x128xf32>
    %cst_191 = arith.constant 1.000000e+00 : f32
    %637 = vector.broadcast %cst_191 : f32 to vector<32x128xf32>
    %638 = arith.addf %635, %637 : vector<32x128xf32>
    %cst_192 = arith.constant 5.000000e-01 : f32
    %639 = vector.broadcast %cst_192 : f32 to vector<32x128xf32>
    %640 = arith.mulf %638, %639 : vector<32x128xf32>
    %641 = arith.addf %636, %640 : vector<32x128xf32>
    %cst_193 = arith.constant 5.000000e-01 : f32
    %642 = vector.broadcast %cst_193 : f32 to vector<32x128xf32>
    %643 = arith.subf %641, %642 : vector<32x128xf32>
    %c0_194 = arith.constant 0 : index
    %c0_195 = arith.constant 0 : index
    %644 = vector.load %arg2[%c0_194, %c0_195] : memref<32x128xf32, #tpu.memory_space<vmem>>, vector<32x128xf32>
    tpu.vector_store %arg2[%c0_194, %c0_195], %643 {strides = array<i32>} : memref<32x128xf32, #tpu.memory_space<vmem>>, vector<32x128xf32>,
    return
  }
  func.func @transform_0(%arg0: i32) -> (i32, i32) {
    %c0_i32 = arith.constant 0 : i32
    %c0_i32_0 = arith.constant 0 : i32
    return %c0_i32, %arg0 : i32, i32
  }
  func.func @transform_1(%arg0: i32) -> (i32, i32) {
    %c0_i32 = arith.constant 0 : i32
    %c0_i32_0 = arith.constant 0 : i32
    return %c0_i32, %arg0 : i32, i32
  }
}

</mosaic_0001>

<bundles_post_ra>
// kernel: tpu_custom_call.1
= control target key start
LH: loop header
LB: loop body
LE: loop exit
PB: predicated region body
PF: predicated region fallthrough
CT: control target
= control target key end

     0   :  { %6 = vsyncpa [#allocation3], 0  ;;  %s3515_s0 = inlined_call_operand.hbm [shape: f32[32,128], index: 0, kind: input, shape index: {}]   ;;  %s3516_s1 = inlined_call_operand.hbm [shape: f32[32,128], index: 1, kind: output, shape index: {}]  }
   0x1   :  { %7 = vsyncpa [#allocation4], 0  ;;  %s2164_s6 = smov [#allocation2]  }
   0x2   :  { %s13_s7 = sshll.u32 %s2164_s6, 4  ;;  %s14_s7 = int_to_ptr.vmem [resolvable:$true] %s13_s7 }
   0x3   :  { %s2128_s8 = scalar_lea.vmem %s14_s7, 512  ;;  %p2133_p1 = scmp.lt.s32.totalorder %s14_s7, %s14_s7 }
   0x4   :  { %p2129_p0 = scmp.ne.s32.totalorder %s14_s7, %s2128_s8  ;;  %p2134_p2 = scmp.lt.s32.totalorder %s2128_s8, %s2128_s8 }
   0x6   :  { %p2135_p3 = por %p2134_p2, %p2133_p1 }
   0x8   :  { %p2136_p4 = pnand %p2135_p3, %p2129_p0 }
   0xa   :  { %2139 = shalt.err (!%p2136_p4)
}
   0xb   :  { %s2165_s9 = smov 128   ;;  %s2166_s10 = smov 8  }
   0xc   :  { %19 = dma.hbm_to_vmem [thread:$0]  %s3515_s0, 512, %s14_s7, [#allocation3], %s2165_s9, %s2165_s9, %s2166_s10  }
   0xd   :  { %2160 = dma.done.wait [#allocation3], 512  }
   0xe   :  { %2161 = vsyncadd [#allocation3], 4294966784  ;;  %v27_v0 = vlaneseq  ;;  %v2198_v6 = vld [vmem:[#allocation2] sm:$0xff]  ;;  %v2200_v7 = vld [vmem:[#allocation2 + $0x8] sm:$0xff]  ;;  %s2167_s0 = smov [#allocation5]  }
   0xf   :  { %v2202_v8 = vld [vmem:[#allocation2 + $0x10] sm:$0xff]  ;;  %v2204_v9 = vld [vmem:[#allocation2 + $0x18] sm:$0xff]  ;;  %s1704_s13 = sshll.u32 %s2167_s0, 4  ;;  %s1705_s13 = int_to_ptr.vmem [resolvable:$true] %s1704_s13 }
  0x10   :  { %v2184_v1 = vshrl.u32 %v27_v0, 7  ;;  %s2140_s14 = scalar_lea.vmem %s1705_s13, 512  ;;  %p2145_p6 = scmp.lt.s32.totalorder %s1705_s13, %s1705_s13 }
  0x11   :  { %p2141_p5 = scmp.ne.s32.totalorder %s1705_s13, %s2140_s14  ;;  %p2146_p7 = scmp.lt.s32.totalorder %s2140_s14, %s2140_s14 }
  0x12   :  { %v2187_v2 = vsub.s32 0, %v2184_v1  ;;  %v2190_v3 = vsub.s32 1, %v2184_v1  ;;  %v2193_v4 = vsub.s32 2, %v2184_v1  ;;  %v2196_v5 = vsub.s32 3, %v2184_v1 }
  0x13   :  { %v2219_v14 = vsub.s32 4, %v2184_v1  ;;  %v2222_v15 = vsub.s32 5, %v2184_v1  ;;  %p2147_p8 = por %p2146_p7, %p2145_p6 }
  0x14   :  { %v30_v10 = vrot.slane %v2198_v6, %v2187_v2  ;;  %v82_v11 = vrot.slane %v2198_v6, %v2190_v3  ;;  %v2212_v12 = vrot.slane %v2198_v6, %v2193_v4  ;;  %v2216_v13 = vrot.slane %v2198_v6, %v2196_v5 }
  0x15   :  { %p2148_p9 = pnand %p2147_p8, %p2141_p5 }
  0x16   :  { %v31_v16 = vsub.f32 %v2198_v6, %v30_v10  ;;  %v32_v17 = vsub.f32 %v2200_v7, %v30_v10  ;;  %v33_v18 = vsub.f32 %v2202_v8, %v30_v10  ;;  %v34_v19 = vsub.f32 %v2204_v9, %v30_v10 }
  0x17   :  { %v83_v20 = vsub.f32 %v2198_v6, %v82_v11  ;;  %v84_v21 = vsub.f32 %v2200_v7, %v82_v11  ;;  %v85_v22 = vsub.f32 %v2202_v8, %v82_v11  ;;  %v86_v23 = vsub.f32 %v2204_v9, %v82_v11 }
  0x18   :  { %v35_v24 = vadd.f32 1.0, %v31_v16  ;;  %v36_v25 = vadd.f32 1.0, %v32_v17  ;;  %v37_v26 = vadd.f32 1.0, %v33_v18  ;;  %v38_v27 = vadd.f32 1.0, %v34_v19 }
  0x19   :  { %v87_v28 = vadd.f32 1.0, %v83_v20  ;;  %v88_v29 = vadd.f32 1.0, %v84_v21  ;;  %v89_v30 = vadd.f32 1.0, %v85_v22  ;;  %v90_v31 = vadd.f32 1.0, %v86_v23 }
  0x1a   :  { %v2232_v32 = vmul.f32 0.5, %v35_v24  ;;  %v2234_v33 = vmul.f32 0.5, %v36_v25  ;;  %v2236_v34 = vmul.f32 0.5, %v37_v26  ;;  %v2238_v35 = vmul.f32 0.5, %v38_v27 }
  0x1b   :  { %v2240_v36 = vmul.f32 0.5, %v87_v28  ;;  %v2242_v37 = vmul.f32 0.5, %v88_v29  ;;  %v2244_v38 = vmul.f32 0.5, %v89_v30  ;;  %v2246_v39 = vmul.f32 0.5, %v90_v31 }
  0x1c   :  { %v43_v40 = vfloor.f32 %v2232_v32  ;;  %v44_v41 = vfloor.f32 %v2234_v33  ;;  %v45_v42 = vfloor.f32 %v2236_v34  ;;  %v46_v43 = vfloor.f32 %v2238_v35 }
  0x1d   :  { %v95_v44 = vfloor.f32 %v2240_v36  ;;  %v96_v45 = vfloor.f32 %v2242_v37  ;;  %v97_v46 = vfloor.f32 %v2244_v38  ;;  %v98_v47 = vfloor.f32 %v2246_v39 }
  0x1e   :  { %v47_v48 = vsub.f32 %v2232_v32, %v43_v40  ;;  %v48_v49 = vsub.f32 %v2234_v33, %v44_v41  ;;  %v49_v50 = vsub.f32 %v2236_v34, %v45_v42  ;;  %v50_v51 = vsub.f32 %v2238_v35, %v46_v43 }
  0x1f   :  { %v99_v52 = vsub.f32 %v2240_v36, %v95_v44  ;;  %v100_v53 = vsub.f32 %v2242_v37, %v96_v45  ;;  %v101_v54 = vsub.f32 %v2244_v38, %v97_v46  ;;  %v102_v55 = vsub.f32 %v2246_v39, %v98_v47 }
  0x20   :  { %v1716_v56 = vadd.f32 -0.5, %v47_v48  ;;  %v1717_v57 = vadd.f32 -0.5, %v48_v49  ;;  %v1718_v58 = vadd.f32 -0.5, %v49_v50  ;;  %v1719_v59 = vadd.f32 -0.5, %v50_v51 }
  0x21   :  { %v1720_v60 = vadd.f32 -0.5, %v99_v52  ;;  %v1721_v61 = vadd.f32 -0.5, %v100_v53  ;;  %v1722_v62 = vadd.f32 -0.5, %v101_v54  ;;  %v1723_v63 = vadd.f32 -0.5, %v102_v55 }
  0x22   :  { %v55_v0 = vmul.f32 1000.0, %v1716_v56  ;;  %v56_v10 = vmul.f32 1000.0, %v1717_v57  ;;  %v57_v11 = vmul.f32 1000.0, %v1718_v58  ;;  %v58_v16 = vmul.f32 1000.0, %v1719_v59 }
  0x23   :  { %v107_v17 = vmul.f32 1000.0, %v1720_v60  ;;  %v108_v18 = vmul.f32 1000.0, %v1721_v61  ;;  %v109_v19 = vmul.f32 1000.0, %v1722_v62  ;;  %v110_v20 = vmul.f32 1000.0, %v1723_v63 }
  0x24   :  { %1852 = vtanh.f32 %v55_v0  ;;  %v135_v21 = vsub.f32 %v2198_v6, %v2212_v12  ;;  %v136_v22 = vsub.f32 %v2200_v7, %v2212_v12  ;;  %v137_v23 = vsub.f32 %v2202_v8, %v2212_v12 }
  0x25   :  { %1854 = vtanh.f32 %v56_v10  ;;  %v138_v24 = vsub.f32 %v2204_v9, %v2212_v12  ;;  %v187_v25 = vsub.f32 %v2198_v6, %v2216_v13  ;;  %v188_v26 = vsub.f32 %v2200_v7, %v2216_v13 }
  0x26   :  { %1856 = vtanh.f32 %v57_v11  ;;  %v139_v27 = vadd.f32 1.0, %v135_v21  ;;  %v140_v28 = vadd.f32 1.0, %v136_v22  ;;  %v141_v29 = vadd.f32 1.0, %v137_v23 }
  0x27   :  { %1858 = vtanh.f32 %v58_v16  ;;  %v142_v30 = vadd.f32 1.0, %v138_v24  ;;  %v189_v31 = vsub.f32 %v2202_v8, %v2216_v13  ;;  %v190_v48 = vsub.f32 %v2204_v9, %v2216_v13 }
  0x28   :  { %1860 = vtanh.f32 %v107_v17  ;;  %v2296_v12 = vmul.f32 0.5, %v139_v27  ;;  %v2298_v49 = vmul.f32 0.5, %v140_v28  ;;  %v2300_v50 = vmul.f32 0.5, %v141_v29 }
  0x29   :  { %1862 = vtanh.f32 %v108_v18  ;;  %v2302_v51 = vmul.f32 0.5, %v142_v30  ;;  %v191_v52 = vadd.f32 1.0, %v187_v25  ;;  %v192_v53 = vadd.f32 1.0, %v188_v26 }
  0x2a   :  { %1864 = vtanh.f32 %v109_v19  ;;  %v147_v54 = vfloor.f32 %v2296_v12  ;;  %v148_v55 = vfloor.f32 %v2298_v49  ;;  %v149_v56 = vfloor.f32 %v2300_v50 }
  0x2b   :  { %1866 = vtanh.f32 %v110_v20  ;;  %v3521_v13 = vfloor.f32 %v2302_v51  ;;  %v193_v57 = vadd.f32 1.0, %v189_v31  ;;  %v194_v58 = vadd.f32 1.0, %v190_v48 }
  0x2c   :  { %v151_v59 = vsub.f32 %v2296_v12, %v147_v54  ;;  %v152_v60 = vsub.f32 %v2298_v49, %v148_v55  ;;  %v153_v61 = vsub.f32 %v2300_v50, %v149_v56  ;;  %v2317_v62 = vmul.f32 0.5, %v191_v52 }
  0x2d   :  { %v154_v63 = vsub.f32 %v2302_v51, %v3521_v13  ;;  %v2322_v0 = vmul.f32 0.5, %v192_v53  ;;  %v2324_v10 = vmul.f32 0.5, %v193_v57  ;;  %v2326_v11 = vmul.f32 0.5, %v194_v58 }
  0x2e   :  { %v1724_v16 = vadd.f32 -0.5, %v151_v59  ;;  %v1725_v17 = vadd.f32 -0.5, %v152_v60  ;;  %v1726_v18 = vadd.f32 -0.5, %v153_v61  ;;  %v3520_v19 = vfloor.f32 %v2317_v62 }
  0x2f   :  { %v1727_v20 = vadd.f32 -0.5, %v154_v63  ;;  %v3519_v21 = vfloor.f32 %v2322_v0  ;;  %v3517_v22 = vfloor.f32 %v2324_v10  ;;  %v3518_v23 = vfloor.f32 %v2326_v11 }
  0x30   :  { %v159_v24 = vmul.f32 1000.0, %v1724_v16  ;;  %v160_v25 = vmul.f32 1000.0, %v1725_v17  ;;  %v161_v26 = vmul.f32 1000.0, %v1726_v18  ;;  %v203_v27 = vsub.f32 %v2317_v62, %v3520_v19 }
  0x31   :  { %v1853_v28 = vpop.eup %1852  ;;  %v162_v29 = vmul.f32 1000.0, %v1727_v20  ;;  %v204_v30 = vsub.f32 %v2322_v0, %v3519_v21  ;;  %v205_v31 = vsub.f32 %v2324_v10, %v3517_v22  ;;  %v206_v48 = vsub.f32 %v2326_v11, %v3518_v23 }
  0x32   :  { %v1855_v52 = vpop.eup %1854  ;;  %v67_v53 = vadd.f32 1.0, %v1853_v28  ;;  %1868 = vtanh.f32 %v159_v24  ;;  %v1728_v57 = vadd.f32 -0.5, %v203_v27  ;;  %v2346_v58 = vrot.slane %v2198_v6, %v2219_v14 }
  0x33   :  { %v1857_v59 = vpop.eup %1856  ;;  %v68_v60 = vadd.f32 1.0, %v1855_v52  ;;  %1870 = vtanh.f32 %v160_v25  ;;  %v1729_v61 = vadd.f32 -0.5, %v204_v30  ;;  %v1730_v63 = vadd.f32 -0.5, %v205_v31 }
  0x34   :  { %v1859_v16 = vpop.eup %1858  ;;  %v69_v17 = vadd.f32 1.0, %v1857_v59  ;;  %v71_v18 = vmul.f32 0.5, %v67_v53  ;;  %1872 = vtanh.f32 %v161_v26  ;;  %v1731_v20 = vadd.f32 -0.5, %v206_v48 }
  0x35   :  { %v1861_v22 = vpop.eup %1860  ;;  %v70_v23 = vadd.f32 1.0, %v1859_v16  ;;  %v72_v21 = vmul.f32 0.5, %v68_v60  ;;  %1874 = vtanh.f32 %v162_v29  ;;  %v211_v24 = vmul.f32 1000.0, %v1728_v57 }
  0x36   :  { %v1863_v27 = vpop.eup %1862  ;;  %v73_v28 = vmul.f32 0.5, %v69_v17  ;;  %v75_v19 = vadd.f32 %v71_v18, %v43_v40  ;;  %v119_v13 = vadd.f32 1.0, %v1861_v22  ;;  %v212_v52 = vmul.f32 1000.0, %v1729_v61 }
  0x37   :  { %v1865_v25 = vpop.eup %1864  ;;  %v74_v30 = vmul.f32 0.5, %v70_v23  ;;  %v76_v31 = vadd.f32 %v72_v21, %v44_v41  ;;  %v120_v53 = vadd.f32 1.0, %v1863_v27  ;;  %v213_v26 = vmul.f32 1000.0, %v1730_v63 }
  0x38   :  { %v1867_v48 = vpop.eup %1866  ;;  %v77_v59 = vadd.f32 %v73_v28, %v45_v42  ;;  %v115_v29 = vadd.f32 %v95_v44, %v75_v19  ;;  %v121_v57 = vadd.f32 1.0, %v1865_v25  ;;  %v123_v60 = vmul.f32 0.5, %v119_v13 }
  0x39   :  { %v78_v32 = vadd.f32 %v74_v30, %v46_v43  ;;  %v116_v40 = vadd.f32 %v96_v45, %v76_v31  ;;  %v122_v22 = vadd.f32 1.0, %v1867_v48  ;;  %v124_v33 = vmul.f32 0.5, %v120_v53 }
  0x3a   :  { %v117_v41 = vadd.f32 %v97_v46, %v77_v59  ;;  %v125_v21 = vmul.f32 0.5, %v121_v57  ;;  %v214_v23 = vmul.f32 1000.0, %v1731_v20  ;;  %v239_v34 = vsub.f32 %v2198_v6, %v2346_v58 }
  0x3b   :  { %v127_v36 = vadd.f32 %v123_v60, %v115_v29  ;;  %1876 = vtanh.f32 %v211_v24  ;;  %v2365_v42 = vsub.s32 6, %v2184_v1  ;;  %v2368_v35 = vsub.s32 7, %v2184_v1 }
  0x3c   :  { %v118_v37 = vadd.f32 %v98_v47, %v78_v32  ;;  %v126_v43 = vmul.f32 0.5, %v122_v22  ;;  %1878 = vtanh.f32 %v212_v52  ;;  %v240_v38 = vsub.f32 %v2200_v7, %v2346_v58 }
  0x3d   :  { %v128_v44 = vadd.f32 %v124_v33, %v116_v40  ;;  %1880 = vtanh.f32 %v213_v26  ;;  %v241_v45 = vsub.f32 %v2202_v8, %v2346_v58  ;;  %v2378_v46 = vrot.slane %v2198_v6, %v2222_v15 }
  0x3e   :  { %v129_v13 = vadd.f32 %v125_v21, %v117_v41  ;;  %1882 = vtanh.f32 %v214_v23  ;;  %v242_v1 = vsub.f32 %v2204_v9, %v2346_v58  ;;  %v243_v39 = vadd.f32 1.0, %v239_v34 }
  0x3f   :  { %v1869_v47 = vpop.eup %1868  ;;  %v167_v19 = vadd.f32 %v147_v54, %v127_v36  ;;  %v244_v61 = vadd.f32 1.0, %v240_v38  ;;  %v245_v63 = vadd.f32 1.0, %v241_v45  ;;  %v2386_v16 = vrot.slane %v2198_v6, %v2365_v42 }
  0x40   :  { %v1871_v17 = vpop.eup %1870  ;;  %v130_v18 = vadd.f32 %v126_v43, %v118_v37  ;;  %v171_v20 = vadd.f32 1.0, %v1869_v47  ;;  %v246_v24 = vadd.f32 1.0, %v242_v1  ;;  %v2388_v27 = vmul.f32 0.5, %v243_v39 }
  0x41   :  { %v1873_v28 = vpop.eup %1872  ;;  %v168_v58 = vadd.f32 %v148_v55, %v128_v44  ;;  %v172_v52 = vadd.f32 1.0, %v1871_v17  ;;  %v2392_v25 = vmul.f32 0.5, %v244_v61  ;;  %v2394_v12 = vmul.f32 0.5, %v245_v63 }
  0x42   :  { %v1875_v54 = vpop.eup %1874  ;;  %v169_v30 = vadd.f32 %v149_v56, %v129_v13  ;;  %v173_v31 = vadd.f32 1.0, %v1873_v28  ;;  %v2398_v53 = vmul.f32 0.5, %v246_v24  ;;  %v251_v26 = vfloor.f32 %v2388_v27 }
  0x43   :  { %v174_v48 = vadd.f32 1.0, %v1875_v54  ;;  %v175_v59 = vmul.f32 0.5, %v171_v20  ;;  %v252_v29 = vfloor.f32 %v2392_v25  ;;  %v253_v49 = vfloor.f32 %v2394_v12 }
  0x44   :  { %v176_v55 = vmul.f32 0.5, %v172_v52  ;;  %v177_v57 = vmul.f32 0.5, %v173_v31  ;;  %v254_v60 = vfloor.f32 %v2398_v53  ;;  %v255_v50 = vsub.f32 %v2388_v27, %v251_v26 }
  0x45   :  { %v3522_v56 = vfloor.f32 %v2302_v51  ;;  %v256_v40 = vsub.f32 %v2392_v25, %v252_v29  ;;  %v257_v22 = vsub.f32 %v2394_v12, %v253_v49  ;;  %v291_v33 = vsub.f32 %v2198_v6, %v2378_v46 }
  0x46   :  { %v258_v41 = vsub.f32 %v2398_v53, %v254_v60  ;;  %v1732_v21 = vadd.f32 -0.5, %v255_v50  ;;  %v292_v51 = vsub.f32 %v2200_v7, %v2378_v46  ;;  %v293_v23 = vsub.f32 %v2202_v8, %v2378_v46 }
  0x47   :  { %v170_v32 = vadd.f32 %v3522_v56, %v130_v18  ;;  %v178_v34 = vmul.f32 0.5, %v174_v48  ;;  %v179_v36 = vadd.f32 %v175_v59, %v167_v19  ;;  %v1733_v37 = vadd.f32 -0.5, %v256_v40 }
  0x48   :  { %v1734_v43 = vadd.f32 -0.5, %v257_v22  ;;  %v1877_v38 = vpop.eup %1876  ;;  %v180_v44 = vadd.f32 %v176_v55, %v168_v58  ;;  %v181_v45 = vadd.f32 %v177_v57, %v169_v30  ;;  %v1735_v13 = vadd.f32 -0.5, %v258_v41 }
  0x49   :  { %v263_v1 = vmul.f32 1000.0, %v1732_v21  ;;  %v1879_v39 = vpop.eup %1878  ;;  %v223_v47 = vadd.f32 1.0, %v1877_v38  ;;  %v264_v61 = vmul.f32 1000.0, %v1733_v37  ;;  %v294_v17 = vsub.f32 %v2204_v9, %v2378_v46 }
  0x4a   :  { %v265_v63 = vmul.f32 1000.0, %v1734_v43  ;;  %v1881_v18 = vpop.eup %1880  ;;  %v224_v20 = vadd.f32 1.0, %v1879_v39  ;;  %v266_v24 = vmul.f32 1000.0, %v1735_v13  ;;  %v295_v28 = vadd.f32 1.0, %v291_v33 }
  0x4b   :  { %1884 = vtanh.f32 %v263_v1  ;;  %v1883_v19 = vpop.eup %1882  ;;  %v182_v52 = vadd.f32 %v178_v34, %v170_v32  ;;  %v3523_v54 = vfloor.f32 %v2317_v62  ;;  %v296_v30 = vadd.f32 1.0, %v292_v51 }
  0x4c   :  { %1886 = vtanh.f32 %v264_v61  ;;  %v225_v31 = vadd.f32 1.0, %v1881_v18  ;;  %v227_v48 = vmul.f32 0.5, %v223_v47  ;;  %v297_v59 = vadd.f32 1.0, %v293_v23 }
  0x4d   :  { %v219_v58 = vadd.f32 %v3523_v54, %v179_v36  ;;  %1888 = vtanh.f32 %v265_v63  ;;  %v226_v55 = vadd.f32 1.0, %v1883_v19  ;;  %v298_v57 = vadd.f32 1.0, %v294_v17 }
  0x4e   :  { %1890 = vtanh.f32 %v266_v24  ;;  %v2430_v46 = vrot.slane %v2198_v6, %v2368_v35  ;;  %v3524_v50 = vfloor.f32 %v2322_v0  ;;  %v228_v32 = vmul.f32 0.5, %v224_v20 }
  0x4f   :  { %v2434_v40 = vmul.f32 0.5, %v295_v28  ;;  %v2436_v62 = vmul.f32 0.5, %v296_v30  ;;  %v3525_v22 = vfloor.f32 %v2324_v10  ;;  %v3526_v41 = vfloor.f32 %v2326_v11 }
  0x50   :  { %v220_v56 = vadd.f32 %v3524_v50, %v180_v44  ;;  %v2442_v51 = vmul.f32 0.5, %v297_v59  ;;  %v2444_v23 = vmul.f32 0.5, %v298_v57  ;;  %v229_v34 = vmul.f32 0.5, %v225_v31 }
  0x51   :  { %v221_v33 = vadd.f32 %v3525_v22, %v181_v45  ;;  %v222_v21 = vadd.f32 %v3526_v41, %v182_v52  ;;  %v231_v36 = vadd.f32 %v227_v48, %v219_v58  ;;  %v303_v0 = vfloor.f32 %v2434_v40 }
  0x52   :  { %v304_v37 = vfloor.f32 %v2436_v62  ;;  %v230_v43 = vmul.f32 0.5, %v226_v55  ;;  %v305_v38 = vfloor.f32 %v2442_v51  ;;  %v306_v44 = vfloor.f32 %v2444_v23 }
  0x53   :  { %v343_v10 = vsub.f32 %v2198_v6, %v2386_v16  ;;  %v232_v11 = vadd.f32 %v228_v32, %v220_v56  ;;  %v307_v45 = vsub.f32 %v2434_v40, %v303_v0  ;;  %v344_v1 = vsub.f32 %v2200_v7, %v2386_v16 }
  0x54   :  { %v308_v13 = vsub.f32 %v2436_v62, %v304_v37  ;;  %v309_v39 = vsub.f32 %v2442_v51, %v305_v38  ;;  %v310_v47 = vsub.f32 %v2444_v23, %v306_v44  ;;  %v345_v61 = vsub.f32 %v2202_v8, %v2386_v16 }
  0x55   :  { %v346_v63 = vsub.f32 %v2204_v9, %v2386_v16  ;;  %v1736_v17 = vadd.f32 -0.5, %v307_v45  ;;  %v347_v20 = vadd.f32 1.0, %v343_v10  ;;  %v348_v24 = vadd.f32 1.0, %v344_v1 }
  0x56   :  { %v1737_v18 = vadd.f32 -0.5, %v308_v13  ;;  %v1738_v28 = vadd.f32 -0.5, %v309_v39  ;;  %v1739_v19 = vadd.f32 -0.5, %v310_v47  ;;  %v349_v52 = vadd.f32 1.0, %v345_v61 }
  0x57   :  { %v350_v54 = vadd.f32 1.0, %v346_v63  ;;  %v315_v58 = vmul.f32 1000.0, %v1736_v17  ;;  %v2470_v31 = vmul.f32 0.5, %v347_v20  ;;  %v2472_v48 = vmul.f32 0.5, %v348_v24 }
  0x58   :  { %v316_v30 = vmul.f32 1000.0, %v1737_v18  ;;  %v1885_v59 = vpop.eup %1884  ;;  %v317_v55 = vmul.f32 1000.0, %v1738_v28  ;;  %v318_v57 = vmul.f32 1000.0, %v1739_v19  ;;  %v2474_v50 = vmul.f32 0.5, %v349_v52 }
  0x59   :  { %v2476_v16 = vmul.f32 0.5, %v350_v54  ;;  %v1887_v56 = vpop.eup %1886  ;;  %v275_v32 = vadd.f32 1.0, %v1885_v59  ;;  %1892 = vtanh.f32 %v315_v58  ;;  %v355_v22 = vfloor.f32 %v2470_v31 }
  0x5a   :  { %v356_v41 = vfloor.f32 %v2472_v48  ;;  %v1889_v10 = vpop.eup %1888  ;;  %v276_v45 = vadd.f32 1.0, %v1887_v56  ;;  %1894 = vtanh.f32 %v316_v30  ;;  %v357_v13 = vfloor.f32 %v2474_v50 }
  0x5b   :  { %v358_v1 = vfloor.f32 %v2476_v16  ;;  %v1891_v39 = vpop.eup %1890  ;;  %v233_v47 = vadd.f32 %v229_v34, %v221_v33  ;;  %v277_v61 = vadd.f32 1.0, %v1889_v10  ;;  %1896 = vtanh.f32 %v317_v55 }
  0x5c   :  { %v359_v63 = vsub.f32 %v2470_v31, %v355_v22  ;;  %v234_v17 = vadd.f32 %v230_v43, %v222_v21  ;;  %v278_v18 = vadd.f32 1.0, %v1891_v39  ;;  %1898 = vtanh.f32 %v318_v57 }
  0x5d   :  { %v360_v20 = vsub.f32 %v2472_v48, %v356_v41  ;;  %v271_v24 = vadd.f32 %v251_v26, %v231_v36  ;;  %v279_v28 = vmul.f32 0.5, %v275_v32  ;;  %v361_v33 = vsub.f32 %v2474_v50, %v357_v13 }
  0x5e   :  { %v362_v34 = vsub.f32 %v2476_v16, %v358_v1  ;;  %v272_v21 = vadd.f32 %v252_v29, %v232_v11  ;;  %v280_v43 = vmul.f32 0.5, %v276_v45  ;;  %v1740_v19 = vadd.f32 -0.5, %v359_v63 }
  0x5f   :  { %v1741_v52 = vadd.f32 -0.5, %v360_v20  ;;  %v273_v54 = vadd.f32 %v253_v49, %v233_v47  ;;  %v281_v27 = vmul.f32 0.5, %v277_v61  ;;  %v1742_v26 = vadd.f32 -0.5, %v361_v33 }
  0x60   :  { %v1743_v36 = vadd.f32 -0.5, %v362_v34  ;;  %v274_v58 = vadd.f32 %v254_v60, %v234_v17  ;;  %v282_v30 = vmul.f32 0.5, %v278_v18  ;;  %v367_v59 = vmul.f32 1000.0, %v1740_v19 }
  0x61   :  { %v368_v55 = vmul.f32 1000.0, %v1741_v52  ;;  %v283_v57 = vadd.f32 %v279_v28, %v271_v24  ;;  %v369_v56 = vmul.f32 1000.0, %v1742_v26  ;;  %v395_v25 = vsub.f32 %v2198_v6, %v2430_v46 }
  0x62   :  { %v370_v32 = vmul.f32 1000.0, %v1743_v36  ;;  %v284_v29 = vadd.f32 %v280_v43, %v272_v21  ;;  %1900 = vtanh.f32 %v367_v59  ;;  %v396_v12 = vsub.f32 %v2200_v7, %v2430_v46 }
  0x63   :  { %v397_v49 = vsub.f32 %v2202_v8, %v2430_v46  ;;  %v285_v11 = vadd.f32 %v281_v27, %v273_v54  ;;  %1902 = vtanh.f32 %v368_v55  ;;  %v398_v53 = vsub.f32 %v2204_v9, %v2430_v46 }
  0x64   :  { %v399_v60 = vadd.f32 1.0, %v395_v25  ;;  %v286_v10 = vadd.f32 %v282_v30, %v274_v58  ;;  %1904 = vtanh.f32 %v369_v56  ;;  %v400_v45 = vadd.f32 1.0, %v396_v12 }
  0x65   :  { %v401_v39 = vadd.f32 1.0, %v397_v49  ;;  %1906 = vtanh.f32 %v370_v32  ;;  %v402_v47 = vadd.f32 1.0, %v398_v53  ;;  %v446_v63 = vrot.slane %v2200_v7, %v2187_v2 }
  0x66   :  { %v2510_v61 = vmul.f32 0.5, %v399_v60  ;;  %v1893_v17 = vpop.eup %1892  ;;  %v323_v18 = vadd.f32 %v303_v0, %v283_v57  ;;  %v324_v20 = vadd.f32 %v304_v37, %v284_v29  ;;  %v2518_v46 = vmul.f32 0.5, %v400_v45 }
  0x67   :  { %v2520_v24 = vmul.f32 0.5, %v401_v39  ;;  %v1895_v28 = vpop.eup %1894  ;;  %v325_v33 = vadd.f32 %v305_v38, %v285_v11  ;;  %v327_v34 = vadd.f32 1.0, %v1893_v17  ;;  %v2524_v21 = vmul.f32 0.5, %v402_v47 }
  0x68   :  { %v407_v43 = vfloor.f32 %v2510_v61  ;;  %v1897_v19 = vpop.eup %1896  ;;  %v326_v40 = vadd.f32 %v306_v44, %v286_v10  ;;  %v328_v0 = vadd.f32 1.0, %v1895_v28  ;;  %v408_v62 = vfloor.f32 %v2518_v46 }
  0x69   :  { %v409_v37 = vfloor.f32 %v2520_v24  ;;  %v1899_v52 = vpop.eup %1898  ;;  %v329_v54 = vadd.f32 1.0, %v1897_v19  ;;  %v410_v27 = vfloor.f32 %v2524_v21  ;;  %v447_v38 = vsub.f32 %v2198_v6, %v446_v63 }
  0x6a   :  { %v411_v51 = vsub.f32 %v2510_v61, %v407_v43  ;;  %v330_v26 = vadd.f32 1.0, %v1899_v52  ;;  %v331_v36 = vmul.f32 0.5, %v327_v34  ;;  %v412_v23 = vsub.f32 %v2518_v46, %v408_v62 }
  0x6b   :  { %v413_v44 = vsub.f32 %v2520_v24, %v409_v37  ;;  %v332_v58 = vmul.f32 0.5, %v328_v0  ;;  %v414_v30 = vsub.f32 %v2524_v21, %v410_v27  ;;  %v448_v55 = vsub.f32 %v2200_v7, %v446_v63 }
  0x6c   :  { %v1744_v59 = vadd.f32 -0.5, %v411_v51  ;;  %v333_v57 = vmul.f32 0.5, %v329_v54  ;;  %v1745_v56 = vadd.f32 -0.5, %v412_v23  ;;  %v449_v25 = vsub.f32 %v2202_v8, %v446_v63 }
  0x6d   :  { %v1746_v32 = vadd.f32 -0.5, %v413_v44  ;;  %v1747_v29 = vadd.f32 -0.5, %v414_v30  ;;  %v450_v49 = vsub.f32 %v2204_v9, %v446_v63  ;;  %v451_v11 = vadd.f32 1.0, %v447_v38 }
  0x6e   :  { %v419_v12 = vmul.f32 1000.0, %v1744_v59  ;;  %v334_v53 = vmul.f32 0.5, %v330_v26  ;;  %v335_v60 = vadd.f32 %v331_v36, %v323_v18  ;;  %v420_v10 = vmul.f32 1000.0, %v1745_v56 }
  0x6f   :  { %v421_v45 = vmul.f32 1000.0, %v1746_v32  ;;  %v1901_v39 = vpop.eup %1900  ;;  %v336_v47 = vadd.f32 %v332_v58, %v324_v20  ;;  %v422_v17 = vmul.f32 1000.0, %v1747_v29  ;;  %v452_v28 = vadd.f32 1.0, %v448_v55 }
  0x70   :  { %1908 = vtanh.f32 %v419_v12  ;;  %v1903_v34 = vpop.eup %1902  ;;  %v337_v19 = vadd.f32 %v333_v57, %v325_v33  ;;  %v379_v0 = vadd.f32 1.0, %v1901_v39  ;;  %v453_v52 = vadd.f32 1.0, %v449_v25 }
  0x71   :  { %1910 = vtanh.f32 %v420_v10  ;;  %v1905_v54 = vpop.eup %1904  ;;  %v380_v51 = vadd.f32 1.0, %v1903_v34  ;;  %v454_v23 = vadd.f32 1.0, %v450_v49  ;;  %v2548_v63 = vmul.f32 0.5, %v451_v11 }
  0x72   :  { %1912 = vtanh.f32 %v421_v45  ;;  %v1907_v38 = vpop.eup %1906  ;;  %v338_v18 = vadd.f32 %v334_v53, %v326_v40  ;;  %v375_v26 = vadd.f32 %v355_v22, %v335_v60  ;;  %v2552_v20 = vmul.f32 0.5, %v452_v28 }
  0x73   :  { %1914 = vtanh.f32 %v422_v17  ;;  %v381_v36 = vadd.f32 1.0, %v1905_v54  ;;  %v383_v44 = vmul.f32 0.5, %v379_v0  ;;  %v2554_v33 = vmul.f32 0.5, %v453_v52 }
  0x74   :  { %v2556_v58 = vmul.f32 0.5, %v454_v23  ;;  %v382_v30 = vadd.f32 1.0, %v1907_v38  ;;  %v459_v59 = vfloor.f32 %v2548_v63  ;;  %v460_v55 = vfloor.f32 %v2552_v20 }
  0x75   :  { %v498_v40 = vrot.slane %v2200_v7, %v2190_v3  ;;  %v376_v31 = vadd.f32 %v356_v41, %v336_v47  ;;  %v384_v22 = vmul.f32 0.5, %v380_v51  ;;  %v461_v57 = vfloor.f32 %v2554_v33 }
  0x76   :  { %v462_v56 = vfloor.f32 %v2556_v58  ;;  %v377_v32 = vadd.f32 %v357_v13, %v337_v19  ;;  %v378_v25 = vadd.f32 %v358_v1, %v338_v18  ;;  %v463_v29 = vsub.f32 %v2548_v63, %v459_v59 }
  0x77   :  { %v464_v48 = vsub.f32 %v2552_v20, %v460_v55  ;;  %v385_v41 = vmul.f32 0.5, %v381_v36  ;;  %v387_v12 = vadd.f32 %v383_v44, %v375_v26  ;;  %v465_v49 = vsub.f32 %v2554_v33, %v461_v57 }
  0x78   :  { %v466_v50 = vsub.f32 %v2556_v58, %v462_v56  ;;  %v386_v16 = vmul.f32 0.5, %v382_v30  ;;  %v1748_v13 = vadd.f32 -0.5, %v463_v29  ;;  %v499_v11 = vsub.f32 %v2198_v6, %v498_v40 }
  0x79   :  { %v1749_v1 = vadd.f32 -0.5, %v464_v48  ;;  %v388_v53 = vadd.f32 %v384_v22, %v376_v31  ;;  %v1750_v60 = vadd.f32 -0.5, %v465_v49  ;;  %v500_v45 = vsub.f32 %v2200_v7, %v498_v40 }
  0x7a   :  { %v1751_v10 = vadd.f32 -0.5, %v466_v50  ;;  %v471_v39 = vmul.f32 1000.0, %v1748_v13  ;;  %v501_v17 = vsub.f32 %v2202_v8, %v498_v40  ;;  %v502_v28 = vsub.f32 %v2204_v9, %v498_v40 }
  0x7b   :  { %v472_v47 = vmul.f32 1000.0, %v1749_v1  ;;  %v473_v34 = vmul.f32 1000.0, %v1750_v60  ;;  %v503_v0 = vadd.f32 1.0, %v499_v11  ;;  %v504_v52 = vadd.f32 1.0, %v500_v45 }
  0x7c   :  { %v474_v19 = vmul.f32 1000.0, %v1751_v10  ;;  %v389_v51 = vadd.f32 %v385_v41, %v377_v32  ;;  %1916 = vtanh.f32 %v471_v39  ;;  %v505_v23 = vadd.f32 1.0, %v501_v17 }
  0x7d   :  { %v1909_v54 = vpop.eup %1908  ;;  %v506_v38 = vadd.f32 1.0, %v502_v28  ;;  %1918 = vtanh.f32 %v472_v47  ;;  %v2586_v36 = vmul.f32 0.5, %v503_v0  ;;  %v2588_v44 = vmul.f32 0.5, %v504_v52 }
  0x7e   :  { %v1911_v18 = vpop.eup %1910  ;;  %v431_v26 = vadd.f32 1.0, %v1909_v54  ;;  %1920 = vtanh.f32 %v473_v34  ;;  %v2590_v40 = vmul.f32 0.5, %v505_v23  ;;  %v390_v48 = vadd.f32 %v386_v16, %v378_v25 }
  0x7f   :  { %v1913_v30 = vpop.eup %1912  ;;  %v432_v31 = vadd.f32 1.0, %v1911_v18  ;;  %v2592_v22 = vmul.f32 0.5, %v506_v38  ;;  %v427_v32 = vadd.f32 %v407_v43, %v387_v12  ;;  %1922 = vtanh.f32 %v474_v19 }
  0x80   :  { %v1915_v29 = vpop.eup %1914  ;;  %v511_v41 = vfloor.f32 %v2586_v36  ;;  %v433_v49 = vadd.f32 1.0, %v1913_v30  ;;  %v435_v50 = vmul.f32 0.5, %v431_v26  ;;  %v512_v13 = vfloor.f32 %v2588_v44 }
  0x81   :  { %v513_v1 = vfloor.f32 %v2590_v40  ;;  %v434_v11 = vadd.f32 1.0, %v1915_v29  ;;  %v514_v60 = vfloor.f32 %v2592_v22  ;;  %v550_v61 = vrot.slane %v2200_v7, %v2193_v4 }
  0x82   :  { %v515_v10 = vsub.f32 %v2586_v36, %v511_v41  ;;  %v428_v43 = vadd.f32 %v408_v62, %v388_v53  ;;  %v436_v25 = vmul.f32 0.5, %v432_v31  ;;  %v516_v12 = vsub.f32 %v2588_v44, %v512_v13 }
  0x83   :  { %v517_v16 = vsub.f32 %v2590_v40, %v513_v1  ;;  %v429_v45 = vadd.f32 %v409_v37, %v389_v51  ;;  %v430_v39 = vadd.f32 %v410_v27, %v390_v48  ;;  %v518_v46 = vsub.f32 %v2592_v22, %v514_v60 }
  0x84   :  { %v1752_v62 = vadd.f32 -0.5, %v515_v10  ;;  %v437_v53 = vmul.f32 0.5, %v433_v49  ;;  %v439_v47 = vadd.f32 %v435_v50, %v427_v32  ;;  %v1753_v17 = vadd.f32 -0.5, %v516_v12 }
  0x85   :  { %v1754_v28 = vadd.f32 -0.5, %v517_v16  ;;  %v438_v34 = vmul.f32 0.5, %v434_v11  ;;  %v1755_v19 = vadd.f32 -0.5, %v518_v46  ;;  %v551_v52 = vsub.f32 %v2198_v6, %v550_v61 }
  0x86   :  { %v523_v0 = vmul.f32 1000.0, %v1752_v62  ;;  %v440_v54 = vadd.f32 %v436_v25, %v428_v43  ;;  %v524_v24 = vmul.f32 1000.0, %v1753_v17  ;;  %v552_v21 = vsub.f32 %v2200_v7, %v550_v61  ;;  %v2638_v25 = vld [vmem:[#allocation2 + $0x8] sm:$0xff] }
  0x87   :  { %v525_v37 = vmul.f32 1000.0, %v1754_v28  ;;  %v526_v27 = vmul.f32 1000.0, %v1755_v19  ;;  %v553_v51 = vsub.f32 %v2202_v8, %v550_v61  ;;  %v554_v23 = vsub.f32 %v2204_v9, %v550_v61  ;;  %v2660_v19 = vld [vmem:[#allocation2] sm:$0xff] }
  0x88   :  { %1924 = vtanh.f32 %v523_v0  ;;  %v441_v38 = vadd.f32 %v437_v53, %v429_v45  ;;  %v555_v18 = vadd.f32 1.0, %v551_v52  ;;  %v556_v26 = vadd.f32 1.0, %v552_v21 }
  0x89   :  { %1926 = vtanh.f32 %v524_v24  ;;  %v1917_v30 = vpop.eup %1916  ;;  %v479_v31 = vadd.f32 %v459_v59, %v439_v47  ;;  %v557_v6 = vadd.f32 1.0, %v553_v51  ;;  %v558_v29 = vadd.f32 1.0, %v554_v23 }
  0x8a   :  { %1928 = vtanh.f32 %v525_v37  ;;  %v1919_v48 = vpop.eup %1918  ;;  %v483_v32 = vadd.f32 1.0, %v1917_v30  ;;  %v2626_v7 = vmul.f32 0.5, %v555_v18  ;;  %v2628_v49 = vmul.f32 0.5, %v556_v26  ;;  %v2668_v26 = vld [vmem:[#allocation2 + $0x10] sm:$0xff] }
  0x8b   :  { %1930 = vtanh.f32 %v526_v27  ;;  %v1921_v8 = vpop.eup %1920  ;;  %v442_v9 = vadd.f32 %v438_v34, %v430_v39  ;;  %v484_v50 = vadd.f32 1.0, %v1919_v48  ;;  %v2630_v11 = vmul.f32 0.5, %v557_v6 }
  0x8c   :  { %v2632_v10 = vmul.f32 0.5, %v558_v29  ;;  %v1923_v61 = vpop.eup %1922  ;;  %v480_v63 = vadd.f32 %v460_v55, %v440_v54  ;;  %v563_v59 = vfloor.f32 %v2626_v7  ;;  %v564_v43 = vfloor.f32 %v2628_v49  ;;  %v2671_v29 = vld [vmem:[#allocation2 + $0x18] sm:$0xff] }
  0x8d   :  { %v602_v12 = vrot.slane %v2638_v25, %v2196_v5  ;;  %v485_v16 = vadd.f32 1.0, %v1921_v8  ;;  %v487_v45 = vmul.f32 0.5, %v483_v32  ;;  %v565_v39 = vfloor.f32 %v2630_v11 }
  0x8e   :  { %v566_v46 = vfloor.f32 %v2632_v10  ;;  %v481_v62 = vadd.f32 %v461_v57, %v441_v38  ;;  %v486_v20 = vadd.f32 1.0, %v1923_v61  ;;  %v567_v55 = vsub.f32 %v2626_v7, %v563_v59 }
  0x8f   :  { %v568_v53 = vsub.f32 %v2628_v49, %v564_v43  ;;  %v482_v47 = vadd.f32 %v462_v56, %v442_v9  ;;  %v488_v17 = vmul.f32 0.5, %v484_v50  ;;  %v569_v28 = vsub.f32 %v2630_v11, %v565_v39 }
  0x90   :  { %v570_v33 = vsub.f32 %v2632_v10, %v566_v46  ;;  %v1756_v57 = vadd.f32 -0.5, %v567_v55  ;;  %v603_v0 = vsub.f32 %v2660_v19, %v602_v12  ;;  %v2665_v52 = vrot.slane %v2638_v25, %v2219_v14 }
  0x91   :  { %v1757_v34 = vadd.f32 -0.5, %v568_v53  ;;  %v489_v58 = vmul.f32 0.5, %v485_v16  ;;  %v491_v56 = vadd.f32 %v487_v45, %v479_v31  ;;  %v1758_v54 = vadd.f32 -0.5, %v569_v28 }
  0x92   :  { %v1759_v24 = vadd.f32 -0.5, %v570_v33  ;;  %v490_v37 = vmul.f32 0.5, %v486_v20  ;;  %v575_v21 = vmul.f32 1000.0, %v1756_v57  ;;  %v604_v51 = vsub.f32 %v2638_v25, %v602_v12 }
  0x93   :  { %v576_v27 = vmul.f32 1000.0, %v1757_v34  ;;  %v492_v23 = vadd.f32 %v488_v17, %v480_v63  ;;  %v577_v38 = vmul.f32 1000.0, %v1758_v54  ;;  %v605_v30 = vsub.f32 %v2668_v26, %v602_v12 }
  0x94   :  { %v578_v18 = vmul.f32 1000.0, %v1759_v24  ;;  %1932 = vtanh.f32 %v575_v21  ;;  %v606_v31 = vsub.f32 %v2671_v29, %v602_v12  ;;  %v607_v48 = vadd.f32 1.0, %v603_v0 }
  0x95   :  { %v1925_v6 = vpop.eup %1924  ;;  %v608_v32 = vadd.f32 1.0, %v604_v51  ;;  %v493_v9 = vadd.f32 %v489_v58, %v481_v62  ;;  %1934 = vtanh.f32 %v576_v27  ;;  %v609_v61 = vadd.f32 1.0, %v605_v30 }
  0x96   :  { %v1927_v8 = vpop.eup %1926  ;;  %v535_v50 = vadd.f32 1.0, %v1925_v6  ;;  %1936 = vtanh.f32 %v577_v38  ;;  %v610_v45 = vadd.f32 1.0, %v606_v31  ;;  %v2674_v20 = vmul.f32 0.5, %v607_v48 }
  0x97   :  { %v1929_v63 = vpop.eup %1928  ;;  %v536_v16 = vadd.f32 1.0, %v1927_v8  ;;  %v494_v53 = vadd.f32 %v490_v37, %v482_v47  ;;  %v531_v17 = vadd.f32 %v511_v41, %v491_v56  ;;  %1938 = vtanh.f32 %v578_v18 }
  0x98   :  { %v1931_v55 = vpop.eup %1930  ;;  %v2678_v12 = vmul.f32 0.5, %v608_v32  ;;  %v537_v28 = vadd.f32 1.0, %v1929_v63  ;;  %v539_v33 = vmul.f32 0.5, %v535_v50  ;;  %v2680_v62 = vmul.f32 0.5, %v609_v61 }
  0x99   :  { %v2682_v57 = vmul.f32 0.5, %v610_v45  ;;  %v532_v34 = vadd.f32 %v512_v13, %v492_v23  ;;  %v538_v0 = vadd.f32 1.0, %v1931_v55  ;;  %v615_v58 = vfloor.f32 %v2674_v20 }
  0x9a   :  { %v616_v47 = vfloor.f32 %v2678_v12  ;;  %v533_v36 = vadd.f32 %v513_v1, %v493_v9  ;;  %v540_v41 = vmul.f32 0.5, %v536_v16  ;;  %v617_v56 = vfloor.f32 %v2680_v62 }
  0x9b   :  { %v618_v54 = vfloor.f32 %v2682_v57  ;;  %v534_v24 = vadd.f32 %v514_v60, %v494_v53  ;;  %v619_v44 = vsub.f32 %v2674_v20, %v615_v58  ;;  %v655_v40 = vsub.f32 %v2660_v19, %v2665_v52 }
  0x9c   :  { %v620_v13 = vsub.f32 %v2678_v12, %v616_v47  ;;  %v541_v1 = vmul.f32 0.5, %v537_v28  ;;  %v543_v37 = vadd.f32 %v539_v33, %v531_v17  ;;  %v621_v21 = vsub.f32 %v2680_v62, %v617_v56 }
  0x9d   :  { %v622_v22 = vsub.f32 %v2682_v57, %v618_v54  ;;  %v542_v60 = vmul.f32 0.5, %v538_v0  ;;  %v1760_v27 = vadd.f32 -0.5, %v619_v44  ;;  %v656_v23 = vsub.f32 %v2638_v25, %v2665_v52 }
  0x9e   :  { %v1761_v51 = vadd.f32 -0.5, %v620_v13  ;;  %v544_v38 = vadd.f32 %v540_v41, %v532_v34  ;;  %v1762_v18 = vadd.f32 -0.5, %v621_v21  ;;  %v657_v6 = vsub.f32 %v2668_v26, %v2665_v52 }
  0x9f   :  { %v1763_v30 = vadd.f32 -0.5, %v622_v22  ;;  %v627_v31 = vmul.f32 1000.0, %v1760_v27  ;;  %v658_v32 = vsub.f32 %v2671_v29, %v2665_v52  ;;  %v659_v8 = vadd.f32 1.0, %v655_v40 }
  0xa0   :  { %v628_v48 = vmul.f32 1000.0, %v1761_v51  ;;  %v629_v9 = vmul.f32 1000.0, %v1762_v18  ;;  %v660_v61 = vadd.f32 1.0, %v656_v23  ;;  %v661_v63 = vadd.f32 1.0, %v657_v6 }
  0xa1   :  { %v630_v50 = vmul.f32 1000.0, %v1763_v30  ;;  %v1933_v16 = vpop.eup %1932  ;;  %v545_v45 = vadd.f32 %v541_v1, %v533_v36  ;;  %1940 = vtanh.f32 %v627_v31  ;;  %v662_v55 = vadd.f32 1.0, %v658_v32 }
  0xa2   :  { %v2714_v53 = vmul.f32 0.5, %v659_v8  ;;  %v1935_v17 = vpop.eup %1934  ;;  %v587_v28 = vadd.f32 1.0, %v1933_v16  ;;  %1942 = vtanh.f32 %v628_v48  ;;  %v2716_v33 = vmul.f32 0.5, %v660_v61 }
  0xa3   :  { %v2718_v34 = vmul.f32 0.5, %v661_v63  ;;  %v1937_v0 = vpop.eup %1936  ;;  %v588_v52 = vadd.f32 1.0, %v1935_v17  ;;  %1944 = vtanh.f32 %v629_v9  ;;  %v2720_v41 = vmul.f32 0.5, %v662_v55 }
  0xa4   :  { %v667_v44 = vfloor.f32 %v2714_v53  ;;  %v1939_v13 = vpop.eup %1938  ;;  %v546_v36 = vadd.f32 %v542_v60, %v534_v24  ;;  %v583_v40 = vadd.f32 %v563_v59, %v543_v37  ;;  %1946 = vtanh.f32 %v630_v50 }
  0xa5   :  { %v668_v1 = vfloor.f32 %v2716_v33  ;;  %v589_v21 = vadd.f32 1.0, %v1937_v0  ;;  %v591_v22 = vmul.f32 0.5, %v587_v28  ;;  %v669_v27 = vfloor.f32 %v2718_v34 }
  0xa6   :  { %v670_v51 = vfloor.f32 %v2720_v41  ;;  %v590_v23 = vadd.f32 1.0, %v1939_v13  ;;  %v671_v18 = vsub.f32 %v2714_v53, %v667_v44  ;;  %v706_v7 = vrot.slane %v2638_v25, %v2222_v15 }
  0xa7   :  { %v672_v24 = vsub.f32 %v2716_v33, %v668_v1  ;;  %v584_v59 = vadd.f32 %v564_v43, %v544_v38  ;;  %v592_v37 = vmul.f32 0.5, %v588_v52  ;;  %v673_v60 = vsub.f32 %v2718_v34, %v669_v27 }
  0xa8   :  { %v674_v30 = vsub.f32 %v2720_v41, %v670_v51  ;;  %v585_v6 = vadd.f32 %v565_v39, %v545_v45  ;;  %v586_v31 = vadd.f32 %v566_v46, %v546_v36  ;;  %v1764_v48 = vadd.f32 -0.5, %v671_v18 }
  0xa9   :  { %v1765_v32 = vadd.f32 -0.5, %v672_v24  ;;  %v593_v8 = vmul.f32 0.5, %v589_v21  ;;  %v595_v49 = vadd.f32 %v591_v22, %v583_v40  ;;  %v1766_v43 = vadd.f32 -0.5, %v673_v60 }
  0xaa   :  { %v1767_v38 = vadd.f32 -0.5, %v674_v30  ;;  %v594_v9 = vmul.f32 0.5, %v590_v23  ;;  %v679_v50 = vmul.f32 1000.0, %v1764_v48  ;;  %v707_v63 = vsub.f32 %v2660_v19, %v706_v7 }
  0xab   :  { %v680_v61 = vmul.f32 1000.0, %v1765_v32  ;;  %v596_v16 = vadd.f32 %v592_v37, %v584_v59  ;;  %v681_v55 = vmul.f32 1000.0, %v1766_v43  ;;  %v708_v11 = vsub.f32 %v2638_v25, %v706_v7 }
  0xac   :  { %v682_v17 = vmul.f32 1000.0, %v1767_v38  ;;  %1948 = vtanh.f32 %v679_v50  ;;  %v709_v10 = vsub.f32 %v2668_v26, %v706_v7  ;;  %v710_v39 = vsub.f32 %v2671_v29, %v706_v7 }
  0xad   :  { %v711_v46 = vadd.f32 1.0, %v707_v63  ;;  %v597_v45 = vadd.f32 %v593_v8, %v585_v6  ;;  %v635_v28 = vadd.f32 %v615_v58, %v595_v49  ;;  %1950 = vtanh.f32 %v680_v61 }
  0xae   :  { %v712_v0 = vadd.f32 1.0, %v708_v11  ;;  %v1941_v52 = vpop.eup %1940  ;;  %1952 = vtanh.f32 %v681_v55  ;;  %v713_v13 = vadd.f32 1.0, %v709_v10  ;;  %v714_v36 = vadd.f32 1.0, %v710_v39 }
  0xaf   :  { %v2754_v40 = vmul.f32 0.5, %v711_v46  ;;  %v1943_v21 = vpop.eup %1942  ;;  %v598_v22 = vadd.f32 %v594_v9, %v586_v31  ;;  %v639_v23 = vadd.f32 1.0, %v1941_v52  ;;  %1954 = vtanh.f32 %v682_v17 }
  0xb0   :  { %v2756_v18 = vmul.f32 0.5, %v712_v0  ;;  %v1945_v24 = vpop.eup %1944  ;;  %v640_v7 = vadd.f32 1.0, %v1943_v21  ;;  %v2758_v59 = vmul.f32 0.5, %v713_v13  ;;  %v2760_v20 = vmul.f32 0.5, %v714_v36 }
  0xb1   :  { %v719_v58 = vfloor.f32 %v2754_v40  ;;  %v1947_v37 = vpop.eup %1946  ;;  %v636_v60 = vadd.f32 %v616_v47, %v596_v16  ;;  %v637_v30 = vadd.f32 %v617_v56, %v597_v45  ;;  %v758_v31 = vrot.slane %v2638_v25, %v2365_v42 }
  0xb2   :  { %v720_v6 = vfloor.f32 %v2756_v18  ;;  %v641_v48 = vadd.f32 1.0, %v1945_v24  ;;  %v643_v32 = vmul.f32 0.5, %v639_v23  ;;  %v721_v8 = vfloor.f32 %v2758_v59 }
  0xb3   :  { %v722_v49 = vfloor.f32 %v2760_v20  ;;  %v638_v43 = vadd.f32 %v618_v54, %v598_v22  ;;  %v642_v38 = vadd.f32 1.0, %v1947_v37  ;;  %v723_v12 = vsub.f32 %v2754_v40, %v719_v58 }
  0xb4   :  { %v724_v62 = vsub.f32 %v2756_v18, %v720_v6  ;;  %v644_v47 = vmul.f32 0.5, %v640_v7  ;;  %v725_v56 = vsub.f32 %v2758_v59, %v721_v8  ;;  %v2788_v57 = vrot.slane %v2638_v25, %v2368_v35 }
  0xb5   :  { %v726_v9 = vsub.f32 %v2760_v20, %v722_v49  ;;  %v1768_v54 = vadd.f32 -0.5, %v723_v12  ;;  %v759_v61 = vsub.f32 %v2660_v19, %v758_v31  ;;  %v760_v63 = vsub.f32 %v2638_v25, %v758_v31 }
  0xb6   :  { %v1769_v50 = vadd.f32 -0.5, %v724_v62  ;;  %v645_v16 = vmul.f32 0.5, %v641_v48  ;;  %v647_v55 = vadd.f32 %v643_v32, %v635_v28  ;;  %v1770_v17 = vadd.f32 -0.5, %v725_v56 }
  0xb7   :  { %v1771_v11 = vadd.f32 -0.5, %v726_v9  ;;  %v646_v10 = vmul.f32 0.5, %v642_v38  ;;  %v731_v39 = vmul.f32 1000.0, %v1768_v54  ;;  %v761_v45 = vsub.f32 %v2668_v26, %v758_v31 }
  0xb8   :  { %v732_v46 = vmul.f32 1000.0, %v1769_v50  ;;  %v648_v0 = vadd.f32 %v644_v47, %v636_v60  ;;  %v733_v52 = vmul.f32 1000.0, %v1770_v17  ;;  %v762_v36 = vsub.f32 %v2671_v29, %v758_v31 }
  0xb9   :  { %v734_v13 = vmul.f32 1000.0, %v1771_v11  ;;  %v1949_v21 = vpop.eup %1948  ;;  %1956 = vtanh.f32 %v731_v39  ;;  %v763_v22 = vadd.f32 1.0, %v759_v61  ;;  %v764_v23 = vadd.f32 1.0, %v760_v63 }
  0xba   :  { %v765_v24 = vadd.f32 1.0, %v761_v45  ;;  %v1951_v7 = vpop.eup %1950  ;;  %v649_v37 = vadd.f32 %v645_v16, %v637_v30  ;;  %v691_v28 = vadd.f32 1.0, %v1949_v21  ;;  %1958 = vtanh.f32 %v732_v46 }
  0xbb   :  { %v766_v48 = vadd.f32 1.0, %v762_v36  ;;  %v1953_v32 = vpop.eup %1952  ;;  %v692_v38 = vadd.f32 1.0, %v1951_v7  ;;  %1960 = vtanh.f32 %v733_v52  ;;  %v2794_v12 = vmul.f32 0.5, %v763_v22 }
  0xbc   :  { %v2796_v60 = vmul.f32 0.5, %v764_v23  ;;  %v1955_v62 = vpop.eup %1954  ;;  %v650_v47 = vadd.f32 %v646_v10, %v638_v43  ;;  %v687_v31 = vadd.f32 %v667_v44, %v647_v55  ;;  %1962 = vtanh.f32 %v734_v13 }
  0xbd   :  { %v2800_v56 = vmul.f32 0.5, %v765_v24  ;;  %v693_v9 = vadd.f32 1.0, %v1953_v32  ;;  %v695_v30 = vmul.f32 0.5, %v691_v28  ;;  %v2802_v54 = vmul.f32 0.5, %v766_v48 }
  0xbe   :  { %v771_v50 = vfloor.f32 %v2794_v12  ;;  %v688_v61 = vadd.f32 %v668_v1, %v648_v0  ;;  %v694_v63 = vadd.f32 1.0, %v1955_v62  ;;  %v772_v16 = vfloor.f32 %v2796_v60 }
  0xbf   :  { %v773_v43 = vfloor.f32 %v2800_v56  ;;  %v689_v53 = vadd.f32 %v669_v27, %v649_v37  ;;  %v696_v44 = vmul.f32 0.5, %v692_v38  ;;  %v774_v55 = vfloor.f32 %v2802_v54 }
  0xc0   :  { %v775_v17 = vsub.f32 %v2794_v12, %v771_v50  ;;  %v690_v11 = vadd.f32 %v670_v51, %v650_v47  ;;  %v776_v33 = vsub.f32 %v2796_v60, %v772_v16  ;;  %v811_v34 = vsub.f32 %v2660_v19, %v2788_v57 }
  0xc1   :  { %v777_v1 = vsub.f32 %v2800_v56, %v773_v43  ;;  %v697_v27 = vmul.f32 0.5, %v693_v9  ;;  %v699_v10 = vadd.f32 %v695_v30, %v687_v31  ;;  %v778_v39 = vsub.f32 %v2802_v54, %v774_v55 }
  0xc2   :  { %v1772_v46 = vadd.f32 -0.5, %v775_v17  ;;  %v698_v41 = vmul.f32 0.5, %v694_v63  ;;  %v1773_v51 = vadd.f32 -0.5, %v776_v33  ;;  %v812_v0 = vsub.f32 %v2638_v25, %v2788_v57 }
  0xc3   :  { %v1774_v45 = vadd.f32 -0.5, %v777_v1  ;;  %v700_v52 = vadd.f32 %v696_v44, %v688_v61  ;;  %v1775_v13 = vadd.f32 -0.5, %v778_v39  ;;  %v813_v21 = vsub.f32 %v2668_v26, %v2788_v57 }
  0xc4   :  { %v783_v36 = vmul.f32 1000.0, %v1772_v46  ;;  %v784_v22 = vmul.f32 1000.0, %v1773_v51  ;;  %v814_v24 = vsub.f32 %v2671_v29, %v2788_v57  ;;  %v815_v7 = vadd.f32 1.0, %v811_v34 }
  0xc5   :  { %v785_v23 = vmul.f32 1000.0, %v1774_v45  ;;  %v786_v37 = vmul.f32 1000.0, %v1775_v13  ;;  %v816_v28 = vadd.f32 1.0, %v812_v0  ;;  %v817_v48 = vadd.f32 1.0, %v813_v21 }
  0xc6   :  { %1964 = vtanh.f32 %v783_v36  ;;  %v1957_v32 = vpop.eup %1956  ;;  %v701_v38 = vadd.f32 %v697_v27, %v689_v53  ;;  %v818_v62 = vadd.f32 1.0, %v814_v24  ;;  %v2834_v47 = vmul.f32 0.5, %v815_v7 }
  0xc7   :  { %1966 = vtanh.f32 %v784_v22  ;;  %v1959_v31 = vpop.eup %1958  ;;  %v743_v9 = vadd.f32 1.0, %v1957_v32  ;;  %v2836_v30 = vmul.f32 0.5, %v816_v28  ;;  %v2838_v61 = vmul.f32 0.5, %v817_v48 }
  0xc8   :  { %1968 = vtanh.f32 %v785_v23  ;;  %v1961_v63 = vpop.eup %1960  ;;  %v744_v57 = vadd.f32 1.0, %v1959_v31  ;;  %v2840_v44 = vmul.f32 0.5, %v818_v62  ;;  %v823_v17 = vfloor.f32 %v2834_v47 }
  0xc9   :  { %1970 = vtanh.f32 %v786_v37  ;;  %v1963_v33 = vpop.eup %1962  ;;  %v702_v53 = vadd.f32 %v698_v41, %v690_v11  ;;  %v739_v1 = vadd.f32 %v719_v58, %v699_v10  ;;  %v824_v34 = vfloor.f32 %v2836_v30 }
  0xca   :  { %v825_v27 = vfloor.f32 %v2838_v61  ;;  %v745_v39 = vadd.f32 1.0, %v1961_v63  ;;  %v747_v46 = vmul.f32 0.5, %v743_v9  ;;  %v826_v51 = vfloor.f32 %v2840_v44 }
  0xcb   :  { %v827_v45 = vsub.f32 %v2834_v47, %v823_v17  ;;  %v746_v0 = vadd.f32 1.0, %v1963_v33  ;;  %v828_v11 = vsub.f32 %v2836_v30, %v824_v34  ;;  %v862_v58 = vrot.slane %v2668_v26, %v2187_v2 }
  0xcc   :  { %v829_v40 = vsub.f32 %v2838_v61, %v825_v27  ;;  %v740_v10 = vadd.f32 %v720_v6, %v700_v52  ;;  %v748_v41 = vmul.f32 0.5, %v744_v57  ;;  %v830_v13 = vsub.f32 %v2840_v44, %v826_v51 }
  0xcd   :  { %v1776_v36 = vadd.f32 -0.5, %v827_v45  ;;  %v741_v21 = vadd.f32 %v721_v8, %v701_v38  ;;  %v742_v22 = vadd.f32 %v722_v49, %v702_v53  ;;  %v1777_v23 = vadd.f32 -0.5, %v828_v11 }
  0xce   :  { %v1778_v24 = vadd.f32 -0.5, %v829_v40  ;;  %v749_v7 = vmul.f32 0.5, %v745_v39  ;;  %v751_v37 = vadd.f32 %v747_v46, %v739_v1  ;;  %v1779_v28 = vadd.f32 -0.5, %v830_v13 }
  0xcf   :  { %v835_v48 = vmul.f32 1000.0, %v1776_v36  ;;  %v750_v18 = vmul.f32 0.5, %v746_v0  ;;  %v836_v6 = vmul.f32 1000.0, %v1777_v23  ;;  %v863_v32 = vsub.f32 %v2660_v19, %v862_v58 }
  0xd0   :  { %v837_v52 = vmul.f32 1000.0, %v1778_v24  ;;  %v752_v62 = vadd.f32 %v748_v41, %v740_v10  ;;  %v838_v31 = vmul.f32 1000.0, %v1779_v28  ;;  %v864_v59 = vsub.f32 %v2638_v25, %v862_v58 }
  0xd1   :  { %1972 = vtanh.f32 %v835_v48  ;;  %v865_v20 = vsub.f32 %v2668_v26, %v862_v58  ;;  %v866_v8 = vsub.f32 %v2671_v29, %v862_v58  ;;  %v867_v49 = vadd.f32 1.0, %v863_v32 }
  0xd2   :  { %1974 = vtanh.f32 %v836_v6  ;;  %v753_v9 = vadd.f32 %v749_v7, %v741_v21  ;;  %v868_v63 = vadd.f32 1.0, %v864_v59  ;;  %v754_v46 = vadd.f32 %v750_v18, %v742_v22 }
  0xd3   :  { %v1965_v38 = vpop.eup %1964  ;;  %1976 = vtanh.f32 %v837_v52  ;;  %v869_v53 = vadd.f32 1.0, %v865_v20  ;;  %v870_v1 = vadd.f32 1.0, %v866_v8  ;;  %v791_v45 = vadd.f32 %v771_v50, %v751_v37 }
  0xd4   :  { %v1967_v57 = vpop.eup %1966  ;;  %v795_v33 = vadd.f32 1.0, %v1965_v38  ;;  %1978 = vtanh.f32 %v838_v31  ;;  %v2874_v0 = vmul.f32 0.5, %v867_v49  ;;  %v2876_v11 = vmul.f32 0.5, %v868_v63 }
  0xd5   :  { %v1969_v39 = vpop.eup %1968  ;;  %v792_v58 = vadd.f32 %v772_v16, %v752_v62  ;;  %v2880_v10 = vmul.f32 0.5, %v869_v53  ;;  %v2882_v41 = vmul.f32 0.5, %v870_v1  ;;  %v914_v13 = vrot.slane %v2668_v26, %v2190_v3 }
  0xd6   :  { %v1971_v40 = vpop.eup %1970  ;;  %v796_v36 = vadd.f32 1.0, %v1967_v57  ;;  %v797_v21 = vadd.f32 1.0, %v1969_v39  ;;  %v875_v12 = vfloor.f32 %v2874_v0  ;;  %v876_v50 = vfloor.f32 %v2876_v11 }
  0xd7   :  { %v793_v22 = vadd.f32 %v773_v43, %v753_v9  ;;  %v799_v23 = vmul.f32 0.5, %v795_v33  ;;  %v877_v60 = vfloor.f32 %v2880_v10  ;;  %v878_v16 = vfloor.f32 %v2882_v41 }
  0xd8   :  { %v794_v24 = vadd.f32 %v774_v55, %v754_v46  ;;  %v798_v7 = vadd.f32 1.0, %v1971_v40  ;;  %v879_v37 = vsub.f32 %v2874_v0, %v875_v12  ;;  %v880_v28 = vsub.f32 %v2876_v11, %v876_v50 }
  0xd9   :  { %v881_v56 = vsub.f32 %v2880_v10, %v877_v60  ;;  %v882_v43 = vsub.f32 %v2882_v41, %v878_v16  ;;  %v915_v54 = vsub.f32 %v2660_v19, %v914_v13  ;;  %v2909_v55 = vrot.slane %v2668_v26, %v2193_v4 }
  0xda   :  { %v800_v48 = vmul.f32 0.5, %v796_v36  ;;  %v801_v18 = vmul.f32 0.5, %v797_v21  ;;  %v1780_v6 = vadd.f32 -0.5, %v879_v37  ;;  %v1781_v52 = vadd.f32 -0.5, %v880_v28 }
  0xdb   :  { %v803_v32 = vadd.f32 %v799_v23, %v791_v45  ;;  %v1782_v62 = vadd.f32 -0.5, %v881_v56  ;;  %v1783_v31 = vadd.f32 -0.5, %v882_v43  ;;  %v916_v59 = vsub.f32 %v2638_v25, %v914_v13 }
  0xdc   :  { %v802_v20 = vmul.f32 0.5, %v798_v7  ;;  %v887_v8 = vmul.f32 1000.0, %v1780_v6  ;;  %v888_v49 = vmul.f32 1000.0, %v1781_v52  ;;  %v917_v38 = vsub.f32 %v2668_v26, %v914_v13 }
  0xdd   :  { %v889_v63 = vmul.f32 1000.0, %v1782_v62  ;;  %v890_v57 = vmul.f32 1000.0, %v1783_v31  ;;  %v918_v33 = vsub.f32 %v2671_v29, %v914_v13  ;;  %v919_v53 = vadd.f32 1.0, %v915_v54 }
  0xde   :  { %v1973_v9 = vpop.eup %1972  ;;  %1980 = vtanh.f32 %v887_v8  ;;  %v920_v46 = vadd.f32 1.0, %v916_v59  ;;  %v921_v45 = vadd.f32 1.0, %v917_v38  ;;  %v804_v36 = vadd.f32 %v800_v48, %v792_v58 }
  0xdf   :  { %v1975_v1 = vpop.eup %1974  ;;  %v847_v39 = vadd.f32 1.0, %v1973_v9  ;;  %1982 = vtanh.f32 %v888_v49  ;;  %v922_v21 = vadd.f32 1.0, %v918_v33  ;;  %v2914_v23 = vmul.f32 0.5, %v919_v53 }
  0xe0   :  { %v1977_v40 = vpop.eup %1976  ;;  %v805_v37 = vadd.f32 %v801_v18, %v793_v22  ;;  %v806_v28 = vadd.f32 %v802_v20, %v794_v24  ;;  %1984 = vtanh.f32 %v889_v63  ;;  %v2916_v56 = vmul.f32 0.5, %v920_v46 }
  0xe1   :  { %v1979_v7 = vpop.eup %1978  ;;  %v848_v43 = vadd.f32 1.0, %v1975_v1  ;;  %v849_v13 = vadd.f32 1.0, %v1977_v40  ;;  %1986 = vtanh.f32 %v890_v57  ;;  %v2918_v54 = vmul.f32 0.5, %v921_v45 }
  0xe2   :  { %v843_v6 = vadd.f32 %v823_v17, %v803_v32  ;;  %v851_v52 = vmul.f32 0.5, %v847_v39  ;;  %v2922_v58 = vmul.f32 0.5, %v922_v21  ;;  %v927_v48 = vfloor.f32 %v2914_v23 }
  0xe3   :  { %v844_v22 = vadd.f32 %v824_v34, %v804_v36  ;;  %v850_v24 = vadd.f32 1.0, %v1979_v7  ;;  %v928_v18 = vfloor.f32 %v2916_v56  ;;  %v929_v62 = vfloor.f32 %v2918_v54 }
  0xe4   :  { %v845_v31 = vadd.f32 %v825_v27, %v805_v37  ;;  %v846_v47 = vadd.f32 %v826_v51, %v806_v28  ;;  %v930_v17 = vfloor.f32 %v2922_v58  ;;  %v931_v32 = vsub.f32 %v2914_v23, %v927_v48 }
  0xe5   :  { %v852_v59 = vmul.f32 0.5, %v848_v43  ;;  %v853_v30 = vmul.f32 0.5, %v849_v13  ;;  %v932_v34 = vsub.f32 %v2916_v56, %v928_v18  ;;  %v933_v61 = vsub.f32 %v2918_v54, %v929_v62 }
  0xe6   :  { %v855_v27 = vadd.f32 %v851_v52, %v843_v6  ;;  %v934_v44 = vsub.f32 %v2922_v58, %v930_v17  ;;  %v1784_v51 = vadd.f32 -0.5, %v931_v32  ;;  %v967_v20 = vsub.f32 %v2660_v19, %v2909_v55 }
  0xe7   :  { %v854_v8 = vmul.f32 0.5, %v850_v24  ;;  %v1785_v49 = vadd.f32 -0.5, %v932_v34  ;;  %v1786_v38 = vadd.f32 -0.5, %v933_v61  ;;  %v968_v9 = vsub.f32 %v2638_v25, %v2909_v55 }
  0xe8   :  { %v1787_v63 = vadd.f32 -0.5, %v934_v44  ;;  %v939_v57 = vmul.f32 1000.0, %v1784_v51  ;;  %v969_v33 = vsub.f32 %v2668_v26, %v2909_v55  ;;  %v970_v53 = vsub.f32 %v2671_v29, %v2909_v55 }
  0xe9   :  { %v940_v1 = vmul.f32 1000.0, %v1785_v49  ;;  %v941_v39 = vmul.f32 1000.0, %v1786_v38  ;;  %v971_v46 = vadd.f32 1.0, %v967_v20  ;;  %v972_v45 = vadd.f32 1.0, %v968_v9 }
  0xea   :  { %v942_v40 = vmul.f32 1000.0, %v1787_v63  ;;  %1988 = vtanh.f32 %v939_v57  ;;  %v973_v36 = vadd.f32 1.0, %v969_v33  ;;  %v974_v21 = vadd.f32 1.0, %v970_v53 }
  0xeb   :  { %v1981_v7 = vpop.eup %1980  ;;  %v856_v37 = vadd.f32 %v852_v59, %v844_v22  ;;  %1990 = vtanh.f32 %v940_v1  ;;  %v2954_v28 = vmul.f32 0.5, %v971_v46  ;;  %v2956_v43 = vmul.f32 0.5, %v972_v45 }
  0xec   :  { %v1983_v13 = vpop.eup %1982  ;;  %v899_v6 = vadd.f32 1.0, %v1981_v7  ;;  %1992 = vtanh.f32 %v941_v39  ;;  %v2958_v52 = vmul.f32 0.5, %v973_v36  ;;  %v2960_v55 = vmul.f32 0.5, %v974_v21 }
  0xed   :  { %v1985_v24 = vpop.eup %1984  ;;  %v857_v32 = vadd.f32 %v853_v30, %v845_v31  ;;  %1994 = vtanh.f32 %v942_v40  ;;  %v979_v34 = vfloor.f32 %v2954_v28  ;;  %v980_v61 = vfloor.f32 %v2956_v43 }
  0xee   :  { %v1987_v22 = vpop.eup %1986  ;;  %v858_v59 = vadd.f32 %v854_v8, %v846_v47  ;;  %v895_v44 = vadd.f32 %v875_v12, %v855_v27  ;;  %v981_v51 = vfloor.f32 %v2958_v52  ;;  %v982_v20 = vfloor.f32 %v2960_v55 }
  0xef   :  { %v900_v49 = vadd.f32 1.0, %v1983_v13  ;;  %v983_v38 = vsub.f32 %v2954_v28, %v979_v34  ;;  %v984_v31 = vsub.f32 %v2956_v43, %v980_v61  ;;  %v1018_v30 = vrot.slane %v2668_v26, %v2196_v5 }
  0xf0   :  { %v901_v47 = vadd.f32 1.0, %v1985_v24  ;;  %v903_v8 = vmul.f32 0.5, %v899_v6  ;;  %v985_v0 = vsub.f32 %v2958_v52, %v981_v51  ;;  %v986_v12 = vsub.f32 %v2960_v55, %v982_v20 }
  0xf1   :  { %v902_v27 = vadd.f32 1.0, %v1987_v22  ;;  %v1788_v9 = vadd.f32 -0.5, %v983_v38  ;;  %v1789_v63 = vadd.f32 -0.5, %v984_v31  ;;  %v896_v57 = vadd.f32 %v876_v50, %v856_v37 }
  0xf2   :  { %v897_v33 = vadd.f32 %v877_v60, %v857_v32  ;;  %v1790_v53 = vadd.f32 -0.5, %v985_v0  ;;  %v1791_v1 = vadd.f32 -0.5, %v986_v12  ;;  %v898_v39 = vadd.f32 %v878_v16, %v858_v59 }
  0xf3   :  { %v904_v46 = vmul.f32 0.5, %v900_v49  ;;  %v991_v45 = vmul.f32 1000.0, %v1788_v9  ;;  %v992_v40 = vmul.f32 1000.0, %v1789_v63  ;;  %v905_v36 = vmul.f32 0.5, %v901_v47 }
  0xf4   :  { %v907_v21 = vadd.f32 %v903_v8, %v895_v44  ;;  %v993_v7 = vmul.f32 1000.0, %v1790_v53  ;;  %v1019_v13 = vsub.f32 %v2660_v19, %v1018_v30  ;;  %v906_v6 = vmul.f32 0.5, %v902_v27 }
  0xf5   :  { %1996 = vtanh.f32 %v991_v45  ;;  %v1020_v11 = vsub.f32 %v2638_v25, %v1018_v30  ;;  %v1021_v10 = vsub.f32 %v2668_v26, %v1018_v30  ;;  %v994_v50 = vmul.f32 1000.0, %v1791_v1 }
  0xf6   :  { %1998 = vtanh.f32 %v992_v40  ;;  %v1022_v60 = vsub.f32 %v2671_v29, %v1018_v30  ;;  %v1023_v41 = vadd.f32 1.0, %v1019_v13  ;;  %v908_v37 = vadd.f32 %v904_v46, %v896_v57 }
  0xf7   :  { %v1989_v16 = vpop.eup %1988  ;;  %2000 = vtanh.f32 %v993_v7  ;;  %v1024_v24 = vadd.f32 1.0, %v1020_v11  ;;  %v1025_v32 = vadd.f32 1.0, %v1021_v10  ;;  %v909_v59 = vadd.f32 %v905_v36, %v897_v33 }
  0xf8   :  { %v1991_v22 = vpop.eup %1990  ;;  %v951_v44 = vadd.f32 1.0, %v1989_v16  ;;  %v1026_v49 = vadd.f32 1.0, %v1022_v60  ;;  %v2992_v38 = vmul.f32 0.5, %v1023_v41  ;;  %v910_v47 = vadd.f32 %v906_v6, %v898_v39 }
  0xf9   :  { %v1993_v31 = vpop.eup %1992  ;;  %v947_v8 = vadd.f32 %v927_v48, %v907_v21  ;;  %v2996_v0 = vmul.f32 0.5, %v1024_v24  ;;  %v2998_v30 = vmul.f32 0.5, %v1025_v32  ;;  %2002 = vtanh.f32 %v994_v50 }
  0xfa   :  { %v1995_v12 = vpop.eup %1994  ;;  %v3000_v27 = vmul.f32 0.5, %v1026_v49  ;;  %v1031_v9 = vfloor.f32 %v2992_v38  ;;  %v1070_v63 = vrot.slane %v2668_v26, %v2219_v14  ;;  %v952_v57 = vadd.f32 1.0, %v1991_v22 }
  0xfb   :  { %v953_v33 = vadd.f32 1.0, %v1993_v31  ;;  %v1032_v53 = vfloor.f32 %v2996_v0  ;;  %v1033_v23 = vfloor.f32 %v2998_v30  ;;  %v948_v48 = vadd.f32 %v928_v18, %v908_v37 }
  0xfc   :  { %v955_v1 = vmul.f32 0.5, %v951_v44  ;;  %v1034_v39 = vfloor.f32 %v3000_v27  ;;  %v1035_v46 = vsub.f32 %v2992_v38, %v1031_v9  ;;  %v949_v45 = vadd.f32 %v929_v62, %v909_v59 }
  0xfd   :  { %v954_v40 = vadd.f32 1.0, %v1995_v12  ;;  %v1036_v36 = vsub.f32 %v2996_v0, %v1032_v53  ;;  %v1037_v56 = vsub.f32 %v2998_v30, %v1033_v23  ;;  %v950_v18 = vadd.f32 %v930_v17, %v910_v47 }
  0xfe   :  { %v1038_v21 = vsub.f32 %v3000_v27, %v1034_v39  ;;  %v1792_v7 = vadd.f32 -0.5, %v1035_v46  ;;  %v1071_v54 = vsub.f32 %v2660_v19, %v1070_v63  ;;  %v956_v62 = vmul.f32 0.5, %v952_v57 }
  0xff   :  { %v957_v13 = vmul.f32 0.5, %v953_v33  ;;  %v1793_v6 = vadd.f32 -0.5, %v1036_v36  ;;  %v1794_v11 = vadd.f32 -0.5, %v1037_v56  ;;  %v959_v10 = vadd.f32 %v955_v1, %v947_v8 }
 0x100   :  { %v1795_v50 = vadd.f32 -0.5, %v1038_v21  ;;  %v1043_v60 = vmul.f32 1000.0, %v1792_v7  ;;  %v1072_v41 = vsub.f32 %v2638_v25, %v1070_v63  ;;  %v958_v16 = vmul.f32 0.5, %v954_v40 }
 0x101   :  { %v1044_v37 = vmul.f32 1000.0, %v1793_v6  ;;  %v1045_v58 = vmul.f32 1000.0, %v1794_v11  ;;  %v1073_v17 = vsub.f32 %v2668_v26, %v1070_v63  ;;  %v1074_v22 = vsub.f32 %v2671_v29, %v1070_v63  ;;  %v3064_v11 = vld [vmem:[#allocation2] sm:$0xff] }
 0x102   :  { %v1997_v24 = vpop.eup %1996  ;;  %v1046_v32 = vmul.f32 1000.0, %v1795_v50  ;;  %2004 = vtanh.f32 %v1043_v60  ;;  %v1075_v19 = vadd.f32 1.0, %v1071_v54  ;;  %v960_v44 = vadd.f32 %v956_v62, %v948_v48 }
 0x103   :  { %v1999_v59 = vpop.eup %1998  ;;  %2006 = vtanh.f32 %v1044_v37  ;;  %v1076_v49 = vadd.f32 1.0, %v1072_v41  ;;  %v1077_v31 = vadd.f32 1.0, %v1073_v17  ;;  %v1003_v8 = vadd.f32 1.0, %v1997_v24  ;;  %v3070_v24 = vld [vmem:[#allocation2 + $0x10] sm:$0xff] }
 0x104   :  { %v2001_v47 = vpop.eup %2000  ;;  %2008 = vtanh.f32 %v1045_v58  ;;  %v1078_v25 = vadd.f32 1.0, %v1074_v22  ;;  %v3030_v12 = vmul.f32 0.5, %v1075_v19  ;;  %v961_v57 = vadd.f32 %v957_v13, %v949_v45  ;;  %v3073_v22 = vld [vmem:[#allocation2 + $0x18] sm:$0xff] }
 0x105   :  { %v962_v33 = vadd.f32 %v958_v16, %v950_v18  ;;  %v3032_v1 = vmul.f32 0.5, %v1076_v49  ;;  %v1122_v46 = vrot.slane %v2668_v26, %v2222_v15  ;;  %v1004_v29 = vadd.f32 1.0, %v1999_v59  ;;  %v3067_v16 = vld [vmem:[#allocation2 + $0x8] sm:$0xff] }
 0x106   :  { %2010 = vtanh.f32 %v1046_v32  ;;  %v3036_v63 = vmul.f32 0.5, %v1077_v31  ;;  %v3038_v48 = vmul.f32 0.5, %v1078_v25  ;;  %v2003_v40 = vpop.eup %2002  ;;  %v999_v36 = vadd.f32 %v979_v34, %v959_v10 }
 0x107   :  { %v1005_v56 = vadd.f32 1.0, %v2001_v47  ;;  %v1083_v21 = vfloor.f32 %v3030_v12  ;;  %v1084_v45 = vfloor.f32 %v3032_v1  ;;  %v1000_v18 = vadd.f32 %v980_v61, %v960_v44 }
 0x108   :  { %v1007_v7 = vmul.f32 0.5, %v1003_v8  ;;  %v1085_v26 = vfloor.f32 %v3036_v63  ;;  %v1086_v54 = vfloor.f32 %v3038_v48  ;;  %v1001_v62 = vadd.f32 %v981_v51, %v961_v57 }
 0x109   :  { %v1002_v28 = vadd.f32 %v982_v20, %v962_v33  ;;  %v1087_v34 = vsub.f32 %v3030_v12, %v1083_v21  ;;  %v1088_v43 = vsub.f32 %v3032_v1, %v1084_v45  ;;  %v1006_v61 = vadd.f32 1.0, %v2003_v40 }
 0x10a   :  { %v1008_v13 = vmul.f32 0.5, %v1004_v29  ;;  %v1089_v6 = vsub.f32 %v3036_v63, %v1085_v26  ;;  %v1090_v52 = vsub.f32 %v3038_v48, %v1086_v54  ;;  %v1009_v55 = vmul.f32 0.5, %v1005_v56 }
 0x10b   :  { %v1796_v51 = vadd.f32 -0.5, %v1087_v34  ;;  %v1797_v20 = vadd.f32 -0.5, %v1088_v43  ;;  %v1123_v10 = vsub.f32 %v3064_v11, %v1122_v46  ;;  %v1011_v50 = vadd.f32 %v1007_v7, %v999_v36 }
 0x10c   :  { %v1798_v60 = vadd.f32 -0.5, %v1089_v6  ;;  %v1799_v41 = vadd.f32 -0.5, %v1090_v52  ;;  %v1124_v37 = vsub.f32 %v3067_v16, %v1122_v46  ;;  %v1125_v32 = vsub.f32 %v3070_v24, %v1122_v46 }
 0x10d   :  { %v1095_v58 = vmul.f32 1000.0, %v1796_v51  ;;  %v1096_v17 = vmul.f32 1000.0, %v1797_v20  ;;  %v1126_v19 = vsub.f32 %v3073_v22, %v1122_v46  ;;  %v1127_v49 = vadd.f32 1.0, %v1123_v10 }
 0x10e   :  { %v1097_v59 = vmul.f32 1000.0, %v1798_v60  ;;  %v1098_v44 = vmul.f32 1000.0, %v1799_v41  ;;  %v1128_v31 = vadd.f32 1.0, %v1124_v37  ;;  %v1010_v8 = vmul.f32 0.5, %v1006_v61 }
 0x10f   :  { %v2005_v47 = vpop.eup %2004  ;;  %2012 = vtanh.f32 %v1095_v58  ;;  %v1129_v25 = vadd.f32 1.0, %v1125_v32  ;;  %v1130_v57 = vadd.f32 1.0, %v1126_v19  ;;  %v1012_v29 = vadd.f32 %v1008_v13, %v1000_v18 }
 0x110   :  { %v2007_v33 = vpop.eup %2006  ;;  %2014 = vtanh.f32 %v1096_v17  ;;  %v3076_v40 = vmul.f32 0.5, %v1127_v49  ;;  %v3078_v36 = vmul.f32 0.5, %v1128_v31  ;;  %v1055_v7 = vadd.f32 1.0, %v2005_v47 }
 0x111   :  { %v2009_v56 = vpop.eup %2008  ;;  %2016 = vtanh.f32 %v1097_v59  ;;  %v3080_v46 = vmul.f32 0.5, %v1129_v25  ;;  %v3082_v34 = vmul.f32 0.5, %v1130_v57  ;;  %v1013_v43 = vadd.f32 %v1009_v55, %v1001_v62 }
 0x112   :  { %v1051_v61 = vadd.f32 %v1031_v9, %v1011_v50  ;;  %2018 = vtanh.f32 %v1098_v44  ;;  %v1135_v6 = vfloor.f32 %v3076_v40  ;;  %v1014_v13 = vadd.f32 %v1010_v8, %v1002_v28 }
 0x113   :  { %v2011_v18 = vpop.eup %2010  ;;  %v1056_v52 = vadd.f32 1.0, %v2007_v33  ;;  %v1136_v51 = vfloor.f32 %v3078_v36  ;;  %v1137_v20 = vfloor.f32 %v3080_v46  ;;  %v1057_v10 = vadd.f32 1.0, %v2009_v56 }
 0x114   :  { %v1138_v60 = vfloor.f32 %v3082_v34  ;;  %v1139_v62 = vsub.f32 %v3076_v40, %v1135_v6  ;;  %v1174_v38 = vrot.slane %v3070_v24, %v2365_v42  ;;  %v1052_v9 = vadd.f32 %v1032_v53, %v1012_v29 }
 0x115   :  { %v1059_v55 = vmul.f32 0.5, %v1055_v7  ;;  %v1140_v28 = vsub.f32 %v3078_v36, %v1136_v51  ;;  %v1141_v50 = vsub.f32 %v3080_v46, %v1137_v20  ;;  %v1053_v41 = vadd.f32 %v1033_v23, %v1013_v43 }
 0x116   :  { %v1058_v37 = vadd.f32 1.0, %v2011_v18  ;;  %v1142_v58 = vsub.f32 %v3082_v34, %v1138_v60  ;;  %v1800_v17 = vadd.f32 -0.5, %v1139_v62  ;;  %v1054_v0 = vadd.f32 %v1034_v39, %v1014_v13 }
 0x117   :  { %v1060_v53 = vmul.f32 0.5, %v1056_v52  ;;  %v1801_v32 = vadd.f32 -0.5, %v1140_v28  ;;  %v1802_v19 = vadd.f32 -0.5, %v1141_v50  ;;  %v1061_v59 = vmul.f32 0.5, %v1057_v10 }
 0x118   :  { %v1803_v44 = vadd.f32 -0.5, %v1142_v58  ;;  %v1147_v49 = vmul.f32 1000.0, %v1800_v17  ;;  %v1175_v31 = vsub.f32 %v3064_v11, %v1174_v38  ;;  %v1063_v47 = vadd.f32 %v1059_v55, %v1051_v61 }
 0x119   :  { %v1148_v30 = vmul.f32 1000.0, %v1801_v32  ;;  %v1149_v23 = vmul.f32 1000.0, %v1802_v19  ;;  %v1176_v8 = vsub.f32 %v3067_v16, %v1174_v38  ;;  %v1062_v25 = vmul.f32 0.5, %v1058_v37 }
 0x11a   :  { %2020 = vtanh.f32 %v1147_v49  ;;  %v1177_v57 = vsub.f32 %v3070_v24, %v1174_v38  ;;  %v1178_v27 = vsub.f32 %v3073_v22, %v1174_v38  ;;  %v1150_v39 = vmul.f32 1000.0, %v1803_v44 }
 0x11b   :  { %2022 = vtanh.f32 %v1148_v30  ;;  %v1179_v33 = vadd.f32 1.0, %v1175_v31  ;;  %v1180_v29 = vadd.f32 1.0, %v1176_v8  ;;  %v1064_v7 = vadd.f32 %v1060_v53, %v1052_v9 }
 0x11c   :  { %v2013_v56 = vpop.eup %2012  ;;  %2024 = vtanh.f32 %v1149_v23  ;;  %v1181_v43 = vadd.f32 1.0, %v1177_v57  ;;  %v1182_v18 = vadd.f32 1.0, %v1178_v27  ;;  %v1065_v13 = vadd.f32 %v1061_v59, %v1053_v41 }
 0x11d   :  { %v2015_v61 = vpop.eup %2014  ;;  %v1107_v52 = vadd.f32 1.0, %v2013_v56  ;;  %v3114_v10 = vmul.f32 0.5, %v1179_v33  ;;  %v3116_v62 = vmul.f32 0.5, %v1180_v29  ;;  %v1066_v28 = vadd.f32 %v1062_v25, %v1054_v0 }
 0x11e   :  { %v2017_v55 = vpop.eup %2016  ;;  %v1103_v38 = vadd.f32 %v1083_v21, %v1063_v47  ;;  %v3120_v50 = vmul.f32 0.5, %v1181_v43  ;;  %v3122_v37 = vmul.f32 0.5, %v1182_v18  ;;  %2026 = vtanh.f32 %v1150_v39 }
 0x11f   :  { %v2019_v9 = vpop.eup %2018  ;;  %v1187_v58 = vfloor.f32 %v3114_v10  ;;  %v1188_v41 = vfloor.f32 %v3116_v62  ;;  %v1226_v17 = vrot.slane %v3070_v24, %v2368_v35  ;;  %v1108_v53 = vadd.f32 1.0, %v2015_v61 }
 0x120   :  { %v1109_v32 = vadd.f32 1.0, %v2017_v55  ;;  %v1189_v0 = vfloor.f32 %v3120_v50  ;;  %v1190_v12 = vfloor.f32 %v3122_v37  ;;  %v1104_v21 = vadd.f32 %v1084_v45, %v1064_v7 }
 0x121   :  { %v1111_v19 = vmul.f32 0.5, %v1107_v52  ;;  %v1191_v59 = vsub.f32 %v3114_v10, %v1187_v58  ;;  %v1192_v44 = vsub.f32 %v3116_v62, %v1188_v41  ;;  %v1105_v49 = vadd.f32 %v1085_v26, %v1065_v13 }
 0x122   :  { %v1110_v31 = vadd.f32 1.0, %v2019_v9  ;;  %v1193_v47 = vsub.f32 %v3120_v50, %v1189_v0  ;;  %v1194_v1 = vsub.f32 %v3122_v37, %v1190_v12  ;;  %v1106_v45 = vadd.f32 %v1086_v54, %v1066_v28 }
 0x123   :  { %v1804_v30 = vadd.f32 -0.5, %v1191_v59  ;;  %v1805_v23 = vadd.f32 -0.5, %v1192_v44  ;;  %v1227_v8 = vsub.f32 %v3064_v11, %v1226_v17  ;;  %v1112_v25 = vmul.f32 0.5, %v1108_v53 }
 0x124   :  { %v1113_v57 = vmul.f32 0.5, %v1109_v32  ;;  %v1806_v63 = vadd.f32 -0.5, %v1193_v47  ;;  %v1807_v26 = vadd.f32 -0.5, %v1194_v1  ;;  %v1115_v27 = vadd.f32 %v1111_v19, %v1103_v38 }
 0x125   :  { %v1199_v39 = vmul.f32 1000.0, %v1804_v30  ;;  %v1200_v33 = vmul.f32 1000.0, %v1805_v23  ;;  %v1228_v29 = vsub.f32 %v3067_v16, %v1226_v17  ;;  %v1114_v56 = vmul.f32 0.5, %v1110_v31 }
 0x126   :  { %v1201_v7 = vmul.f32 1000.0, %v1806_v63  ;;  %v1202_v43 = vmul.f32 1000.0, %v1807_v26  ;;  %v1229_v18 = vsub.f32 %v3070_v24, %v1226_v17  ;;  %v1230_v54 = vsub.f32 %v3073_v22, %v1226_v17 }
 0x127   :  { %v2021_v48 = vpop.eup %2020  ;;  %2028 = vtanh.f32 %v1199_v39  ;;  %v1231_v61 = vadd.f32 1.0, %v1227_v8  ;;  %v1232_v13 = vadd.f32 1.0, %v1228_v29  ;;  %v1116_v55 = vadd.f32 %v1112_v25, %v1104_v21 }
 0x128   :  { %v2023_v52 = vpop.eup %2022  ;;  %v1117_v28 = vadd.f32 %v1113_v57, %v1105_v49  ;;  %2030 = vtanh.f32 %v1200_v33  ;;  %v1233_v38 = vadd.f32 1.0, %v1229_v18  ;;  %v1159_v53 = vadd.f32 1.0, %v2021_v48 }
 0x129   :  { %v2025_v9 = vpop.eup %2024  ;;  %2032 = vtanh.f32 %v1201_v7  ;;  %v1234_v32 = vadd.f32 1.0, %v1230_v54  ;;  %v3152_v19 = vmul.f32 0.5, %v1231_v61  ;;  %v1118_v59 = vadd.f32 %v1114_v56, %v1106_v45 }
 0x12a   :  { %2034 = vtanh.f32 %v1202_v43  ;;  %v3154_v44 = vmul.f32 0.5, %v1232_v13  ;;  %v1278_v17 = vrot.slane %v3073_v22, %v2187_v2  ;;  %v1155_v31 = vadd.f32 %v1135_v6, %v1115_v27 }
 0x12b   :  { %v1160_v21 = vadd.f32 1.0, %v2023_v52  ;;  %v3160_v49 = vmul.f32 0.5, %v1233_v38  ;;  %v3162_v47 = vmul.f32 0.5, %v1234_v32  ;;  %v2027_v1 = vpop.eup %2026  ;;  %v1156_v30 = vadd.f32 %v1136_v51, %v1116_v55 }
 0x12c   :  { %v1161_v23 = vadd.f32 1.0, %v2025_v9  ;;  %v1239_v45 = vfloor.f32 %v3152_v19  ;;  %v1240_v8 = vfloor.f32 %v3154_v44  ;;  %v1157_v2 = vadd.f32 %v1137_v20, %v1117_v28 }
 0x12d   :  { %v1163_v25 = vmul.f32 0.5, %v1159_v53  ;;  %v1241_v40 = vfloor.f32 %v3160_v49  ;;  %v1242_v6 = vfloor.f32 %v3162_v47  ;;  %v1158_v57 = vadd.f32 %v1138_v60, %v1118_v59 }
 0x12e   :  { %v1243_v36 = vsub.f32 %v3152_v19, %v1239_v45  ;;  %v1244_v51 = vsub.f32 %v3154_v44, %v1240_v8  ;;  %v1279_v63 = vsub.f32 %v3064_v11, %v1278_v17  ;;  %v1162_v46 = vadd.f32 1.0, %v2027_v1 }
 0x12f   :  { %v1164_v20 = vmul.f32 0.5, %v1160_v21  ;;  %v1245_v26 = vsub.f32 %v3160_v49, %v1241_v40  ;;  %v1246_v34 = vsub.f32 %v3162_v47, %v1242_v6  ;;  %v1165_v60 = vmul.f32 0.5, %v1161_v23 }
 0x130   :  { %v1808_v27 = vadd.f32 -0.5, %v1243_v36  ;;  %v1809_v39 = vadd.f32 -0.5, %v1244_v51  ;;  %v1280_v33 = vsub.f32 %v3067_v16, %v1278_v17  ;;  %v1167_v29 = vadd.f32 %v1163_v25, %v1155_v31 }
 0x131   :  { %v1810_v56 = vadd.f32 -0.5, %v1245_v26  ;;  %v1811_v7 = vadd.f32 -0.5, %v1246_v34  ;;  %v1281_v43 = vsub.f32 %v3070_v24, %v1278_v17  ;;  %v1282_v54 = vsub.f32 %v3073_v22, %v1278_v17 }
 0x132   :  { %v1251_v18 = vmul.f32 1000.0, %v1808_v27  ;;  %v1252_v48 = vmul.f32 1000.0, %v1809_v39  ;;  %v1283_v61 = vadd.f32 1.0, %v1279_v63  ;;  %v1284_v55 = vadd.f32 1.0, %v1280_v33 }
 0x133   :  { %v1253_v13 = vmul.f32 1000.0, %v1810_v56  ;;  %v1254_v52 = vmul.f32 1000.0, %v1811_v7  ;;  %v1285_v28 = vadd.f32 1.0, %v1281_v43  ;;  %v1166_v9 = vmul.f32 0.5, %v1162_v46 }
 0x134   :  { %v2029_v38 = vpop.eup %2028  ;;  %2036 = vtanh.f32 %v1251_v18  ;;  %v1286_v53 = vadd.f32 1.0, %v1282_v54  ;;  %v3190_v32 = vmul.f32 0.5, %v1283_v61  ;;  %v1168_v31 = vadd.f32 %v1164_v20, %v1156_v30 }
 0x135   :  { %v2031_v59 = vpop.eup %2030  ;;  %2038 = vtanh.f32 %v1252_v48  ;;  %v3192_v21 = vmul.f32 0.5, %v1284_v55  ;;  %v3194_v1 = vmul.f32 0.5, %v1285_v28  ;;  %v1211_v17 = vadd.f32 1.0, %v2029_v38 }
 0x136   :  { %v2033_v23 = vpop.eup %2032  ;;  %2040 = vtanh.f32 %v1253_v13  ;;  %v3196_v25 = vmul.f32 0.5, %v1286_v53  ;;  %v1291_v36 = vfloor.f32 %v3190_v32  ;;  %v1169_v63 = vadd.f32 %v1165_v60, %v1157_v2 }
 0x137   :  { %v2035_v51 = vpop.eup %2034  ;;  %v1212_v46 = vadd.f32 1.0, %v2031_v59  ;;  %2042 = vtanh.f32 %v1254_v52  ;;  %v1292_v26 = vfloor.f32 %v3192_v21  ;;  %v1207_v30 = vadd.f32 %v1187_v58, %v1167_v29 }
 0x138   :  { %v1213_v20 = vadd.f32 1.0, %v2033_v23  ;;  %v1293_v34 = vfloor.f32 %v3194_v1  ;;  %v1294_v27 = vfloor.f32 %v3196_v25  ;;  %v1170_v39 = vadd.f32 %v1166_v9, %v1158_v57 }
 0x139   :  { %v1295_v33 = vsub.f32 %v3190_v32, %v1291_v36  ;;  %v1296_v2 = vsub.f32 %v3192_v21, %v1292_v26  ;;  %v1330_v60 = vrot.slane %v3073_v22, %v2190_v3  ;;  %v1214_v56 = vadd.f32 1.0, %v2035_v51 }
 0x13a   :  { %v1215_v10 = vmul.f32 0.5, %v1211_v17  ;;  %v1297_v58 = vsub.f32 %v3194_v1, %v1293_v34  ;;  %v1298_v57 = vsub.f32 %v3196_v25, %v1294_v27  ;;  %v1208_v29 = vadd.f32 %v1188_v41, %v1168_v31 }
 0x13b   :  { %v1216_v7 = vmul.f32 0.5, %v1212_v46  ;;  %v1812_v43 = vadd.f32 -0.5, %v1295_v33  ;;  %v1813_v18 = vadd.f32 -0.5, %v1296_v2  ;;  %v1209_v48 = vadd.f32 %v1189_v0, %v1169_v63 }
 0x13c   :  { %v1217_v3 = vmul.f32 0.5, %v1213_v20  ;;  %v1814_v54 = vadd.f32 -0.5, %v1297_v58  ;;  %v1815_v61 = vadd.f32 -0.5, %v1298_v57  ;;  %v1210_v13 = vadd.f32 %v1190_v12, %v1170_v39 }
 0x13d   :  { %v1303_v52 = vmul.f32 1000.0, %v1812_v43  ;;  %v1304_v55 = vmul.f32 1000.0, %v1813_v18  ;;  %v1331_v28 = vsub.f32 %v3064_v11, %v1330_v60  ;;  %v1218_v38 = vmul.f32 0.5, %v1214_v56 }
 0x13e   :  { %v1219_v9 = vadd.f32 %v1215_v10, %v1207_v30  ;;  %v1305_v62 = vmul.f32 1000.0, %v1814_v54  ;;  %v1332_v41 = vsub.f32 %v3067_v16, %v1330_v60  ;;  %v1220_v53 = vadd.f32 %v1216_v7, %v1208_v29 }
 0x13f   :  { %v1333_v59 = vsub.f32 %v3070_v24, %v1330_v60  ;;  %v1334_v50 = vsub.f32 %v3073_v22, %v1330_v60  ;;  %v1335_v0 = vadd.f32 1.0, %v1331_v28  ;;  %v1221_v31 = vadd.f32 %v1217_v3, %v1209_v48 }
 0x140   :  { %v1306_v23 = vmul.f32 1000.0, %v1815_v61  ;;  %2044 = vtanh.f32 %v1303_v52  ;;  %v1336_v37 = vadd.f32 1.0, %v1332_v41  ;;  %v1259_v30 = vadd.f32 %v1239_v45, %v1219_v9 }
 0x141   :  { %v2037_v12 = vpop.eup %2036  ;;  %2046 = vtanh.f32 %v1304_v55  ;;  %v1337_v17 = vadd.f32 1.0, %v1333_v59  ;;  %v1338_v51 = vadd.f32 1.0, %v1334_v50  ;;  %v3228_v63 = vmul.f32 0.5, %v1335_v0 }
 0x142   :  { %v2039_v46 = vpop.eup %2038  ;;  %v1263_v20 = vadd.f32 1.0, %v2037_v12  ;;  %2048 = vtanh.f32 %v1305_v62  ;;  %v3232_v39 = vmul.f32 0.5, %v1336_v37  ;;  %v1222_v2 = vadd.f32 %v1218_v38, %v1210_v13 }
 0x143   :  { %v2041_v33 = vpop.eup %2040  ;;  %v3234_v60 = vmul.f32 0.5, %v1337_v17  ;;  %v3236_v56 = vmul.f32 0.5, %v1338_v51  ;;  %v1343_v10 = vfloor.f32 %v3228_v63  ;;  %v1260_v57 = vadd.f32 %v1240_v8, %v1220_v53 }
 0x144   :  { %v2043_v58 = vpop.eup %2042  ;;  %2050 = vtanh.f32 %v1306_v23  ;;  %v1344_v19 = vfloor.f32 %v3232_v39  ;;  %v1382_v45 = vrot.slane %v3073_v22, %v2193_v4  ;;  %v1264_v29 = vadd.f32 1.0, %v2039_v46 }
 0x145   :  { %v1265_v7 = vadd.f32 1.0, %v2041_v33  ;;  %v1345_v43 = vfloor.f32 %v3234_v60  ;;  %v1346_v18 = vfloor.f32 %v3236_v56  ;;  %v1261_v48 = vadd.f32 %v1241_v40, %v1221_v31 }
 0x146   :  { %v1267_v3 = vmul.f32 0.5, %v1263_v20  ;;  %v1347_v44 = vsub.f32 %v3228_v63, %v1343_v10  ;;  %v1348_v8 = vsub.f32 %v3232_v39, %v1344_v19  ;;  %v1262_v4 = vadd.f32 %v1242_v6, %v1222_v2 }
 0x147   :  { %v1266_v54 = vadd.f32 1.0, %v2043_v58  ;;  %v1349_v61 = vsub.f32 %v3234_v60, %v1345_v43  ;;  %v1350_v49 = vsub.f32 %v3236_v56, %v1346_v18  ;;  %v1383_v52 = vsub.f32 %v3064_v11, %v1382_v45 }
 0x148   :  { %v1816_v40 = vadd.f32 -0.5, %v1347_v44  ;;  %v1817_v13 = vadd.f32 -0.5, %v1348_v8  ;;  %v1384_v55 = vsub.f32 %v3067_v16, %v1382_v45  ;;  %v1268_v28 = vmul.f32 0.5, %v1264_v29 }
 0x149   :  { %v1269_v38 = vmul.f32 0.5, %v1265_v7  ;;  %v1818_v9 = vadd.f32 -0.5, %v1349_v61  ;;  %v1819_v47 = vadd.f32 -0.5, %v1350_v49  ;;  %v1271_v6 = vadd.f32 %v1267_v3, %v1259_v30 }
 0x14a   :  { %v1355_v62 = vmul.f32 1000.0, %v1816_v40  ;;  %v1356_v41 = vmul.f32 1000.0, %v1817_v13  ;;  %v1385_v53 = vsub.f32 %v3070_v24, %v1382_v45  ;;  %v1270_v59 = vmul.f32 0.5, %v1266_v54 }
 0x14b   :  { %v1357_v50 = vmul.f32 1000.0, %v1818_v9  ;;  %v1358_v0 = vmul.f32 1000.0, %v1819_v47  ;;  %v1386_v31 = vsub.f32 %v3073_v22, %v1382_v45  ;;  %v1387_v23 = vadd.f32 1.0, %v1383_v52 }
 0x14c   :  { %2052 = vtanh.f32 %v1355_v62  ;;  %v1388_v37 = vadd.f32 1.0, %v1384_v55  ;;  %v1389_v12 = vadd.f32 1.0, %v1385_v53  ;;  %v1272_v51 = vadd.f32 %v1268_v28, %v1260_v57 }
 0x14d   :  { %v2045_v17 = vpop.eup %2044  ;;  %2054 = vtanh.f32 %v1356_v41  ;;  %v1390_v46 = vadd.f32 1.0, %v1386_v31  ;;  %v1273_v33 = vadd.f32 %v1269_v38, %v1261_v48  ;;  %v3266_v30 = vmul.f32 0.5, %v1387_v23 }
 0x14e   :  { %v2047_v20 = vpop.eup %2046  ;;  %2056 = vtanh.f32 %v1357_v50  ;;  %v3268_v2 = vmul.f32 0.5, %v1388_v37  ;;  %v1274_v29 = vadd.f32 %v1270_v59, %v1262_v4  ;;  %v1311_v45 = vadd.f32 %v1291_v36, %v1271_v6 }
 0x14f   :  { %v2049_v58 = vpop.eup %2048  ;;  %v3272_v7 = vmul.f32 0.5, %v1389_v12  ;;  %v1434_v3 = vrot.slane %v3073_v22, %v2196_v5  ;;  %v1315_v57 = vadd.f32 1.0, %v2045_v17  ;;  %2058 = vtanh.f32 %v1358_v0 }
 0x150   :  { %v3276_v44 = vmul.f32 0.5, %v1390_v46  ;;  %v1395_v48 = vfloor.f32 %v3266_v30  ;;  %v1312_v54 = vadd.f32 %v1292_v26, %v1272_v51  ;;  %v1316_v61 = vadd.f32 1.0, %v2047_v20 }
 0x151   :  { %v2051_v8 = vpop.eup %2050  ;;  %v1396_v4 = vfloor.f32 %v3268_v2  ;;  %v1397_v32 = vfloor.f32 %v3272_v7  ;;  %v1313_v36 = vadd.f32 %v1293_v34, %v1273_v33  ;;  %v1317_v49 = vadd.f32 1.0, %v2049_v58 }
 0x152   :  { %v1398_v5 = vfloor.f32 %v3276_v44  ;;  %v1399_v40 = vsub.f32 %v3266_v30, %v1395_v48  ;;  %v1314_v13 = vadd.f32 %v1294_v27, %v1274_v29  ;;  %v1435_v1 = vsub.f32 %v3064_v11, %v1434_v3 }
 0x153   :  { %v1400_v21 = vsub.f32 %v3268_v2, %v1396_v4  ;;  %v1401_v26 = vsub.f32 %v3272_v7, %v1397_v32  ;;  %v1318_v34 = vadd.f32 1.0, %v2051_v8  ;;  %v1319_v52 = vmul.f32 0.5, %v1315_v57 }
 0x154   :  { %v1402_v55 = vsub.f32 %v3276_v44, %v1398_v5  ;;  %v1820_v28 = vadd.f32 -0.5, %v1399_v40  ;;  %v1320_v38 = vmul.f32 0.5, %v1316_v61  ;;  %v1436_v9 = vsub.f32 %v3067_v16, %v1434_v3 }
 0x155   :  { %v1821_v25 = vadd.f32 -0.5, %v1400_v21  ;;  %v1822_v27 = vadd.f32 -0.5, %v1401_v26  ;;  %v1321_v47 = vmul.f32 0.5, %v1317_v49  ;;  %v1437_v41 = vsub.f32 %v3070_v24, %v1434_v3 }
 0x156   :  { %v1823_v6 = vadd.f32 -0.5, %v1402_v55  ;;  %v1407_v62 = vmul.f32 1000.0, %v1820_v28  ;;  %v1438_v50 = vsub.f32 %v3073_v22, %v1434_v3  ;;  %v1439_v0 = vadd.f32 1.0, %v1435_v1 }
 0x157   :  { %v1408_v53 = vmul.f32 1000.0, %v1821_v25  ;;  %v1409_v59 = vmul.f32 1000.0, %v1822_v27  ;;  %v1440_v23 = vadd.f32 1.0, %v1436_v9  ;;  %v1441_v37 = vadd.f32 1.0, %v1437_v41 }
 0x158   :  { %v1410_v31 = vmul.f32 1000.0, %v1823_v6  ;;  %2060 = vtanh.f32 %v1407_v62  ;;  %v1323_v17 = vadd.f32 %v1319_v52, %v1311_v45  ;;  %v1442_v51 = vadd.f32 1.0, %v1438_v50 }
 0x159   :  { %v2053_v12 = vpop.eup %2052  ;;  %2062 = vtanh.f32 %v1408_v53  ;;  %v3304_v46 = vmul.f32 0.5, %v1439_v0  ;;  %v1322_v33 = vmul.f32 0.5, %v1318_v34  ;;  %v3306_v58 = vmul.f32 0.5, %v1440_v23 }
 0x15a   :  { %v2055_v20 = vpop.eup %2054  ;;  %2064 = vtanh.f32 %v1409_v59  ;;  %v3308_v29 = vmul.f32 0.5, %v1441_v37  ;;  %v1367_v3 = vadd.f32 1.0, %v2053_v12  ;;  %v3310_v8 = vmul.f32 0.5, %v1442_v51 }
 0x15b   :  { %v2057_v57 = vpop.eup %2056  ;;  %2066 = vtanh.f32 %v1410_v31  ;;  %v1447_v61 = vfloor.f32 %v3304_v46  ;;  %v1324_v49 = vadd.f32 %v1320_v38, %v1312_v54  ;;  %v1325_v45 = vadd.f32 %v1321_v47, %v1313_v36 }
 0x15c   :  { %v1448_v40 = vfloor.f32 %v3306_v58  ;;  %v1449_v21 = vfloor.f32 %v3308_v29  ;;  %v2059_v26 = vpop.eup %2058  ;;  %v1368_v1 = vadd.f32 1.0, %v2055_v20  ;;  %v1369_v34 = vadd.f32 1.0, %v2057_v57 }
 0x15d   :  { %v1450_v52 = vfloor.f32 %v3310_v8  ;;  %v1451_v55 = vsub.f32 %v3304_v46, %v1447_v61  ;;  %v1486_v36 = vrot.slane %v3073_v22, %v2219_v14  ;;  %v1326_v38 = vadd.f32 %v1322_v33, %v1314_v13 }
 0x15e   :  { %v1452_v28 = vsub.f32 %v3306_v58, %v1448_v40  ;;  %v1453_v54 = vsub.f32 %v3308_v29, %v1449_v21  ;;  %v1363_v25 = vadd.f32 %v1343_v10, %v1323_v17  ;;  %v1371_v27 = vmul.f32 0.5, %v1367_v3 }
 0x15f   :  { %v1824_v9 = vadd.f32 -0.5, %v1451_v55  ;;  %v1364_v47 = vadd.f32 %v1344_v19, %v1324_v49  ;;  %v1370_v6 = vadd.f32 1.0, %v2059_v26  ;;  %v1365_v41 = vadd.f32 %v1345_v43, %v1325_v45 }
 0x160   :  { %v1825_v62 = vadd.f32 -0.5, %v1452_v28  ;;  %v1372_v53 = vmul.f32 0.5, %v1368_v1  ;;  %v1373_v59 = vmul.f32 0.5, %v1369_v34  ;;  %v1454_v14 = vsub.f32 %v3310_v8, %v1450_v52 }
 0x161   :  { %v1826_v13 = vadd.f32 -0.5, %v1453_v54  ;;  %v1459_v50 = vmul.f32 1000.0, %v1824_v9  ;;  %v1487_v63 = vsub.f32 %v3064_v11, %v1486_v36  ;;  %v1366_v10 = vadd.f32 %v1346_v18, %v1326_v38 }
 0x162   :  { %v1375_v39 = vadd.f32 %v1371_v27, %v1363_v25  ;;  %v1460_v19 = vmul.f32 1000.0, %v1825_v62  ;;  %v1488_v0 = vsub.f32 %v3067_v16, %v1486_v36  ;;  %v1374_v31 = vmul.f32 0.5, %v1370_v6 }
 0x163   :  { %v1489_v60 = vsub.f32 %v3070_v24, %v1486_v36  ;;  %v1490_v43 = vsub.f32 %v3073_v22, %v1486_v36  ;;  %v1491_v23 = vadd.f32 1.0, %v1487_v63  ;;  %v1376_v12 = vadd.f32 %v1372_v53, %v1364_v47 }
 0x164   :  { %v1377_v17 = vadd.f32 %v1373_v59, %v1365_v41  ;;  %v1827_v51 = vadd.f32 -0.5, %v1454_v14  ;;  %v1492_v20 = vadd.f32 1.0, %v1488_v0  ;;  %v1461_v57 = vmul.f32 1000.0, %v1826_v13 }
 0x165   :  { %v2061_v37 = vpop.eup %2060  ;;  %2068 = vtanh.f32 %v1459_v50  ;;  %v1493_v56 = vadd.f32 1.0, %v1489_v60  ;;  %v1494_v18 = vadd.f32 1.0, %v1490_v43  ;;  %v3342_v45 = vmul.f32 0.5, %v1491_v23 }
 0x166   :  { %v2063_v33 = vpop.eup %2062  ;;  %v1419_v49 = vadd.f32 1.0, %v2061_v37  ;;  %2070 = vtanh.f32 %v1460_v19  ;;  %v3344_v26 = vmul.f32 0.5, %v1492_v20  ;;  %v1538_v54 = vrot.slane %v3073_v22, %v2222_v15 }
 0x167   :  { %v2065_v3 = vpop.eup %2064  ;;  %v1420_v34 = vadd.f32 1.0, %v2063_v33  ;;  %v3346_v55 = vmul.f32 0.5, %v1493_v56  ;;  %v3348_v28 = vmul.f32 0.5, %v1494_v18  ;;  %v1378_v36 = vadd.f32 %v1374_v31, %v1366_v10 }
 0x168   :  { %v2067_v1 = vpop.eup %2066  ;;  %v1421_v38 = vadd.f32 1.0, %v2065_v3  ;;  %v1499_v25 = vfloor.f32 %v3342_v45  ;;  %v1500_v27 = vfloor.f32 %v3344_v26  ;;  %v1462_v47 = vmul.f32 1000.0, %v1827_v51 }
 0x169   :  { %v1422_v9 = vadd.f32 1.0, %v2067_v1  ;;  %v1501_v6 = vfloor.f32 %v3346_v55  ;;  %v1502_v62 = vfloor.f32 %v3348_v28  ;;  %v1415_v41 = vadd.f32 %v1395_v48, %v1375_v39 }
 0x16a   :  { %v1416_v53 = vadd.f32 %v1396_v4, %v1376_v12  ;;  %v1423_v59 = vmul.f32 0.5, %v1419_v49  ;;  %v1503_v15 = vsub.f32 %v3342_v45, %v1499_v25  ;;  %v1424_v14 = vmul.f32 0.5, %v1420_v34 }
 0x16b   :  { %2072 = vtanh.f32 %v1461_v57  ;;  %v1504_v13 = vsub.f32 %v3344_v26, %v1500_v27  ;;  %v1539_v50 = vsub.f32 %v3064_v11, %v1538_v54  ;;  %v1417_v30 = vadd.f32 %v1397_v32, %v1377_v17 }
 0x16c   :  { %v1418_v2 = vadd.f32 %v1398_v5, %v1378_v36  ;;  %v1425_v48 = vmul.f32 0.5, %v1421_v38  ;;  %v1505_v4 = vsub.f32 %v3346_v55, %v1501_v6  ;;  %v1426_v63 = vmul.f32 0.5, %v1422_v9 }
 0x16d   :  { %2074 = vtanh.f32 %v1462_v47  ;;  %v1506_v10 = vsub.f32 %v3348_v28, %v1502_v62  ;;  %v1540_v39 = vsub.f32 %v3067_v16, %v1538_v54  ;;  %v1427_v19 = vadd.f32 %v1423_v59, %v1415_v41 }
 0x16e   :  { %v1828_v0 = vadd.f32 -0.5, %v1503_v15  ;;  %v1541_v7 = vsub.f32 %v3070_v24, %v1538_v54  ;;  %v1428_v32 = vadd.f32 %v1424_v14, %v1416_v53  ;;  %v1829_v44 = vadd.f32 -0.5, %v1504_v13 }
 0x16f   :  { %v1542_v5 = vsub.f32 %v3073_v22, %v1538_v54  ;;  %v1543_v31 = vadd.f32 1.0, %v1539_v50  ;;  %v1429_v60 = vadd.f32 %v1425_v48, %v1417_v30  ;;  %v1830_v43 = vadd.f32 -0.5, %v1505_v4 }
 0x170   :  { %v1544_v23 = vadd.f32 1.0, %v1540_v39  ;;  %v1545_v37 = vadd.f32 1.0, %v1541_v7  ;;  %v1430_v12 = vadd.f32 %v1426_v63, %v1418_v2  ;;  %v1831_v17 = vadd.f32 -0.5, %v1506_v10 }
 0x171   :  { %v1546_v51 = vadd.f32 1.0, %v1542_v5  ;;  %v3380_v20 = vmul.f32 0.5, %v1543_v31  ;;  %v1511_v57 = vmul.f32 1000.0, %v1828_v0  ;;  %v1590_v18 = vrot.slane %v3073_v22, %v2365_v42 }
 0x172   :  { %v2069_v33 = vpop.eup %2068  ;;  %v3382_v56 = vmul.f32 0.5, %v1544_v23  ;;  %v1467_v49 = vadd.f32 %v1447_v61, %v1427_v19  ;;  %v3390_v1 = vadd.f32 %v1448_v40, %v1428_v32  ;;  %v1512_v34 = vmul.f32 1000.0, %v1829_v44 }
 0x173   :  { %v2071_v3 = vpop.eup %2070  ;;  %v3392_v54 = vmul.f32 0.5, %v1545_v37  ;;  %v3396_v36 = vadd.f32 %v1449_v21, %v1429_v60  ;;  %v1513_v38 = vmul.f32 1000.0, %v1830_v43  ;;  %v3398_v9 = vmul.f32 0.5, %v1546_v51 }
 0x174   :  { %v1551_v42 = vfloor.f32 %v3380_v20  ;;  %v3403_v46 = vadd.f32 %v1450_v52, %v1430_v12  ;;  %v1514_v61 = vmul.f32 1000.0, %v1831_v17  ;;  %v1552_v58 = vfloor.f32 %v3382_v56 }
 0x175   :  { %v1553_v40 = vfloor.f32 %v3392_v54  ;;  %v1471_v47 = vadd.f32 1.0, %v2069_v33  ;;  %2076 = vtanh.f32 %v1511_v57  ;;  %v1554_v29 = vfloor.f32 %v3398_v9 }
 0x176   :  { %v1555_v21 = vsub.f32 %v3380_v20, %v1551_v42  ;;  %v1472_v41 = vadd.f32 1.0, %v2071_v3  ;;  %2078 = vtanh.f32 %v1512_v34  ;;  %v1556_v8 = vsub.f32 %v3382_v56, %v1552_v58 }
 0x177   :  { %v1557_v52 = vsub.f32 %v3392_v54, %v1553_v40  ;;  %2080 = vtanh.f32 %v1513_v38  ;;  %v1558_v59 = vsub.f32 %v3398_v9, %v1554_v29  ;;  %v1591_v14 = vsub.f32 %v3064_v11, %v1590_v18 }
 0x178   :  { %v2073_v53 = vpop.eup %2072  ;;  %v1832_v15 = vadd.f32 -0.5, %v1555_v21  ;;  %2082 = vtanh.f32 %v1514_v61  ;;  %v1833_v13 = vadd.f32 -0.5, %v1556_v8  ;;  %v1592_v30 = vsub.f32 %v3067_v16, %v1590_v18 }
 0x179   :  { %v1834_v50 = vadd.f32 -0.5, %v1557_v52  ;;  %v1835_v48 = vadd.f32 -0.5, %v1558_v59  ;;  %v1593_v63 = vsub.f32 %v3070_v24, %v1590_v18  ;;  %v1594_v10 = vsub.f32 %v3073_v22, %v1590_v18 }
 0x17a   :  { %v2075_v2 = vpop.eup %2074  ;;  %v1563_v4 = vmul.f32 1000.0, %v1832_v15  ;;  %v1473_v39 = vadd.f32 1.0, %v2073_v53  ;;  %v1564_v19 = vmul.f32 1000.0, %v1833_v13  ;;  %v1595_v0 = vadd.f32 1.0, %v1591_v14 }
 0x17b   :  { %v1596_v7 = vadd.f32 1.0, %v1592_v30  ;;  %v1475_v32 = vmul.f32 0.5, %v1471_v47  ;;  %v1565_v44 = vmul.f32 1000.0, %v1834_v50  ;;  %v1597_v5 = vadd.f32 1.0, %v1593_v63 }
 0x17c   :  { %v1598_v11 = vadd.f32 1.0, %v1594_v10  ;;  %v1474_v31 = vadd.f32 1.0, %v2075_v2  ;;  %v1566_v60 = vmul.f32 1000.0, %v1835_v48  ;;  %v3424_v43 = vmul.f32 0.5, %v1595_v0  ;;  %v2116_v10 = vld [vmem:[#allocation2] sm:$0xff]  ;;  %v2118_v0 = vld [vmem:[#allocation2 + $0x10] sm:$0xff] }
 0x17d   :  { %v3426_v16 = vmul.f32 0.5, %v1596_v7  ;;  %v1476_v23 = vmul.f32 0.5, %v1472_v41  ;;  %2084 = vtanh.f32 %v1563_v4  ;;  %v3428_v37 = vmul.f32 0.5, %v1597_v5 }
 0x17e   :  { %v3430_v24 = vmul.f32 0.5, %v1598_v11  ;;  %v1477_v12 = vmul.f32 0.5, %v1473_v39  ;;  %2086 = vtanh.f32 %v1564_v19  ;;  %v1603_v17 = vfloor.f32 %v3424_v43 }
 0x17f   :  { %v1604_v51 = vfloor.f32 %v3426_v16  ;;  %v1479_v33 = vadd.f32 %v1475_v32, %v1467_v49  ;;  %2088 = vtanh.f32 %v1565_v44  ;;  %v1605_v57 = vfloor.f32 %v3428_v37 }
 0x180   :  { %v1606_v18 = vfloor.f32 %v3430_v24  ;;  %v1478_v3 = vmul.f32 0.5, %v1474_v31  ;;  %2090 = vtanh.f32 %v1566_v60  ;;  %v1607_v34 = vsub.f32 %v3424_v43, %v1603_v17 }
 0x181   :  { %v1608_v38 = vsub.f32 %v3426_v16, %v1604_v51  ;;  %v1609_v61 = vsub.f32 %v3428_v37, %v1605_v57  ;;  %v1642_v47 = vrot.slane %v3073_v22, %v2368_v35  ;;  %v1480_v53 = vadd.f32 %v1476_v23, %v3390_v1  ;;  %v2117_v1 = vld [vmem:[#allocation2 + $0x8] sm:$0xff] }
 0x182   :  { %v1610_v49 = vsub.f32 %v3430_v24, %v1606_v18  ;;  %v2077_v21 = vpop.eup %2076  ;;  %v1836_v41 = vadd.f32 -0.5, %v1607_v34  ;;  %v1481_v59 = vadd.f32 %v1477_v12, %v3396_v36  ;;  %v1482_v50 = vadd.f32 %v1478_v3, %v3403_v46  ;;  %v2119_v46 = vld [vmem:[#allocation2 + $0x18] sm:$0xff] }
 0x183   :  { %v1837_v8 = vadd.f32 -0.5, %v1608_v38  ;;  %v2079_v52 = vpop.eup %2078  ;;  %v1838_v15 = vadd.f32 -0.5, %v1609_v61  ;;  %v1519_v30 = vadd.f32 %v1499_v25, %v1479_v33  ;;  %v1523_v35 = vadd.f32 1.0, %v2077_v21 }
 0x184   :  { %v1839_v14 = vadd.f32 -0.5, %v1610_v49  ;;  %v2081_v13 = vpop.eup %2080  ;;  %v1615_v2 = vmul.f32 1000.0, %v1836_v41  ;;  %v1643_v39 = vsub.f32 %v2116_v10, %v1642_v47  ;;  %v1524_v19 = vadd.f32 1.0, %v2079_v52 }
 0x185   :  { %v1616_v48 = vmul.f32 1000.0, %v1837_v8  ;;  %v2083_v4 = vpop.eup %2082  ;;  %v1617_v22 = vmul.f32 1000.0, %v1838_v15  ;;  %v1644_v36 = vsub.f32 %v2117_v1, %v1642_v47  ;;  %v1645_v7 = vsub.f32 %v2118_v0, %v1642_v47 }
 0x186   :  { %v1618_v63 = vmul.f32 1000.0, %v1839_v14  ;;  %2092 = vtanh.f32 %v1615_v2  ;;  %v1525_v32 = vadd.f32 1.0, %v2081_v13  ;;  %v1646_v44 = vsub.f32 %v2119_v46, %v1642_v47 }
 0x187   :  { %2094 = vtanh.f32 %v1616_v48  ;;  %v1647_v45 = vadd.f32 1.0, %v1643_v39  ;;  %v1526_v25 = vadd.f32 1.0, %v2083_v4  ;;  %v1648_v5 = vadd.f32 1.0, %v1644_v36 }
 0x188   :  { %2096 = vtanh.f32 %v1617_v22  ;;  %v1649_v11 = vadd.f32 1.0, %v1645_v7  ;;  %v1527_v31 = vmul.f32 0.5, %v1523_v35  ;;  %v1650_v60 = vadd.f32 1.0, %v1646_v44 }
 0x189   :  { %2098 = vtanh.f32 %v1618_v63  ;;  %v3455_v23 = vmul.f32 0.5, %v1647_v45  ;;  %v1520_v33 = vadd.f32 %v1500_v27, %v1480_v53  ;;  %v1528_v3 = vmul.f32 0.5, %v1524_v19 }
 0x18a   :  { %v2085_v12 = vpop.eup %2084  ;;  %v3459_v34 = vmul.f32 0.5, %v1648_v5  ;;  %v3461_v38 = vmul.f32 0.5, %v1649_v11  ;;  %v1521_v49 = vadd.f32 %v1501_v6, %v1481_v59  ;;  %v1529_v47 = vmul.f32 0.5, %v1525_v32 }
 0x18b   :  { %v2087_v61 = vpop.eup %2086  ;;  %v3465_v21 = vmul.f32 0.5, %v1650_v60  ;;  %v1655_v41 = vfloor.f32 %v3455_v23  ;;  %v1522_v52 = vadd.f32 %v1502_v62, %v1482_v50  ;;  %v1530_v26 = vmul.f32 0.5, %v1526_v25 }
 0x18c   :  { %v2089_v8 = vpop.eup %2088  ;;  %v1656_v27 = vfloor.f32 %v3459_v34  ;;  %v1657_v53 = vfloor.f32 %v3461_v38  ;;  %v1531_v14 = vadd.f32 %v1527_v31, %v1519_v30  ;;  %v1575_v13 = vadd.f32 1.0, %v2085_v12 }
 0x18d   :  { %v2091_v15 = vpop.eup %2090  ;;  %v1658_v55 = vfloor.f32 %v3465_v21  ;;  %v1659_v6 = vsub.f32 %v3455_v23, %v1655_v41  ;;  %v1532_v59 = vadd.f32 %v1528_v3, %v1520_v33  ;;  %v1576_v2 = vadd.f32 1.0, %v2087_v61 }
 0x18e   :  { %v1660_v28 = vsub.f32 %v3459_v34, %v1656_v27  ;;  %v1661_v62 = vsub.f32 %v3461_v38, %v1657_v53  ;;  %v1533_v50 = vadd.f32 %v1529_v47, %v1521_v49  ;;  %v1577_v48 = vadd.f32 1.0, %v2089_v8 }
 0x18f   :  { %v1662_v30 = vsub.f32 %v3465_v21, %v1658_v55  ;;  %v1840_v4 = vadd.f32 -0.5, %v1659_v6  ;;  %v1534_v35 = vadd.f32 %v1530_v26, %v1522_v52  ;;  %v1578_v22 = vadd.f32 1.0, %v2091_v15 }
 0x190   :  { %v1841_v63 = vadd.f32 -0.5, %v1660_v28  ;;  %v1842_v10 = vadd.f32 -0.5, %v1661_v62  ;;  %v1571_v39 = vadd.f32 %v1551_v42, %v1531_v14  ;;  %v1579_v19 = vmul.f32 0.5, %v1575_v13 }
 0x191   :  { %v1843_v1 = vadd.f32 -0.5, %v1662_v30  ;;  %v1667_v36 = vmul.f32 1000.0, %v1840_v4  ;;  %v1572_v0 = vadd.f32 %v1552_v58, %v1532_v59  ;;  %v1580_v7 = vmul.f32 0.5, %v1576_v2 }
 0x192   :  { %v1668_v32 = vmul.f32 1000.0, %v1841_v63  ;;  %v1669_v46 = vmul.f32 1000.0, %v1842_v10  ;;  %v1573_v45 = vadd.f32 %v1553_v40, %v1533_v50  ;;  %v1581_v25 = vmul.f32 0.5, %v1577_v48 }
 0x193   :  { %v2093_v44 = vpop.eup %2092  ;;  %v1670_v5 = vmul.f32 1000.0, %v1843_v1  ;;  %2100 = vtanh.f32 %v1667_v36  ;;  %v1574_v20 = vadd.f32 %v1554_v29, %v1534_v35  ;;  %v1582_v42 = vmul.f32 0.5, %v1578_v22 }
 0x194   :  { %v2095_v11 = vpop.eup %2094  ;;  %2102 = vtanh.f32 %v1668_v32  ;;  %v1583_v60 = vadd.f32 %v1579_v19, %v1571_v39  ;;  %v1627_v56 = vadd.f32 1.0, %v2093_v44  ;;  %v1584_v12 = vadd.f32 %v1580_v7, %v1572_v0 }
 0x195   :  { %v2097_v31 = vpop.eup %2096  ;;  %2104 = vtanh.f32 %v1669_v46  ;;  %v1628_v33 = vadd.f32 1.0, %v2095_v11  ;;  %v1585_v3 = vadd.f32 %v1581_v25, %v1573_v45  ;;  %v1586_v40 = vadd.f32 %v1582_v42, %v1574_v20 }
 0x196   :  { %v2099_v58 = vpop.eup %2098  ;;  %2106 = vtanh.f32 %v1670_v5  ;;  %v1629_v54 = vadd.f32 1.0, %v2097_v31  ;;  %v1623_v49 = vadd.f32 %v1603_v17, %v1583_v60  ;;  %v1631_v47 = vmul.f32 0.5, %v1627_v56 }
 0x197   :  { %v1630_v61 = vadd.f32 1.0, %v2099_v58  ;;  %v1624_v9 = vadd.f32 %v1604_v51, %v1584_v12  ;;  %v1632_v29 = vmul.f32 0.5, %v1628_v33  ;;  %v1625_v8 = vadd.f32 %v1605_v57, %v1585_v3 }
 0x198   :  { %v1633_v52 = vmul.f32 0.5, %v1629_v54  ;;  %v1626_v26 = vadd.f32 %v1606_v18, %v1586_v40  ;;  %v1635_v14 = vadd.f32 %v1631_v47, %v1623_v49 }
 0x199   :  { %v1634_v15 = vmul.f32 0.5, %v1630_v61  ;;  %v1636_v13 = vadd.f32 %v1632_v29, %v1624_v9 }
 0x19a   :  { %v1637_v6 = vadd.f32 %v1633_v52, %v1625_v8  ;;  %v1675_v17 = vadd.f32 %v1655_v41, %v1635_v14 }
 0x19b   :  { %v1638_v2 = vadd.f32 %v1634_v15, %v1626_v26  ;;  %v1676_v37 = vadd.f32 %v1656_v27, %v1636_v13 }
 0x19c   :  { %v1677_v24 = vadd.f32 %v1657_v53, %v1637_v6 }
 0x19d   :  { %v1678_v50 = vadd.f32 %v1658_v55, %v1638_v2 }
 0x1a0   :  { %v2101_v59 = vpop.eup %2100 }
 0x1a1   :  { %v2103_v43 = vpop.eup %2102  ;;  %v1679_v16 = vadd.f32 1.0, %v2101_v59 }
 0x1a2   :  { %v2105_v51 = vpop.eup %2104  ;;  %v1680_v57 = vadd.f32 1.0, %v2103_v43 }
 0x1a3   :  { %v2107_v28 = vpop.eup %2106  ;;  %v1681_v18 = vadd.f32 1.0, %v2105_v51  ;;  %v1683_v62 = vmul.f32 0.5, %v1679_v16 }
 0x1a4   :  { %v1682_v48 = vadd.f32 1.0, %v2107_v28  ;;  %v1684_v30 = vmul.f32 0.5, %v1680_v57 }
 0x1a5   :  { %v1685_v4 = vmul.f32 0.5, %v1681_v18  ;;  %v1687_v23 = vadd.f32 %v1683_v62, %v1675_v17 }
 0x1a6   :  { %v1686_v41 = vmul.f32 0.5, %v1682_v48  ;;  %v1688_v35 = vadd.f32 %v1684_v30, %v1676_v37 }
 0x1a7   :  { %v1689_v22 = vadd.f32 %v1685_v4, %v1677_v24  ;;  %v1844_v63 = vadd.f32 -0.5, %v1687_v23 }
 0x1a8   :  { %v1690_v34 = vadd.f32 %v1686_v41, %v1678_v50  ;;  %v1845_v27 = vadd.f32 -0.5, %v1688_v35 }
 0x1a9   :  { %v1846_v10 = vadd.f32 -0.5, %v1689_v22  ;;  %1695 = vst [vmem:[#allocation5] sm:$0xff] %v1844_v63 }
 0x1aa   :  { %v1847_v38 = vadd.f32 -0.5, %v1690_v34  ;;  %1696 = vst [vmem:[#allocation5 + $0x8] sm:$0xff] %v1845_v27 }
 0x1ab   :  { %1697 = vst [vmem:[#allocation5 + $0x10] sm:$0xff] %v1846_v10 }
 0x1ac   :  { %1698 = vst [vmem:[#allocation5 + $0x18] sm:$0xff] %v1847_v38 }
 0x1ad   :  { %2151 = shalt.err (!%p2148_p9)
}
 0x1ae   :  { %1710 = dma.vmem_to_hbm [thread:$0]  %s1705_s13, 512, %s3516_s1, [#allocation4], %s2165_s9, %s2165_s9, %s2166_s10  }
 0x1af   :  { %2162 = dma.done.wait [#allocation4], 512  }
 0x1b0   :  { %2163 = vsyncadd [#allocation4], 4294966784 }
 0x1b1   :  { %1714 = vsyncpa [#allocation3], 1 }
 0x1b2   :  { %1715 = vsyncpa [#allocation4], 1 }

</bundles_post_ra>
